<compile_context>
chip_gen: v5e
topology: v5e:2x2
jax: 0.10.0
libtpu: 0.0.40
codegen_flags: <defaults>
</compile_context>

<pallas_src>
import functools

import jax
import jax.numpy as jnp
from jax.experimental import pallas as pl
from jax.experimental.pallas import tpu as pltpu


def _round_up(n, m):
    return ((n + m - 1) // m) * m


# ----------------------------------------------------------------------------
# Pallas kernel: tiled matmul + bias (+ optional ReLU), bf16 in / f32 acc.
# Serves every conv (via im2col) and the fused RPN score|loc head.
# ----------------------------------------------------------------------------
def _matmul_bias_kernel(a_ref, w_ref, bias_ref, o_ref, acc_ref, *, relu):
    @pl.when(pl.program_id(1) == 0)
    def _():
        acc_ref[...] = jnp.zeros_like(acc_ref)

    acc_ref[...] += jnp.dot(a_ref[...], w_ref[...],
                            preferred_element_type=jnp.float32)

    @pl.when(pl.program_id(1) == pl.num_programs(1) - 1)
    def _():
        out = acc_ref[...] + bias_ref[...]
        if relu:
            out = jnp.maximum(out, 0.0)
        o_ref[...] = out.astype(o_ref.dtype)


def pallas_linear(a, w, b, *, relu=False, tm=128, tk_cap=512):
    """out = a @ w + b (optional ReLU) on the MXU.

    a: (M, K); w: (K, N); b: (N,).  Inputs are cast to bf16, accumulation is
    f32.  The output is computed lane-dense (N padded to a multiple of 128
    with zero columns) and sliced back to N by the caller-facing return.
    """
    M, K = a.shape
    K2, N = w.shape
    assert K == K2, (K, K2)
    Np = _round_up(N, 128)
    w_p = jnp.pad(w, ((0, 0), (0, Np - N))) if Np != N else w
    b_p = jnp.pad(b, (0, Np - N)) if Np != N else b
    # Optional K grid axis (single step at these toy K's); tk must divide K
    # exactly so the accumulator never sees padded garbage.
    tk = tk_cap if (K % tk_cap == 0) else K
    nk = K // tk
    tm = min(tm, _round_up(M, 8))
    out = pl.pallas_call(
        functools.partial(_matmul_bias_kernel, relu=relu),
        out_shape=jax.ShapeDtypeStruct((M, Np), jnp.float32),
        grid=(pl.cdiv(M, tm), nk),
        in_specs=[
            pl.BlockSpec((tm, tk), lambda i, k: (i, k)),   # A: tile M (and K)
            pl.BlockSpec((tk, Np), lambda i, k: (k, 0)),   # W: lane-dense cols
            pl.BlockSpec((1, Np), lambda i, k: (0, 0)),    # bias resident
        ],
        out_specs=pl.BlockSpec((tm, Np), lambda i, k: (i, 0)),
        scratch_shapes=[pltpu.VMEM((tm, Np), jnp.float32)],
        compiler_params=pltpu.CompilerParams(
            dimension_semantics=("parallel", "arbitrary"),
            vmem_limit_bytes=32 * 1024 * 1024),
    )(a.astype(jnp.bfloat16), w_p.astype(jnp.bfloat16),
      b_p.reshape(1, Np).astype(jnp.float32))
    return out[:, :N]


# ----------------------------------------------------------------------------
# Pallas kernel: fully fused RoI head  pooled -> fc1 -> fc2 -> (cls_loc|score)
# All four weight matrices are VMEM resident; h1/h2 never touch HBM.
# ----------------------------------------------------------------------------
def _roi_head_kernel(pooled_ref, w1_ref, b1_ref, w2_ref, b2_ref,
                     w3_ref, b3_ref, o_ref):
    h1 = jnp.dot(pooled_ref[...], w1_ref[...],
                 preferred_element_type=jnp.float32)
    h1 = jnp.maximum(h1 + b1_ref[...], 0.0)
    h2 = jnp.dot(h1.astype(jnp.bfloat16), w2_ref[...],
                 preferred_element_type=jnp.float32)
    h2 = jnp.maximum(h2 + b2_ref[...], 0.0)
    out = jnp.dot(h2.astype(jnp.bfloat16), w3_ref[...],
                  preferred_element_type=jnp.float32)
    o_ref[...] = out + b3_ref[...]


# ----------------------------------------------------------------------------
# Conv2d (stride 1, "same" padding) as im2col + Pallas matmul (bf16 patches)
# ----------------------------------------------------------------------------
def conv2d_same(x_nhwc, w_oihw, b, *, relu=False):
    B, H, W, Cin = x_nhwc.shape
    Cout, Cin2, kh, kw = w_oihw.shape
    assert Cin == Cin2
    pad = kh // 2
    x16 = x_nhwc.astype(jnp.bfloat16)
    x_p = jnp.pad(x16, ((0, 0), (pad, pad), (pad, pad), (0, 0)))
    # TODO(synk): im2col patch extraction stays in XLA (shifted slices +
    #             concat, done in bf16); fusing it into the kernel via a
    #             tap grid axis would remove this extra HBM pass at non-toy
    #             feature-map sizes.
    cols = [x_p[:, dy:dy + H, dx:dx + W, :]
            for dy in range(kh) for dx in range(kw)]
    patches = jnp.concatenate(cols, axis=-1).reshape(B * H * W, kh * kw * Cin)
    # torch (Cout, Cin, kh, kw) -> (kh, kw, Cin, Cout) to match patch layout
    w_mat = jnp.transpose(w_oihw, (2, 3, 1, 0)).reshape(kh * kw * Cin, Cout)
    out = pallas_linear(patches, w_mat, b, relu=relu)
    return out.reshape(B, H, W, Cout)


# ----------------------------------------------------------------------------
# RPN helpers (anchor / proposal glue, plain JAX)
# ----------------------------------------------------------------------------
def generate_anchor_base(base_size=2.0, ratios=(0.5, 1.0, 2.0),
                         scales=(1.0, 2.0, 4.0)):
    anchors = []
    for r in ratios:
        for s in scales:
            h = base_size * s * (r ** 0.5)
            w = base_size * s * ((1.0 / r) ** 0.5)
            anchors.append([-h / 2.0, -w / 2.0, h / 2.0, w / 2.0])
    return jnp.array(anchors, dtype=jnp.float32)  # (A, 4) as (y1, x1, y2, x2)


def enumerate_anchors(anchor_base, H, W, feat_stride=1.0):
    shift_y = (jnp.arange(H, dtype=jnp.float32) + 0.5) * feat_stride
    shift_x = (jnp.arange(W, dtype=jnp.float32) + 0.5) * feat_stride
    sy, sx = jnp.meshgrid(shift_y, shift_x, indexing="ij")
    shifts = jnp.stack([sy, sx, sy, sx], axis=-1).reshape(H * W, 1, 4)
    anchors = shifts + anchor_base.reshape(1, -1, 4)
    return anchors.reshape(-1, 4)  # (H*W*A, 4)


def loc2bbox(anchors, locs):
    ah = anchors[:, 2] - anchors[:, 0]
    aw = anchors[:, 3] - anchors[:, 1]
    acy = anchors[:, 0] + 0.5 * ah
    acx = anchors[:, 1] + 0.5 * aw
    dy, dx, dh, dw = locs[:, 0], locs[:, 1], locs[:, 2], locs[:, 3]
    cy = dy * ah + acy
    cx = dx * aw + acx
    h = jnp.exp(dh) * ah
    w = jnp.exp(dw) * aw
    return jnp.stack([cy - 0.5 * h, cx - 0.5 * w,
                      cy + 0.5 * h, cx + 0.5 * w], axis=-1)


def rpn_forward(params, feat_nhwc, img_hw, n_post=32):
    B, H, W, C = feat_nhwc.shape
    A = params["anchor_base"].shape[0]
    mid = conv2d_same(feat_nhwc, params["rpn_conv_w"], params["rpn_conv_b"],
                      relu=True)
    mid_flat = mid.reshape(B * H * W, C)
    # Fused score|loc head: both 1x1 convs share mid_flat as LHS -> one kernel.
    w_sl = jnp.concatenate([params["rpn_score_w"], params["rpn_loc_w"]], axis=1)
    b_sl = jnp.concatenate([params["rpn_score_b"], params["rpn_loc_b"]], axis=0)
    sl = pallas_linear(mid_flat, w_sl, b_sl)                       # (BHW, A*6)
    rpn_score = sl[:, :A * 2].reshape(B, H * W * A, 2)
    rpn_loc = sl[:, A * 2:A * 6].reshape(B, H * W * A, 4)
    fg_prob = jax.nn.softmax(rpn_score, axis=-1)[..., 1]           # (B, HWA)
    anchors = enumerate_anchors(params["anchor_base"], H, W)       # (HWA, 4)
    boxes = jax.vmap(lambda l: loc2bbox(anchors, l))(rpn_loc)      # (B, HWA, 4)
    ih, iw = img_hw
    boxes = jnp.stack([
        jnp.clip(boxes[..., 0], 0.0, ih),
        jnp.clip(boxes[..., 1], 0.0, iw),
        jnp.clip(boxes[..., 2], 0.0, ih),
        jnp.clip(boxes[..., 3], 0.0, iw)], axis=-1)
    # TODO(synk): proposal NMS (nms_thresh=0.3) has no clean Pallas equivalent;
    #             proposals are the per-image top-k by foreground score only.
    _, top_idx = jax.lax.top_k(fg_prob, n_post)                    # (B, n_post)
    rois = jnp.take_along_axis(boxes, top_idx[..., None], axis=1)  # (B, n_post, 4)
    rois = rois.reshape(B * n_post, 4)
    roi_indices = jnp.repeat(jnp.arange(B, dtype=jnp.int32), n_post)
    return rpn_loc, rpn_score, rois, roi_indices, anchors


# ----------------------------------------------------------------------------
# RoI head: separable average pooling + fully fused FC chain in one kernel
# ----------------------------------------------------------------------------
def roi_pool_separable(feat_nhwc, rois_b, pool=7):
    """Average RoI pooling as two separable contractions (H then W).

    feat: (B, H, W, C); rois_b: (B, N, 4), proposals grouped per image.
    Returns pooled features (B*N, pool*pool*C), rows flattened in (p, q, c)
    order (fc1_w is stored in the matching row order, so no transpose).
    """
    # TODO(synk): reference RoIPooling2D is max pooling; average pooling is
    #             used because it is matmul/einsum expressible.
    B, H, W, C = feat_nhwc.shape
    N = rois_b.shape[1]
    y1, x1, y2, x2 = (rois_b[..., 0], rois_b[..., 1],
                      rois_b[..., 2], rois_b[..., 3])               # (B, N)
    p = jnp.arange(pool, dtype=jnp.float32)
    bin_h = (y2 - y1) / pool
    bin_w = (x2 - x1) / pool
    ys = y1[..., None] + p * bin_h[..., None]                       # (B, N, P)
    ye = y1[..., None] + (p + 1.0) * bin_h[..., None]
    xs = x1[..., None] + p * bin_w[..., None]
    xe = x1[..., None] + (p + 1.0) * bin_w[..., None]
    hgrid = jnp.arange(H, dtype=jnp.float32)
    wgrid = jnp.arange(W, dtype=jnp.float32)
    wy = jnp.maximum(0.0, jnp.minimum(hgrid + 1.0, ye[..., None])
                     - jnp.maximum(hgrid, ys[..., None]))           # (B, N, P, H)
    wx = jnp.maximum(0.0, jnp.minimum(wgrid + 1.0, xe[..., None])
                     - jnp.maximum(wgrid, xs[..., None]))           # (B, N, P, W)
    wy = wy / jnp.maximum(wy.sum(-1, keepdims=True), 1e-6)
    wx = wx / jnp.maximum(wx.sum(-1, keepdims=True), 1e-6)
    # Separable contraction: never materializes the dense (R*P*P, B*H*W) matrix.
    ph = jnp.einsum("bnph,bhwc->bnpwc", wy, feat_nhwc)              # (B, N, P, W, C)
    pq = jnp.einsum("bnqw,bnpwc->bnpqc", wx, ph)                    # (B, N, P, P, C)
    return pq.reshape(B * N, pool * pool * C)


def head_forward(params, feat_nhwc, rois, roi_indices, pool=7):
    B, H, W, C = feat_nhwc.shape
    R = rois.shape[0]
    n_post = R // B
    # rois from rpn_forward are grouped per image (roi_indices is
    # [0]*n_post + [1]*n_post + ...), so the separable pooling can use a
    # (B, n_post, 4) view without a gather.
    del roi_indices
    pooled = roi_pool_separable(feat_nhwc, rois.reshape(B, n_post, 4), pool)

    # Fused fc1 -> fc2 -> (cls_loc | score): a single pallas_call.  The two
    # output heads share the LHS via a concatenated weight padded to a
    # lane-dense 128 columns; h1/h2 stay in VMEM.
    w3 = jnp.concatenate([params["cls_loc_w"], params["score_w"]], axis=1)
    b3 = jnp.concatenate([params["cls_loc_b"], params["score_b"]], axis=0)
    n_loc = params["cls_loc_w"].shape[1]
    n_out = w3.shape[1]
    Np = _round_up(n_out, 128)
    w3p = jnp.pad(w3, ((0, 0), (0, Np - n_out)))
    b3p = jnp.pad(b3, (0, Np - n_out))
    out = pl.pallas_call(
        _roi_head_kernel,
        out_shape=jax.ShapeDtypeStruct((R, Np), jnp.float32),
        compiler_params=pltpu.CompilerParams(
            vmem_limit_bytes=32 * 1024 * 1024),
    )(pooled.astype(jnp.bfloat16),
      params["fc1_w"].astype(jnp.bfloat16),
      params["fc1_b"].reshape(1, -1).astype(jnp.float32),
      params["fc2_w"].astype(jnp.bfloat16),
      params["fc2_b"].reshape(1, -1).astype(jnp.float32),
      w3p.astype(jnp.bfloat16),
      b3p.reshape(1, Np).astype(jnp.float32))
    roi_cls_loc = out[:, :n_loc]
    roi_score = out[:, n_loc:n_out]
    return roi_cls_loc, roi_score


# ----------------------------------------------------------------------------
# FasterRCNN.forward : h = backbone(x); rpn(h, x, scale); head(h, rois, idx)
# ----------------------------------------------------------------------------
def faster_rcnn_forward(params, x_nchw, scale=1):
    del scale  # feat_stride already accounts for the feature/image size ratio
    x_nhwc = jnp.transpose(x_nchw, (0, 2, 3, 1)).astype(jnp.float32)
    B, H, W, _ = x_nhwc.shape
    feat = conv2d_same(x_nhwc, params["bb_conv_w"], params["bb_conv_b"],
                       relu=True)
    rpn_loc, rpn_score, rois, roi_indices, _anchors = rpn_forward(
        params, feat, img_hw=(float(H), float(W)))
    roi_cls_loc, roi_score = head_forward(params, feat, rois, roi_indices)
    return roi_cls_loc, roi_score, rois, roi_indices


def init_params(key, in_c=4, mid_c=32, n_anchor=9, n_class=5, pool=7):
    ks = jax.random.split(key, 8)
    p = {
        "bb_conv_w": 0.05 * jax.random.normal(ks[0], (mid_c, in_c, 3, 3), jnp.float32),
        "bb_conv_b": jnp.zeros((mid_c,), jnp.float32),
        "rpn_conv_w": 0.05 * jax.random.normal(ks[1], (mid_c, mid_c, 3, 3), jnp.float32),
        "rpn_conv_b": jnp.zeros((mid_c,), jnp.float32),
        "rpn_score_w": 0.05 * jax.random.normal(ks[2], (mid_c, n_anchor * 2), jnp.float32),
        "rpn_score_b": jnp.zeros((n_anchor * 2,), jnp.float32),
        "rpn_loc_w": 0.01 * jax.random.normal(ks[3], (mid_c, n_anchor * 4), jnp.float32),
        "rpn_loc_b": jnp.zeros((n_anchor * 4,), jnp.float32),
        # fc1_w rows are ordered (p, q, c) to match the natural layout of the
        # separably-pooled features -> no runtime transpose of `pooled`.
        "fc1_w": 0.02 * jax.random.normal(ks[4], (pool * pool * mid_c, 128), jnp.float32),
        "fc1_b": jnp.zeros((128,), jnp.float32),
        "fc2_w": 0.05 * jax.random.normal(ks[5], (128, 128), jnp.float32),
        "fc2_b": jnp.zeros((128,), jnp.float32),
        "cls_loc_w": 0.05 * jax.random.normal(ks[6], (128, n_class * 4), jnp.float32),
        "cls_loc_b": jnp.zeros((n_class * 4,), jnp.float32),
        "score_w": 0.05 * jax.random.normal(ks[7], (128, n_class), jnp.float32),
        "score_b": jnp.zeros((n_class,), jnp.float32),
        "anchor_base": generate_anchor_base(),
    }
    return p


if __name__ == "__main__":
    key = jax.random.PRNGKey(0)
    pkey, xkey = jax.random.split(key)
    params = init_params(pkey)
    x = jax.random.normal(xkey, (2, 4, 16, 16), dtype=jnp.float32)  # NCHW like PyTorch

    roi_cls_loc, roi_score, rois, roi_indices = jax.jit(
        lambda p, x: faster_rcnn_forward(p, x))(params, x)
    jax.block_until_ready((roi_cls_loc, roi_score, rois, roi_indices))

    n_roi = 2 * 32
    assert roi_cls_loc.shape == (n_roi, 5 * 4), roi_cls_loc.shape
    assert roi_score.shape == (n_roi, 5), roi_score.shape
    assert rois.shape == (n_roi, 4), rois.shape
    assert roi_indices.shape == (n_roi,), roi_indices.shape
    assert bool(jnp.all(jnp.isfinite(roi_cls_loc))) and bool(jnp.all(jnp.isfinite(roi_score)))
    print("KERNEL_OK")
</pallas_src>

<mosaic_0001>
module attributes {stable_mosaic.version = 11 : i64} {
  func.func @_matmul_bias_kernel(%arg0: i32, %arg1: i32, %arg2: memref<128x36xbf16, #tpu.memory_space<vmem>>, %arg3: memref<36x128xbf16, #tpu.memory_space<vmem>>, %arg4: memref<1x128xf32, #tpu.memory_space<vmem>>, %arg5: memref<128x128xf32, #tpu.memory_space<vmem>>, %arg6: memref<128x128xf32, #tpu.memory_space<vmem>>) attributes {dimension_semantics = [#tpu.dimension_semantics<parallel>, #tpu.dimension_semantics<arbitrary>], iteration_bounds = array<i64: 4, 1>, scalar_prefetch = 0 : i64, scratch_operands = 1 : i64, tpu.core_type = #tpu.core_type<tc>, window_params = [{transform_indices = @transform_0, window_bounds = array<i64: 128, 36>}, {transform_indices = @transform_1, window_bounds = array<i64: 36, 128>}, {pipeline_mode = #tpu.pipeline_mode<synchronous>, transform_indices = @transform_2, window_bounds = array<i64: 1, 128>}, {transform_indices = @transform_3, window_bounds = array<i64: 128, 128>}]} {
    %c0_i32 = arith.constant 0 : i32
    %0 = arith.cmpi eq, %arg1, %c0_i32 : i32
    %1 = arith.extui %0 : i1 to i32
    %c0_i32_0 = arith.constant 0 : i32
    %2 = arith.cmpi ne, %1, %c0_i32_0 : i32
    scf.if %2 {
      %cst_10 = arith.constant 0.000000e+00 : f32
      %12 = vector.broadcast %cst_10 : f32 to vector<128x128xf32>
      %c0_11 = arith.constant 0 : index
      %c0_12 = arith.constant 0 : index
      %13 = vector.load %arg6[%c0_11, %c0_12] : memref<128x128xf32, #tpu.memory_space<vmem>>, vector<128x128xf32>
      tpu.vector_store %arg6[%c0_11, %c0_12], %12 {strides = array<i32>} : memref<128x128xf32, #tpu.memory_space<vmem>>, vector<128x128xf32>,
    } else {
    }
    %c0 = arith.constant 0 : index
    %c0_1 = arith.constant 0 : index
    %3 = vector.load %arg6[%c0, %c0_1] : memref<128x128xf32, #tpu.memory_space<vmem>>, vector<128x128xf32>
    %c0_2 = arith.constant 0 : index
    %c0_3 = arith.constant 0 : index
    %4 = vector.load %arg2[%c0_2, %c0_3] : memref<128x36xbf16, #tpu.memory_space<vmem>>, vector<128x36xbf16>
    %c0_4 = arith.constant 0 : index
    %c0_5 = arith.constant 0 : index
    %5 = vector.load %arg3[%c0_4, %c0_5] : memref<36x128xbf16, #tpu.memory_space<vmem>>, vector<36x128xbf16>
    %cst = arith.constant dense<0.000000e+00> : vector<128x128xf32>
    %6 = tpu.matmul %4, %5, %cst {dimension_numbers = #tpu.dot_dimension_numbers<[1], [0], [0], [1], [0, 0, 1, 1], [], []>} : vector<128x36xbf16>, vector<36x128xbf16>, vector<128x128xf32> -> vector<128x128xf32>
    %7 = arith.addf %3, %6 : vector<128x128xf32>
    %c0_6 = arith.constant 0 : index
    %c0_7 = arith.constant 0 : index
    %8 = vector.load %arg6[%c0_6, %c0_7] : memref<128x128xf32, #tpu.memory_space<vmem>>, vector<128x128xf32>
    tpu.vector_store %arg6[%c0_6, %c0_7], %7 {strides = array<i32>} : memref<128x128xf32, #tpu.memory_space<vmem>>, vector<128x128xf32>,
    %c0_i32_8 = arith.constant 0 : i32
    %9 = arith.cmpi eq, %arg1, %c0_i32_8 : i32
    %10 = arith.extui %9 : i1 to i32
    %c0_i32_9 = arith.constant 0 : i32
    %11 = arith.cmpi ne, %10, %c0_i32_9 : i32
    scf.if %11 {
      %c0_10 = arith.constant 0 : index
      %c0_11 = arith.constant 0 : index
      %12 = vector.load %arg6[%c0_10, %c0_11] : memref<128x128xf32, #tpu.memory_space<vmem>>, vector<128x128xf32>
      %c0_12 = arith.constant 0 : index
      %c0_13 = arith.constant 0 : index
      %13 = vector.load %arg4[%c0_12, %c0_13] : memref<1x128xf32, #tpu.memory_space<vmem>>, vector<1x128xf32>
      %14 = vector.broadcast %13 : vector<1x128xf32> to vector<128x128xf32>
      %15 = arith.addf %12, %14 : vector<128x128xf32>
      %cst_14 = arith.constant 0.000000e+00 : f32
      %16 = vector.broadcast %cst_14 : f32 to vector<128x128xf32>
      %17 = arith.maximumf %15, %16 : vector<128x128xf32>
      %c0_15 = arith.constant 0 : index
      %c0_16 = arith.constant 0 : index
      %18 = vector.load %arg5[%c0_15, %c0_16] : memref<128x128xf32, #tpu.memory_space<vmem>>, vector<128x128xf32>
      tpu.vector_store %arg5[%c0_15, %c0_16], %17 {strides = array<i32>} : memref<128x128xf32, #tpu.memory_space<vmem>>, vector<128x128xf32>,
    } else {
    }
    return
  }
  func.func @transform_0(%arg0: i32, %arg1: i32) -> (i32, i32) {
    %c0_i32 = arith.constant 0 : i32
    return %arg0, %arg1 : i32, i32
  }
  func.func @transform_1(%arg0: i32, %arg1: i32) -> (i32, i32) {
    %c0_i32 = arith.constant 0 : i32
    %c0_i32_0 = arith.constant 0 : i32
    return %arg1, %c0_i32 : i32, i32
  }
  func.func @transform_2(%arg0: i32, %arg1: i32) -> (i32, i32) {
    %c0_i32 = arith.constant 0 : i32
    %c0_i32_0 = arith.constant 0 : i32
    %c0_i32_1 = arith.constant 0 : i32
    return %c0_i32, %c0_i32_0 : i32, i32
  }
  func.func @transform_3(%arg0: i32, %arg1: i32) -> (i32, i32) {
    %c0_i32 = arith.constant 0 : i32
    %c0_i32_0 = arith.constant 0 : i32
    return %arg0, %c0_i32 : i32, i32
  }
}

module attributes {stable_mosaic.version = 11 : i64} {
  func.func @_matmul_bias_kernel(%arg0: i32, %arg1: i32, %arg2: memref<128x288xbf16, #tpu.memory_space<vmem>>, %arg3: memref<288x128xbf16, #tpu.memory_space<vmem>>, %arg4: memref<1x128xf32, #tpu.memory_space<vmem>>, %arg5: memref<128x128xf32, #tpu.memory_space<vmem>>, %arg6: memref<128x128xf32, #tpu.memory_space<vmem>>) attributes {dimension_semantics = [#tpu.dimension_semantics<parallel>, #tpu.dimension_semantics<arbitrary>], iteration_bounds = array<i64: 4, 1>, scalar_prefetch = 0 : i64, scratch_operands = 1 : i64, tpu.core_type = #tpu.core_type<tc>, window_params = [{transform_indices = @transform_0, window_bounds = array<i64: 128, 288>}, {transform_indices = @transform_1, window_bounds = array<i64: 288, 128>}, {pipeline_mode = #tpu.pipeline_mode<synchronous>, transform_indices = @transform_2, window_bounds = array<i64: 1, 128>}, {transform_indices = @transform_3, window_bounds = array<i64: 128, 128>}]} {
    %c0_i32 = arith.constant 0 : i32
    %0 = arith.cmpi eq, %arg1, %c0_i32 : i32
    %1 = arith.extui %0 : i1 to i32
    %c0_i32_0 = arith.constant 0 : i32
    %2 = arith.cmpi ne, %1, %c0_i32_0 : i32
    scf.if %2 {
      %cst_10 = arith.constant 0.000000e+00 : f32
      %12 = vector.broadcast %cst_10 : f32 to vector<128x128xf32>
      %c0_11 = arith.constant 0 : index
      %c0_12 = arith.constant 0 : index
      %13 = vector.load %arg6[%c0_11, %c0_12] : memref<128x128xf32, #tpu.memory_space<vmem>>, vector<128x128xf32>
      tpu.vector_store %arg6[%c0_11, %c0_12], %12 {strides = array<i32>} : memref<128x128xf32, #tpu.memory_space<vmem>>, vector<128x128xf32>,
    } else {
    }
    %c0 = arith.constant 0 : index
    %c0_1 = arith.constant 0 : index
    %3 = vector.load %arg6[%c0, %c0_1] : memref<128x128xf32, #tpu.memory_space<vmem>>, vector<128x128xf32>
    %c0_2 = arith.constant 0 : index
    %c0_3 = arith.constant 0 : index
    %4 = vector.load %arg2[%c0_2, %c0_3] : memref<128x288xbf16, #tpu.memory_space<vmem>>, vector<128x288xbf16>
    %c0_4 = arith.constant 0 : index
    %c0_5 = arith.constant 0 : index
    %5 = vector.load %arg3[%c0_4, %c0_5] : memref<288x128xbf16, #tpu.memory_space<vmem>>, vector<288x128xbf16>
    %cst = arith.constant dense<0.000000e+00> : vector<128x128xf32>
    %6 = tpu.matmul %4, %5, %cst {dimension_numbers = #tpu.dot_dimension_numbers<[1], [0], [0], [1], [0, 0, 1, 1], [], []>} : vector<128x288xbf16>, vector<288x128xbf16>, vector<128x128xf32> -> vector<128x128xf32>
    %7 = arith.addf %3, %6 : vector<128x128xf32>
    %c0_6 = arith.constant 0 : index
    %c0_7 = arith.constant 0 : index
    %8 = vector.load %arg6[%c0_6, %c0_7] : memref<128x128xf32, #tpu.memory_space<vmem>>, vector<128x128xf32>
    tpu.vector_store %arg6[%c0_6, %c0_7], %7 {strides = array<i32>} : memref<128x128xf32, #tpu.memory_space<vmem>>, vector<128x128xf32>,
    %c0_i32_8 = arith.constant 0 : i32
    %9 = arith.cmpi eq, %arg1, %c0_i32_8 : i32
    %10 = arith.extui %9 : i1 to i32
    %c0_i32_9 = arith.constant 0 : i32
    %11 = arith.cmpi ne, %10, %c0_i32_9 : i32
    scf.if %11 {
      %c0_10 = arith.constant 0 : index
      %c0_11 = arith.constant 0 : index
      %12 = vector.load %arg6[%c0_10, %c0_11] : memref<128x128xf32, #tpu.memory_space<vmem>>, vector<128x128xf32>
      %c0_12 = arith.constant 0 : index
      %c0_13 = arith.constant 0 : index
      %13 = vector.load %arg4[%c0_12, %c0_13] : memref<1x128xf32, #tpu.memory_space<vmem>>, vector<1x128xf32>
      %14 = vector.broadcast %13 : vector<1x128xf32> to vector<128x128xf32>
      %15 = arith.addf %12, %14 : vector<128x128xf32>
      %cst_14 = arith.constant 0.000000e+00 : f32
      %16 = vector.broadcast %cst_14 : f32 to vector<128x128xf32>
      %17 = arith.maximumf %15, %16 : vector<128x128xf32>
      %c0_15 = arith.constant 0 : index
      %c0_16 = arith.constant 0 : index
      %18 = vector.load %arg5[%c0_15, %c0_16] : memref<128x128xf32, #tpu.memory_space<vmem>>, vector<128x128xf32>
      tpu.vector_store %arg5[%c0_15, %c0_16], %17 {strides = array<i32>} : memref<128x128xf32, #tpu.memory_space<vmem>>, vector<128x128xf32>,
    } else {
    }
    return
  }
  func.func @transform_0(%arg0: i32, %arg1: i32) -> (i32, i32) {
    %c0_i32 = arith.constant 0 : i32
    return %arg0, %arg1 : i32, i32
  }
  func.func @transform_1(%arg0: i32, %arg1: i32) -> (i32, i32) {
    %c0_i32 = arith.constant 0 : i32
    %c0_i32_0 = arith.constant 0 : i32
    return %arg1, %c0_i32 : i32, i32
  }
  func.func @transform_2(%arg0: i32, %arg1: i32) -> (i32, i32) {
    %c0_i32 = arith.constant 0 : i32
    %c0_i32_0 = arith.constant 0 : i32
    %c0_i32_1 = arith.constant 0 : i32
    return %c0_i32, %c0_i32_0 : i32, i32
  }
  func.func @transform_3(%arg0: i32, %arg1: i32) -> (i32, i32) {
    %c0_i32 = arith.constant 0 : i32
    %c0_i32_0 = arith.constant 0 : i32
    return %arg0, %c0_i32 : i32, i32
  }
}

module attributes {stable_mosaic.version = 11 : i64} {
  func.func @_matmul_bias_kernel(%arg0: i32, %arg1: i32, %arg2: memref<128x32xbf16, #tpu.memory_space<vmem>>, %arg3: memref<32x128xbf16, #tpu.memory_space<vmem>>, %arg4: memref<1x128xf32, #tpu.memory_space<vmem>>, %arg5: memref<128x128xf32, #tpu.memory_space<vmem>>, %arg6: memref<128x128xf32, #tpu.memory_space<vmem>>) attributes {dimension_semantics = [#tpu.dimension_semantics<parallel>, #tpu.dimension_semantics<arbitrary>], iteration_bounds = array<i64: 4, 1>, scalar_prefetch = 0 : i64, scratch_operands = 1 : i64, tpu.core_type = #tpu.core_type<tc>, window_params = [{transform_indices = @transform_0, window_bounds = array<i64: 128, 32>}, {transform_indices = @transform_1, window_bounds = array<i64: 32, 128>}, {pipeline_mode = #tpu.pipeline_mode<synchronous>, transform_indices = @transform_2, window_bounds = array<i64: 1, 128>}, {transform_indices = @transform_3, window_bounds = array<i64: 128, 128>}]} {
    %c0_i32 = arith.constant 0 : i32
    %0 = arith.cmpi eq, %arg1, %c0_i32 : i32
    %1 = arith.extui %0 : i1 to i32
    %c0_i32_0 = arith.constant 0 : i32
    %2 = arith.cmpi ne, %1, %c0_i32_0 : i32
    scf.if %2 {
      %cst_10 = arith.constant 0.000000e+00 : f32
      %12 = vector.broadcast %cst_10 : f32 to vector<128x128xf32>
      %c0_11 = arith.constant 0 : index
      %c0_12 = arith.constant 0 : index
      %13 = vector.load %arg6[%c0_11, %c0_12] : memref<128x128xf32, #tpu.memory_space<vmem>>, vector<128x128xf32>
      tpu.vector_store %arg6[%c0_11, %c0_12], %12 {strides = array<i32>} : memref<128x128xf32, #tpu.memory_space<vmem>>, vector<128x128xf32>,
    } else {
    }
    %c0 = arith.constant 0 : index
    %c0_1 = arith.constant 0 : index
    %3 = vector.load %arg6[%c0, %c0_1] : memref<128x128xf32, #tpu.memory_space<vmem>>, vector<128x128xf32>
    %c0_2 = arith.constant 0 : index
    %c0_3 = arith.constant 0 : index
    %4 = vector.load %arg2[%c0_2, %c0_3] : memref<128x32xbf16, #tpu.memory_space<vmem>>, vector<128x32xbf16>
    %c0_4 = arith.constant 0 : index
    %c0_5 = arith.constant 0 : index
    %5 = vector.load %arg3[%c0_4, %c0_5] : memref<32x128xbf16, #tpu.memory_space<vmem>>, vector<32x128xbf16>
    %cst = arith.constant dense<0.000000e+00> : vector<128x128xf32>
    %6 = tpu.matmul %4, %5, %cst {dimension_numbers = #tpu.dot_dimension_numbers<[1], [0], [0], [1], [0, 0, 1, 1], [], []>} : vector<128x32xbf16>, vector<32x128xbf16>, vector<128x128xf32> -> vector<128x128xf32>
    %7 = arith.addf %3, %6 : vector<128x128xf32>
    %c0_6 = arith.constant 0 : index
    %c0_7 = arith.constant 0 : index
    %8 = vector.load %arg6[%c0_6, %c0_7] : memref<128x128xf32, #tpu.memory_space<vmem>>, vector<128x128xf32>
    tpu.vector_store %arg6[%c0_6, %c0_7], %7 {strides = array<i32>} : memref<128x128xf32, #tpu.memory_space<vmem>>, vector<128x128xf32>,
    %c0_i32_8 = arith.constant 0 : i32
    %9 = arith.cmpi eq, %arg1, %c0_i32_8 : i32
    %10 = arith.extui %9 : i1 to i32
    %c0_i32_9 = arith.constant 0 : i32
    %11 = arith.cmpi ne, %10, %c0_i32_9 : i32
    scf.if %11 {
      %c0_10 = arith.constant 0 : index
      %c0_11 = arith.constant 0 : index
      %12 = vector.load %arg6[%c0_10, %c0_11] : memref<128x128xf32, #tpu.memory_space<vmem>>, vector<128x128xf32>
      %c0_12 = arith.constant 0 : index
      %c0_13 = arith.constant 0 : index
      %13 = vector.load %arg4[%c0_12, %c0_13] : memref<1x128xf32, #tpu.memory_space<vmem>>, vector<1x128xf32>
      %14 = vector.broadcast %13 : vector<1x128xf32> to vector<128x128xf32>
      %15 = arith.addf %12, %14 : vector<128x128xf32>
      %c0_14 = arith.constant 0 : index
      %c0_15 = arith.constant 0 : index
      %16 = vector.load %arg5[%c0_14, %c0_15] : memref<128x128xf32, #tpu.memory_space<vmem>>, vector<128x128xf32>
      tpu.vector_store %arg5[%c0_14, %c0_15], %15 {strides = array<i32>} : memref<128x128xf32, #tpu.memory_space<vmem>>, vector<128x128xf32>,
    } else {
    }
    return
  }
  func.func @transform_0(%arg0: i32, %arg1: i32) -> (i32, i32) {
    %c0_i32 = arith.constant 0 : i32
    return %arg0, %arg1 : i32, i32
  }
  func.func @transform_1(%arg0: i32, %arg1: i32) -> (i32, i32) {
    %c0_i32 = arith.constant 0 : i32
    %c0_i32_0 = arith.constant 0 : i32
    return %arg1, %c0_i32 : i32, i32
  }
  func.func @transform_2(%arg0: i32, %arg1: i32) -> (i32, i32) {
    %c0_i32 = arith.constant 0 : i32
    %c0_i32_0 = arith.constant 0 : i32
    %c0_i32_1 = arith.constant 0 : i32
    return %c0_i32, %c0_i32_0 : i32, i32
  }
  func.func @transform_3(%arg0: i32, %arg1: i32) -> (i32, i32) {
    %c0_i32 = arith.constant 0 : i32
    %c0_i32_0 = arith.constant 0 : i32
    return %arg0, %c0_i32 : i32, i32
  }
}

module attributes {stable_mosaic.version = 11 : i64} {
  func.func @_roi_head_kernel(%arg0: memref<64x1568xbf16, #tpu.memory_space<vmem>>, %arg1: memref<1568x128xbf16, #tpu.memory_space<vmem>>, %arg2: memref<1x128xf32, #tpu.memory_space<vmem>>, %arg3: memref<128x128xbf16, #tpu.memory_space<vmem>>, %arg4: memref<1x128xf32, #tpu.memory_space<vmem>>, %arg5: memref<128x128xbf16, #tpu.memory_space<vmem>>, %arg6: memref<1x128xf32, #tpu.memory_space<vmem>>, %arg7: memref<64x128xf32, #tpu.memory_space<vmem>>) attributes {dimension_semantics = [], scalar_prefetch = 0 : i64, scratch_operands = 0 : i64, tpu.core_type = #tpu.core_type<tc>} {
    %c0 = arith.constant 0 : index
    %c0_0 = arith.constant 0 : index
    %0 = vector.load %arg0[%c0, %c0_0] : memref<64x1568xbf16, #tpu.memory_space<vmem>>, vector<64x1568xbf16>
    %c0_1 = arith.constant 0 : index
    %c0_2 = arith.constant 0 : index
    %1 = vector.load %arg1[%c0_1, %c0_2] : memref<1568x128xbf16, #tpu.memory_space<vmem>>, vector<1568x128xbf16>
    %cst = arith.constant dense<0.000000e+00> : vector<64x128xf32>
    %2 = tpu.matmul %0, %1, %cst {dimension_numbers = #tpu.dot_dimension_numbers<[1], [0], [0], [1], [0, 0, 1, 1], [], []>} : vector<64x1568xbf16>, vector<1568x128xbf16>, vector<64x128xf32> -> vector<64x128xf32>
    %c0_3 = arith.constant 0 : index
    %c0_4 = arith.constant 0 : index
    %3 = vector.load %arg2[%c0_3, %c0_4] : memref<1x128xf32, #tpu.memory_space<vmem>>, vector<1x128xf32>
    %4 = vector.broadcast %3 : vector<1x128xf32> to vector<64x128xf32>
    %5 = arith.addf %2, %4 : vector<64x128xf32>
    %cst_5 = arith.constant 0.000000e+00 : f32
    %6 = vector.broadcast %cst_5 : f32 to vector<64x128xf32>
    %7 = arith.maximumf %5, %6 : vector<64x128xf32>
    %8 = arith.truncf %7 : vector<64x128xf32> to vector<64x128xbf16>
    %c0_6 = arith.constant 0 : index
    %c0_7 = arith.constant 0 : index
    %9 = vector.load %arg3[%c0_6, %c0_7] : memref<128x128xbf16, #tpu.memory_space<vmem>>, vector<128x128xbf16>
    %cst_8 = arith.constant dense<0.000000e+00> : vector<64x128xf32>
    %10 = tpu.matmul %8, %9, %cst_8 {dimension_numbers = #tpu.dot_dimension_numbers<[1], [0], [0], [1], [0, 0, 1, 1], [], []>} : vector<64x128xbf16>, vector<128x128xbf16>, vector<64x128xf32> -> vector<64x128xf32>
    %c0_9 = arith.constant 0 : index
    %c0_10 = arith.constant 0 : index
    %11 = vector.load %arg4[%c0_9, %c0_10] : memref<1x128xf32, #tpu.memory_space<vmem>>, vector<1x128xf32>
    %12 = vector.broadcast %11 : vector<1x128xf32> to vector<64x128xf32>
    %13 = arith.addf %10, %12 : vector<64x128xf32>
    %cst_11 = arith.constant 0.000000e+00 : f32
    %14 = vector.broadcast %cst_11 : f32 to vector<64x128xf32>
    %15 = arith.maximumf %13, %14 : vector<64x128xf32>
    %16 = arith.truncf %15 : vector<64x128xf32> to vector<64x128xbf16>
    %c0_12 = arith.constant 0 : index
    %c0_13 = arith.constant 0 : index
    %17 = vector.load %arg5[%c0_12, %c0_13] : memref<128x128xbf16, #tpu.memory_space<vmem>>, vector<128x128xbf16>
    %cst_14 = arith.constant dense<0.000000e+00> : vector<64x128xf32>
    %18 = tpu.matmul %16, %17, %cst_14 {dimension_numbers = #tpu.dot_dimension_numbers<[1], [0], [0], [1], [0, 0, 1, 1], [], []>} : vector<64x128xbf16>, vector<128x128xbf16>, vector<64x128xf32> -> vector<64x128xf32>
    %c0_15 = arith.constant 0 : index
    %c0_16 = arith.constant 0 : index
    %19 = vector.load %arg6[%c0_15, %c0_16] : memref<1x128xf32, #tpu.memory_space<vmem>>, vector<1x128xf32>
    %20 = vector.broadcast %19 : vector<1x128xf32> to vector<64x128xf32>
    %21 = arith.addf %18, %20 : vector<64x128xf32>
    %c0_17 = arith.constant 0 : index
    %c0_18 = arith.constant 0 : index
    %22 = vector.load %arg7[%c0_17, %c0_18] : memref<64x128xf32, #tpu.memory_space<vmem>>, vector<64x128xf32>
    tpu.vector_store %arg7[%c0_17, %c0_18], %21 {strides = array<i32>} : memref<64x128xf32, #tpu.memory_space<vmem>>, vector<64x128xf32>,
    return
  }
}

</mosaic_0001>

<bundles_post_ra>
// kernel: _lambda_.4
= control target key start
LH: loop header
LB: loop body
LE: loop exit
PB: predicated region body
PF: predicated region fallthrough
CT: control target
= control target key end

     0   :  { %s744_s12 = smov 0   ;;  %s746_s13 = smov 0   ;;  %s819_s0 = inlined_call_operand.vmem [shape: bf16[512,36], index: 0, kind: input, shape index: {}]   ;;  %s820_s1 = inlined_call_operand.vmem [shape: bf16[36,128], index: 1, kind: input, shape index: {}]   ;;  %s821_s2 = inlined_call_operand.vmem [shape: f32[1,128], index: 2, kind: input, shape index: {}]   ;;  %s822_s3 = inlined_call_operand.vmem [shape: f32[512,128], index: 3, kind: output, shape index: {}]  }
   0x1   :  { %s748_s14 = smov 0  }
   0x2 LB: > { %s25_s15 = sadd.s32 1, %s718_s13  ;;  %p601_p0 = scmp.ge.s32.totalorder %s722_s14, 1  ;;  %s722_s14 = sphi %s748_s14, %s13_s14   ;;  %s718_s13 = sphi %s746_s13, %s824_s13   ;;  %s714_s12 = sphi %s744_s12, %s823_s12  }
   0x3   : > { %p27_p1 = scmp.ge.s32.totalorder %s25_s15, 4  ;;  %p166_p2 = scmp.lt.s32.totalorder %s722_s14, 5 }
   0x5   : > { %s826_s15 = smov (%p27_p1, %s25_s15), 0  ;;  %p167_p3 = pnand %p601_p0, %p166_p2 }
   0x6   : > { %s602_s18 = sshll.u32 (!%p167_p3), %s714_s12, 4 }
   0x7   : > { %170 = sbr.rel (%p167_p3) target bundleno = 192 (0xc0), region = 32  ;;  %p199_p4 = scmp.lt.s32.totalorder (!%p167_p3), %s602_s18, 63 }
   0xc   : > { %v276_v0 = vld [vmem:[%s820_s1 + $0x10] sm:$0x3]  ;;  %vm357_vm0 = vcmask 1041408   ;;  %s828_s18 = smov (!%p199_p4, %s602_s18), 63  ;;  %v665_v4 = vld [vmem:[%s820_s1 + $0x8] sm:$0xff]  ;;  %v664_v5 = vld [vmem:[%s820_s1] sm:$0xff] }
   0xd   : > { %v326_v1 = vunpack.c.l.b16 %v276_v0  ;;  %s603_s21 = sshll.u32 %s828_s18, 2  ;;  %vm332_vm1 = vcmask 293888   ;;  %v699_v14 = vld [vmem:[%s821_s2] ss:$0 sm:$0xff]  ;;  %s605_s29 = sshll.u32 %s828_s18, 3 }
   0xe   : > { %s205_s26 = scalar_lea.vmem %s819_s0, %s603_s21  ;;  %s792_s5 = scalar_lea.vmem %s822_s3, %s605_s29 }
   0xf   : > { %v329_v2 = vpack.c.b16 %v326_v1, %v326_v1  ;;  %v656_v6 = vld [vmem:[%s205_s26] sm:$0xff]  ;;  %v658_v7 = vld [vmem:[%s205_s26 + $0x10] sm:$0xff]  ;;  %v657_v10 = vld [vmem:[%s205_s26 + $0x8] sm:$0xff] }
  0x10   : > { %v660_v8 = vld [vmem:[%s205_s26 + $0x20] sm:$0xff]  ;;  %v662_v9 = vld [vmem:[%s205_s26 + $0x30] sm:$0xff]  ;;  %v659_v11 = vld [vmem:[%s205_s26 + $0x18] sm:$0xff] }
  0x11   : > { %v359_v3 = vsel %vm357_vm0, %v329_v2, 0  ;;  %v661_v12 = vld [vmem:[%s205_s26 + $0x28] sm:$0xff]  ;;  %v663_v13 = vld [vmem:[%s205_s26 + $0x38] sm:$0xff] }
  0x12   : > { %366 = vmatpush.bf16.msra.mxu0 %v359_v3  ;;  %666 = vmatpush.bf16.msra.mxu1 %v359_v3 }
  0x13   : > { %667 = vmatpush.bf16.msra.mxu2 %v359_v3  ;;  %668 = vmatpush.bf16.msra.mxu3 %v359_v3 }
  0x16   : > { %367 = vmatpush.bf16.msra.mxu0 %v665_v4  ;;  %669 = vmatpush.bf16.msra.mxu1 %v665_v4 }
  0x17   : > { %670 = vmatpush.bf16.msra.mxu2 %v665_v4  ;;  %671 = vmatpush.bf16.msra.mxu3 %v665_v4 }
  0x1a   : > { %368 = vmatpush.bf16.msra.mxu0 %v664_v5  ;;  %672 = vmatpush.bf16.msra.mxu1 %v664_v5 }
  0x1b   : > { %673 = vmatpush.bf16.msra.mxu2 %v664_v5  ;;  %674 = vmatpush.bf16.msra.mxu3 %v664_v5 }
  0x1d   : > { %646 = vmatmul.msk.bf16.vlgmr.msra.gmra.mxu0 %vm332_vm1, %v656_v6  ;;  %648 = vmatmul.msk.bf16.vlgmr.msra.gmra.mxu1 %vm332_vm1, %v658_v7 }
  0x1e   : > { %650 = vmatmul.msk.bf16.vlgmr.msra.gmra.mxu2 %vm332_vm1, %v660_v8  ;;  %652 = vmatmul.msk.bf16.vlgmr.msra.gmra.mxu3 %vm332_vm1, %v662_v9 }
  0x2d   : > { %647 = vmatmul.msk.bf16.gmra.mxu0 %vm332_vm1, %v657_v10  ;;  %649 = vmatmul.msk.bf16.gmra.mxu1 %vm332_vm1, %v659_v11 }
  0x2e   : > { %651 = vmatmul.msk.bf16.gmra.mxu2 %vm332_vm1, %v661_v12  ;;  %653 = vmatmul.msk.bf16.gmra.mxu3 %vm332_vm1, %v663_v13 }
  0x9a   : > { %v370_v15 = vpop.f32.mrf.mxu0  ;;  %v380_v16 = vpop.f32.mrf.mxu1 }
  0x9b   : > { %v465_v17 = vadd.f32 %v699_v14, %v370_v15  ;;  %v469_v18 = vadd.f32 %v699_v14, %v380_v16 }
  0x9d   : > { %v481_v19 = vmax.f32 %v465_v17, 0.0  ;;  %v485_v20 = vmax.f32 %v469_v18, 0.0 }
  0x9f   : > { %497 = vst [vmem:[%s792_s5] sm:$0xff] %v481_v19 }
  0xa0   : > { %501 = vst [vmem:[%s792_s5 + $0x20] sm:$0xff] %v485_v20 }
  0xa1   : > { %v390_v21 = vpop.f32.mrf.mxu2  ;;  %v400_v22 = vpop.f32.mrf.mxu3 }
  0xa2   : > { %v473_v23 = vadd.f32 %v699_v14, %v390_v21  ;;  %v477_v24 = vadd.f32 %v699_v14, %v400_v22  ;;  %v372_v25 = vpop.f32.mrf.mxu0  ;;  %v382_v26 = vpop.f32.mrf.mxu1 }
  0xa3   : > { %v466_v27 = vadd.f32 %v699_v14, %v372_v25  ;;  %v470_v28 = vadd.f32 %v699_v14, %v382_v26 }
  0xa4   : > { %v489_v29 = vmax.f32 %v473_v23, 0.0  ;;  %v493_v30 = vmax.f32 %v477_v24, 0.0 }
  0xa5   : > { %v482_v31 = vmax.f32 %v466_v27, 0.0  ;;  %v486_v32 = vmax.f32 %v470_v28, 0.0 }
  0xa6   : > { %505 = vst [vmem:[%s792_s5 + $0x40] sm:$0xff] %v489_v29 }
  0xa7   : > { %509 = vst [vmem:[%s792_s5 + $0x60] sm:$0xff] %v493_v30 }
  0xa8   : > { %498 = vst [vmem:[%s792_s5 + $0x8] sm:$0xff] %v482_v31 }
  0xa9   : > { %502 = vst [vmem:[%s792_s5 + $0x28] sm:$0xff] %v486_v32  ;;  %v392_v33 = vpop.f32.mrf.mxu2  ;;  %v402_v34 = vpop.f32.mrf.mxu3 }
  0xaa   : > { %v474_v35 = vadd.f32 %v699_v14, %v392_v33  ;;  %v478_v36 = vadd.f32 %v699_v14, %v402_v34  ;;  %v375_v37 = vpop.f32.mrf.mxu0  ;;  %v385_v38 = vpop.f32.mrf.mxu1 }
  0xab   : > { %v467_v39 = vadd.f32 %v699_v14, %v375_v37  ;;  %v471_v40 = vadd.f32 %v699_v14, %v385_v38 }
  0xac   : > { %v490_v41 = vmax.f32 %v474_v35, 0.0  ;;  %v494_v42 = vmax.f32 %v478_v36, 0.0 }
  0xad   : > { %v483_v43 = vmax.f32 %v467_v39, 0.0  ;;  %v487_v44 = vmax.f32 %v471_v40, 0.0 }
  0xae   : > { %506 = vst [vmem:[%s792_s5 + $0x48] sm:$0xff] %v490_v41 }
  0xaf   : > { %510 = vst [vmem:[%s792_s5 + $0x68] sm:$0xff] %v494_v42 }
  0xb0   : > { %499 = vst [vmem:[%s792_s5 + $0x10] sm:$0xff] %v483_v43 }
  0xb1   : > { %503 = vst [vmem:[%s792_s5 + $0x30] sm:$0xff] %v487_v44  ;;  %v395_v45 = vpop.f32.mrf.mxu2  ;;  %v405_v46 = vpop.f32.mrf.mxu3 }
  0xb2   : > { %v475_v47 = vadd.f32 %v699_v14, %v395_v45  ;;  %v479_v48 = vadd.f32 %v699_v14, %v405_v46  ;;  %v377_v49 = vpop.f32.mrf.mxu0  ;;  %v387_v50 = vpop.f32.mrf.mxu1 }
  0xb3   : > { %v468_v51 = vadd.f32 %v699_v14, %v377_v49  ;;  %v472_v52 = vadd.f32 %v699_v14, %v387_v50 }
  0xb4   : > { %v491_v53 = vmax.f32 %v475_v47, 0.0  ;;  %v495_v54 = vmax.f32 %v479_v48, 0.0 }
  0xb5   : > { %v484_v55 = vmax.f32 %v468_v51, 0.0  ;;  %v488_v56 = vmax.f32 %v472_v52, 0.0 }
  0xb6   : > { %507 = vst [vmem:[%s792_s5 + $0x50] sm:$0xff] %v491_v53 }
  0xb7   : > { %511 = vst [vmem:[%s792_s5 + $0x70] sm:$0xff] %v495_v54 }
  0xb8   : > { %500 = vst [vmem:[%s792_s5 + $0x18] sm:$0xff] %v484_v55 }
  0xb9   : > { %504 = vst [vmem:[%s792_s5 + $0x38] sm:$0xff] %v488_v56  ;;  %v397_v57 = vpop.f32.mrf.mxu2  ;;  %v407_v58 = vpop.f32.mrf.mxu3 }
  0xba   : > { %v476_v59 = vadd.f32 %v699_v14, %v397_v57  ;;  %v480_v60 = vadd.f32 %v699_v14, %v407_v58 }
  0xbc   : > { %v492_v61 = vmax.f32 %v476_v59, 0.0  ;;  %v496_v62 = vmax.f32 %v480_v60, 0.0 }
  0xbe   : > { %508 = vst [vmem:[%s792_s5 + $0x58] sm:$0xff] %v492_v61 }
  0xbf   : > { %512 = vst [vmem:[%s792_s5 + $0x78] sm:$0xff] %v496_v62 }
  0xc0 PF: > { %s13_s14 = sadd.s32 1, %s722_s14   ;;  %s823_s12 = smov %s718_s13 }
  0xc1   : > { %p10_p5 = scmp.ge.s32.totalorder %s13_s14, 6   ;;  %s824_s13 = smov %s826_s15 }
  0xc3   :  { %12 = sbr.rel (!%p10_p5) target bundleno = 2 (0x2), region = 73 }

// kernel: _lambda_.5
= control target key start
LH: loop header
LB: loop body
LE: loop exit
PB: predicated region body
PF: predicated region fallthrough
CT: control target
= control target key end

     0   :  { %s1237_s12 = smov 0   ;;  %s1239_s13 = smov 0   ;;  %s1429_s0 = inlined_call_operand.vmem [shape: bf16[512,288], index: 0, kind: input, shape index: {}]   ;;  %s1430_s1 = inlined_call_operand.vmem [shape: bf16[288,128], index: 1, kind: input, shape index: {}]   ;;  %s1431_s2 = inlined_call_operand.vmem [shape: f32[1,128], index: 2, kind: input, shape index: {}]   ;;  %s1432_s3 = inlined_call_operand.vmem [shape: f32[512,128], index: 3, kind: output, shape index: {}]  }
   0x1   :  { %s1241_s14 = smov 0  }
   0x2 LB: > { %s25_s15 = sadd.s32 1, %s1211_s13  ;;  %p926_p0 = scmp.ge.s32.totalorder %s1215_s14, 1  ;;  %s1215_s14 = sphi %s1241_s14, %s13_s14   ;;  %s1211_s13 = sphi %s1239_s13, %s1434_s13   ;;  %s1207_s12 = sphi %s1237_s12, %s1433_s12  }
   0x3   : > { %p27_p1 = scmp.ge.s32.totalorder %s25_s15, 4  ;;  %p169_p2 = scmp.lt.s32.totalorder %s1215_s14, 5 }
   0x5   : > { %s1436_s15 = smov (%p27_p1, %s25_s15), 0  ;;  %p170_p3 = pnand %p926_p0, %p169_p2 }
   0x6   : > { %s927_s22 = sshll.u32 (!%p170_p3), %s1207_s12, 4 }
   0x7   : > { %173 = sbr.rel (%p170_p3) target bundleno = 281 (0x119), region = 32  ;;  %p205_p4 = scmp.lt.s32.totalorder (!%p170_p3), %s927_s22, 63 }
   0xc   : > { %v1140_v0 = vld [vmem:[%s1430_s1 + $0x38] sm:$0xff]  ;;  %v1150_v2 = vld [vmem:[%s1430_s1 + $0x88] sm:$0xff]  ;;  %v1139_v3 = vld [vmem:[%s1430_s1 + $0x30] sm:$0xff]  ;;  %s1438_s22 = smov (!%p205_p4, %s927_s22), 63  ;;  %vm560_vm0 = vcmask 261120  }
   0xd   : > { %v1261_v1 = vld [vmem:[%s1430_s1 + $0x78] sm:$0xff]  ;;  %585 = vmatpush.bf16.msra.mxu0 %v1140_v0  ;;  %1151 = vmatpush.bf16.msra.mxu3 %v1140_v0  ;;  %v1147_v4 = vld [vmem:[%s1430_s1 + $0x70] sm:$0xff]  ;;  %v1149_v5 = vld [vmem:[%s1430_s1 + $0x80] sm:$0xff]  ;;  %s1167_s29 = smul.u32 12, %s1438_s22  ;;  %s930_s10 = sshll.u32 %s1438_s22, 3 }
   0xe   : > { %634 = vmatpush.bf16.msra.mxu1 %v1261_v1  ;;  %689 = vmatpush.bf16.msra.mxu2 %v1150_v2  ;;  %v1138_v6 = vld [vmem:[%s1430_s1 + $0x28] sm:$0xff]  ;;  %v1137_v11 = vld [vmem:[%s1430_s1 + $0x20] sm:$0xff]  ;;  %v1136_v13 = vld [vmem:[%s1430_s1 + $0x18] sm:$0xff]  ;;  %s1387_s12 = scalar_lea.vmem %s1432_s3, %s930_s10 }
   0xf   : > { %v1146_v7 = vld [vmem:[%s1430_s1 + $0x68] sm:$0xff]  ;;  %s1288_s9 = scalar_lea.vmem %s1429_s0, %s1167_s29  ;;  %v1145_v12 = vld [vmem:[%s1430_s1 + $0x60] sm:$0xff]  ;;  %v1144_v14 = vld [vmem:[%s1430_s1 + $0x58] sm:$0xff] }
  0x10   : > { %v941_v8 = vld [vmem:[%s1288_s9 + $0x8] sm:$0xf]  ;;  %v1111_v9 = vld [vmem:[%s1288_s9 + $0x10] sm:$0xf0]  ;;  %v953_v17 = vld [vmem:[%s1288_s9 + $0x20] sm:$0xf] }
  0x11   : > { %586 = vmatpush.bf16.msra.mxu0 %v1139_v3  ;;  %1152 = vmatpush.bf16.msra.mxu3 %v1139_v3  ;;  %v942_v10 = vor.u32 %v1111_v9, %v941_v8  ;;  %v1135_v15 = vld [vmem:[%s1430_s1 + $0x10] sm:$0xff]  ;;  %v1114_v18 = vld [vmem:[%s1288_s9 + $0x28] sm:$0xf0]  ;;  %v1133_v22 = vld [vmem:[%s1430_s1] sm:$0xff] }
  0x12   : > { %635 = vmatpush.bf16.msra.mxu1 %v1147_v4  ;;  %690 = vmatpush.bf16.msra.mxu2 %v1149_v5  ;;  %v1143_v16 = vld [vmem:[%s1430_s1 + $0x50] sm:$0xff]  ;;  %v1134_v19 = vld [vmem:[%s1430_s1 + $0x8] sm:$0xff]  ;;  %v954_v21 = vor.u32 %v1114_v18, %v953_v17  ;;  %v933_v23 = vld [vmem:[%s1288_s9] sm:$0xf] }
  0x13   : > { %v1142_v20 = vld [vmem:[%s1430_s1 + $0x48] sm:$0xff]  ;;  %v1005_v25 = vld [vmem:[%s1288_s9 + $0x90] sm:$0xf]  ;;  %v1128_v26 = vld [vmem:[%s1288_s9 + $0x98] sm:$0xf0] }
  0x14   : > { %v1110_v24 = vld [vmem:[%s1288_s9 + $0x8] sm:$0xf0]  ;;  %v1141_v27 = vld [vmem:[%s1430_s1 + $0x40] sm:$0xff]  ;;  %v935_v29 = vld [vmem:[%s1288_s9 + $0xc] sm:$0xf0]  ;;  %v1006_v31 = vor.u32 %v1128_v26, %v1005_v25 }
  0x15   : > { %587 = vmatpush.bf16.msra.mxu0 %v1138_v6  ;;  %1153 = vmatpush.bf16.msra.mxu3 %v1138_v6  ;;  %v1109_v28 = vld [vmem:[%s1288_s9 + $0x4] sm:$0xf]  ;;  %v934_v30 = vor.u32 %v1110_v24, %v933_v23  ;;  %v965_v33 = vld [vmem:[%s1288_s9 + $0x38] sm:$0xf]  ;;  %v1017_v38 = vld [vmem:[%s1288_s9 + $0xa8] sm:$0xf] }
  0x16   : > { %636 = vmatpush.bf16.msra.mxu1 %v1146_v7  ;;  %1099 = vmatmul.msk.bf16.vlgmr.msra.gmra.mxu2 %vm560_vm0, %v942_v10  ;;  %v938_v32 = vor.u32 %v1109_v28, %v935_v29  ;;  %v1117_v34 = vld [vmem:[%s1288_s9 + $0x40] sm:$0xf0]  ;;  %v945_v36 = vld [vmem:[%s1288_s9 + $0x18] sm:$0xf]  ;;  %v1131_v39 = vld [vmem:[%s1288_s9 + $0xb0] sm:$0xf0] }
  0x17   : > { %v966_v35 = vor.u32 %v1117_v34, %v965_v33  ;;  %v1113_v37 = vld [vmem:[%s1288_s9 + $0x20] sm:$0xf0]  ;;  %v1112_v40 = vld [vmem:[%s1288_s9 + $0x1c] sm:$0xf]  ;;  %v947_v41 = vld [vmem:[%s1288_s9 + $0x24] sm:$0xf0]  ;;  %v1018_v43 = vor.u32 %v1131_v39, %v1017_v38 }
  0x18   : > { %v946_v42 = vor.u32 %v1113_v37, %v945_v36  ;;  %v950_v44 = vor.u32 %v1112_v40, %v947_v41  ;;  %v977_v45 = vld [vmem:[%s1288_s9 + $0x50] sm:$0xf]  ;;  %v1120_v46 = vld [vmem:[%s1288_s9 + $0x58] sm:$0xf0]  ;;  %v1127_v50 = vld [vmem:[%s1288_s9 + $0x94] sm:$0xf] }
  0x19   : > { %588 = vmatpush.bf16.msra.mxu0 %v1137_v11  ;;  %1154 = vmatpush.bf16.msra.mxu3 %v1137_v11  ;;  %v978_v47 = vor.u32 %v1120_v46, %v977_v45  ;;  %v957_v48 = vld [vmem:[%s1288_s9 + $0x30] sm:$0xf]  ;;  %v1116_v49 = vld [vmem:[%s1288_s9 + $0x38] sm:$0xf0]  ;;  %v1007_v51 = vld [vmem:[%s1288_s9 + $0x9c] sm:$0xf0] }
  0x1a   : > { %637 = vmatpush.bf16.msra.mxu1 %v1145_v12  ;;  %v1115_v52 = vld [vmem:[%s1288_s9 + $0x34] sm:$0xf]  ;;  %v959_v53 = vld [vmem:[%s1288_s9 + $0x3c] sm:$0xf0]  ;;  %v958_v54 = vor.u32 %v1116_v49, %v957_v48  ;;  %v1010_v55 = vor.u32 %v1127_v50, %v1007_v51  ;;  %v989_v57 = vld [vmem:[%s1288_s9 + $0x68] sm:$0xf] }
  0x1b   : > { %v962_v56 = vor.u32 %v1115_v52, %v959_v53  ;;  %v1123_v58 = vld [vmem:[%s1288_s9 + $0x70] sm:$0xf0]  ;;  %v969_v60 = vld [vmem:[%s1288_s9 + $0x48] sm:$0xf]  ;;  %v1130_v62 = vld [vmem:[%s1288_s9 + $0xac] sm:$0xf] }
  0x1c   : > { %v990_v59 = vor.u32 %v1123_v58, %v989_v57  ;;  %v1119_v61 = vld [vmem:[%s1288_s9 + $0x50] sm:$0xf0]  ;;  %v1019_v63 = vld [vmem:[%s1288_s9 + $0xb4] sm:$0xf0]  ;;  %v1118_v0 = vld [vmem:[%s1288_s9 + $0x4c] sm:$0xf] }
  0x1d   : > { %589 = vmatpush.bf16.msra.mxu0 %v1136_v13  ;;  %1155 = vmatpush.bf16.msra.mxu3 %v1136_v13  ;;  %v970_v2 = vor.u32 %v1119_v61, %v969_v60  ;;  %v1022_v3 = vor.u32 %v1130_v62, %v1019_v63  ;;  %v1001_v5 = vld [vmem:[%s1288_s9 + $0x80] sm:$0xf]  ;;  %v1126_v6 = vld [vmem:[%s1288_s9 + $0x88] sm:$0xf0]  ;;  %v1121_v10 = vld [vmem:[%s1288_s9 + $0x64] sm:$0xf] }
  0x1e   : > { %638 = vmatpush.bf16.msra.mxu1 %v1144_v14  ;;  %v981_v8 = vld [vmem:[%s1288_s9 + $0x60] sm:$0xf]  ;;  %v1122_v9 = vld [vmem:[%s1288_s9 + $0x68] sm:$0xf0]  ;;  %v983_v11 = vld [vmem:[%s1288_s9 + $0x6c] sm:$0xf0] }
  0x1f   : > { %v986_v13 = vor.u32 %v1121_v10, %v983_v11  ;;  %v993_v17 = vld [vmem:[%s1288_s9 + $0x78] sm:$0xf]  ;;  %v1125_v18 = vld [vmem:[%s1288_s9 + $0x80] sm:$0xf0]  ;;  %v1025_v23 = vld [vmem:[%s1288_s9 + $0xb0] sm:$0xf] }
  0x20   : > { %v1132_v24 = vld [vmem:[%s1288_s9 + $0xb8] sm:$0xf0] }
  0x21   : > { %590 = vmatpush.bf16.msra.mxu0 %v1135_v15  ;;  %1156 = vmatpush.bf16.msra.mxu3 %v1135_v15  ;;  %v1129_v15 = vld [vmem:[%s1288_s9 + $0xa0] sm:$0xf0]  ;;  %v1026_v25 = vor.u32 %v1132_v24, %v1025_v23 }
  0x22   : > { %639 = vmatpush.bf16.msra.mxu1 %v1143_v16 }
  0x25   : > { %591 = vmatpush.bf16.msra.mxu0 %v1134_v19  ;;  %1157 = vmatpush.bf16.msra.mxu3 %v1134_v19  ;;  %v1124_v19 = vld [vmem:[%s1288_s9 + $0x7c] sm:$0xf] }
  0x26   : > { %640 = vmatpush.bf16.msra.mxu1 %v1142_v20  ;;  %1100 = vmatmul.msk.bf16.gmra.mxu2 %vm560_vm0, %v954_v21  ;;  %v994_v21 = vor.u32 %v1125_v18, %v993_v17 }
  0x29   : > { %592 = vmatpush.bf16.msra.mxu0 %v1133_v22  ;;  %1158 = vmatpush.bf16.msra.mxu3 %v1133_v22 }
  0x2a   : > { %641 = vmatpush.bf16.msra.mxu1 %v1141_v27 }
  0x2c   : > { %593 = vmatmul.bf16.vlgmr.msra.gmra.mxu0 %v934_v30  ;;  %623 = vmatmul.bf16.vlgmr.msra.gmra.mxu3 %v1006_v31 }
  0x2d   : > { %1159 = vmatpush.bf16.msrb.mxu3 %v1261_v1  ;;  %642 = vmatmul.bf16.vlgmr.msra.gmra.mxu1 %v938_v32  ;;  %v971_v1 = vld [vmem:[%s1288_s9 + $0x54] sm:$0xf0]  ;;  %v1380_v32 = vld [vmem:[%s1431_s2] ss:$0 sm:$0xff] }
  0x31   : > { %1160 = vmatpush.bf16.msrb.mxu3 %v1147_v4  ;;  %v974_v4 = vor.u32 %v1118_v0, %v971_v1 }
  0x35   : > { %1161 = vmatpush.bf16.msrb.mxu3 %v1146_v7  ;;  %v1002_v7 = vor.u32 %v1126_v6, %v1001_v5 }
  0x36   : > { %1101 = vmatmul.msk.bf16.gmra.mxu2 %vm560_vm0, %v966_v35 }
  0x39   : > { %1162 = vmatpush.bf16.msrb.mxu3 %v1145_v12  ;;  %v982_v12 = vor.u32 %v1122_v9, %v981_v8 }
  0x3c   : > { %598 = vmatmul.bf16.gmra.mxu0 %v946_v42  ;;  %628 = vmatmul.bf16.gmra.mxu3 %v1018_v43 }
  0x3d   : > { %1163 = vmatpush.bf16.msrb.mxu3 %v1144_v14  ;;  %647 = vmatmul.bf16.gmra.mxu1 %v950_v44  ;;  %v1013_v14 = vld [vmem:[%s1288_s9 + $0x98] sm:$0xf] }
  0x41   : > { %1164 = vmatpush.bf16.msrb.mxu3 %v1143_v16  ;;  %v1014_v16 = vor.u32 %v1129_v15, %v1013_v14 }
  0x45   : > { %1165 = vmatpush.bf16.msrb.mxu3 %v1142_v20  ;;  %v995_v20 = vld [vmem:[%s1288_s9 + $0x84] sm:$0xf0] }
  0x46   : > { %1102 = vmatmul.msk.bf16.gmra.mxu2 %vm560_vm0, %v978_v47  ;;  %v998_v22 = vor.u32 %v1124_v19, %v995_v20 }
  0x49   : > { %1166 = vmatpush.bf16.msrb.mxu3 %v1141_v27 }
  0x4c   : > { %603 = vmatmul.bf16.gmra.mxu0 %v958_v54  ;;  %672 = vmatmul.bf16.vlgmr.msrb.gmra.mxu3 %v1010_v55 }
  0x4d   : > { %652 = vmatmul.bf16.gmra.mxu1 %v962_v56 }
  0x56   : > { %1103 = vmatmul.msk.bf16.gmra.mxu2 %vm560_vm0, %v990_v59 }
  0x5c   : > { %608 = vmatmul.bf16.gmra.mxu0 %v970_v2  ;;  %677 = vmatmul.bf16.gmra.mxu3 %v1022_v3 }
  0x5d   : > { %657 = vmatmul.bf16.gmra.mxu1 %v974_v4 }
  0x66   : > { %1104 = vmatmul.msk.bf16.gmra.mxu2 %vm560_vm0, %v1002_v7 }
  0x6c   : > { %613 = vmatmul.bf16.gmra.mxu0 %v982_v12 }
  0x6d   : > { %662 = vmatmul.bf16.gmra.mxu1 %v986_v13 }
  0x76   : > { %1105 = vmatmul.msk.bf16.gmra.mxu2 %vm560_vm0, %v1014_v16 }
  0x7c   : > { %618 = vmatmul.bf16.gmra.mxu0 %v994_v21 }
  0x7d   : > { %667 = vmatmul.bf16.gmra.mxu1 %v998_v22 }
  0x86   : > { %1106 = vmatmul.msk.bf16.gmra.mxu2 %vm560_vm0, %v1026_v25 }
  0x99   : > { %v692_v26 = vpop.f32.mrf.mxu2 }
  0xa1   : > { %v694_v27 = vpop.f32.mrf.mxu2 }
  0xa9   : > { %v697_v28 = vpop.f32.mrf.mxu2  ;;  %v594_v29 = vpop.f32.mrf.mxu0 }
  0xaa   : > { %v643_v30 = vpop.f32.mrf.mxu1 }
  0xab   : > { %v644_v31 = vadd.f32 %v643_v30, %v594_v29 }
  0xad   : > { %v693_v33 = vadd.f32 %v692_v26, %v644_v31 }
  0xaf   : > { %v787_v34 = vadd.f32 %v1380_v32, %v693_v33  ;;  %v624_v55 = vpop.f32.mrf.mxu3 }
  0xb1   : > { %v803_v35 = vmax.f32 %v787_v34, 0.0  ;;  %v699_v36 = vpop.f32.mrf.mxu2  ;;  %v596_v37 = vpop.f32.mrf.mxu0 }
  0xb2   : > { %v645_v38 = vpop.f32.mrf.mxu1 }
  0xb3   : > { %819 = vst [vmem:[%s1387_s12] sm:$0xff] %v803_v35  ;;  %v646_v39 = vadd.f32 %v645_v38, %v596_v37 }
  0xb5   : > { %v695_v40 = vadd.f32 %v694_v27, %v646_v39 }
  0xb7   : > { %v788_v41 = vadd.f32 %v1380_v32, %v695_v40  ;;  %v626_v0 = vpop.f32.mrf.mxu3 }
  0xb9   : > { %v804_v42 = vmax.f32 %v788_v41, 0.0  ;;  %v702_v43 = vpop.f32.mrf.mxu2  ;;  %v599_v44 = vpop.f32.mrf.mxu0 }
  0xba   : > { %v648_v45 = vpop.f32.mrf.mxu1 }
  0xbb   : > { %820 = vst [vmem:[%s1387_s12 + $0x8] sm:$0xff] %v804_v42  ;;  %v649_v46 = vadd.f32 %v648_v45, %v599_v44 }
  0xbd   : > { %v698_v47 = vadd.f32 %v697_v28, %v649_v46 }
  0xbf   : > { %v789_v48 = vadd.f32 %v1380_v32, %v698_v47  ;;  %v629_v11 = vpop.f32.mrf.mxu3 }
  0xc1   : > { %v805_v49 = vmax.f32 %v789_v48, 0.0  ;;  %v704_v50 = vpop.f32.mrf.mxu2  ;;  %v601_v51 = vpop.f32.mrf.mxu0 }
  0xc2   : > { %v650_v52 = vpop.f32.mrf.mxu1 }
  0xc3   : > { %821 = vst [vmem:[%s1387_s12 + $0x10] sm:$0xff] %v805_v49  ;;  %v651_v53 = vadd.f32 %v650_v52, %v601_v51 }
  0xc5   : > { %v700_v54 = vadd.f32 %v699_v36, %v651_v53 }
  0xc7   : > { %v790_v56 = vadd.f32 %v1380_v32, %v700_v54  ;;  %v631_v21 = vpop.f32.mrf.mxu3 }
  0xc9   : > { %v806_v57 = vmax.f32 %v790_v56, 0.0  ;;  %v707_v58 = vpop.f32.mrf.mxu2  ;;  %v604_v59 = vpop.f32.mrf.mxu0 }
  0xca   : > { %v653_v60 = vpop.f32.mrf.mxu1 }
  0xcb   : > { %822 = vst [vmem:[%s1387_s12 + $0x18] sm:$0xff] %v806_v57  ;;  %v654_v61 = vadd.f32 %v653_v60, %v604_v59 }
  0xcd   : > { %v703_v62 = vadd.f32 %v702_v43, %v654_v61 }
  0xcf   : > { %v791_v63 = vadd.f32 %v1380_v32, %v703_v62  ;;  %v673_v30 = vpop.f32.mrf.mxu3 }
  0xd0   : > { %v674_v40 = vadd.f32 %v673_v30, %v624_v55 }
  0xd1   : > { %v807_v1 = vmax.f32 %v791_v63, 0.0  ;;  %v709_v2 = vpop.f32.mrf.mxu2  ;;  %v606_v3 = vpop.f32.mrf.mxu0 }
  0xd2   : > { %v655_v4 = vpop.f32.mrf.mxu1 }
  0xd3   : > { %823 = vst [vmem:[%s1387_s12 + $0x20] sm:$0xff] %v807_v1  ;;  %v656_v5 = vadd.f32 %v655_v4, %v606_v3 }
  0xd5   : > { %v705_v6 = vadd.f32 %v704_v50, %v656_v5 }
  0xd7   : > { %v792_v7 = vadd.f32 %v1380_v32, %v705_v6  ;;  %v675_v41 = vpop.f32.mrf.mxu3 }
  0xd8   : > { %v676_v52 = vadd.f32 %v675_v41, %v626_v0 }
  0xd9   : > { %v808_v8 = vmax.f32 %v792_v7, 0.0  ;;  %v712_v9 = vpop.f32.mrf.mxu2  ;;  %v609_v10 = vpop.f32.mrf.mxu0 }
  0xda   : > { %v658_v12 = vpop.f32.mrf.mxu1 }
  0xdb   : > { %824 = vst [vmem:[%s1387_s12 + $0x28] sm:$0xff] %v808_v8  ;;  %v659_v13 = vadd.f32 %v658_v12, %v609_v10 }
  0xdd   : > { %v708_v14 = vadd.f32 %v707_v58, %v659_v13 }
  0xdf   : > { %v793_v15 = vadd.f32 %v1380_v32, %v708_v14  ;;  %v678_v58 = vpop.f32.mrf.mxu3 }
  0xe0   : > { %v679_v1 = vadd.f32 %v678_v58, %v629_v11 }
  0xe1   : > { %v809_v16 = vmax.f32 %v793_v15, 0.0  ;;  %v714_v17 = vpop.f32.mrf.mxu2  ;;  %v611_v18 = vpop.f32.mrf.mxu0 }
  0xe2   : > { %v660_v19 = vpop.f32.mrf.mxu1 }
  0xe3   : > { %825 = vst [vmem:[%s1387_s12 + $0x30] sm:$0xff] %v809_v16  ;;  %v661_v20 = vadd.f32 %v660_v19, %v611_v18 }
  0xe5   : > { %v710_v22 = vadd.f32 %v709_v2, %v661_v20 }
  0xe7   : > { %v794_v23 = vadd.f32 %v1380_v32, %v710_v22  ;;  %v680_v5 = vpop.f32.mrf.mxu3 }
  0xe8   : > { %v681_v7 = vadd.f32 %v680_v5, %v631_v21 }
  0xe9   : > { %v810_v24 = vmax.f32 %v794_v23, 0.0  ;;  %v717_v25 = vpop.f32.mrf.mxu2  ;;  %v614_v26 = vpop.f32.mrf.mxu0 }
  0xea   : > { %v663_v27 = vpop.f32.mrf.mxu1 }
  0xeb   : > { %826 = vst [vmem:[%s1387_s12 + $0x38] sm:$0xff] %v810_v24  ;;  %v664_v28 = vadd.f32 %v663_v27, %v614_v26 }
  0xed   : > { %v713_v29 = vadd.f32 %v712_v9, %v664_v28 }
  0xef   : > { %v795_v31 = vadd.f32 %v1380_v32, %v713_v29 }
  0xf1   : > { %v811_v33 = vmax.f32 %v795_v31, 0.0  ;;  %v719_v34 = vpop.f32.mrf.mxu2  ;;  %v616_v35 = vpop.f32.mrf.mxu0 }
  0xf2   : > { %v665_v36 = vpop.f32.mrf.mxu1 }
  0xf3   : > { %827 = vst [vmem:[%s1387_s12 + $0x40] sm:$0xff] %v811_v33  ;;  %v666_v37 = vadd.f32 %v665_v36, %v616_v35 }
  0xf5   : > { %v715_v38 = vadd.f32 %v714_v17, %v666_v37 }
  0xf7   : > { %v796_v39 = vadd.f32 %v1380_v32, %v715_v38 }
  0xf9   : > { %v812_v42 = vmax.f32 %v796_v39, 0.0  ;;  %v722_v43 = vpop.f32.mrf.mxu2  ;;  %v619_v44 = vpop.f32.mrf.mxu0 }
  0xfa   : > { %v723_v45 = vadd.f32 %v722_v43, %v674_v40  ;;  %v668_v46 = vpop.f32.mrf.mxu1 }
  0xfb   : > { %828 = vst [vmem:[%s1387_s12 + $0x48] sm:$0xff] %v812_v42  ;;  %v669_v47 = vadd.f32 %v668_v46, %v619_v44 }
  0xfc   : > { %v799_v48 = vadd.f32 %v1380_v32, %v723_v45 }
  0xfd   : > { %v718_v49 = vadd.f32 %v717_v25, %v669_v47 }
  0xfe   : > { %v815_v50 = vmax.f32 %v799_v48, 0.0 }
  0xff   : > { %v797_v51 = vadd.f32 %v1380_v32, %v718_v49 }
 0x100   : > { %831 = vst [vmem:[%s1387_s12 + $0x60] sm:$0xff] %v815_v50 }
 0x101   : > { %v813_v53 = vmax.f32 %v797_v51, 0.0  ;;  %v724_v54 = vpop.f32.mrf.mxu2  ;;  %v621_v55 = vpop.f32.mrf.mxu0 }
 0x102   : > { %v725_v56 = vadd.f32 %v724_v54, %v676_v52  ;;  %v670_v57 = vpop.f32.mrf.mxu1 }
 0x103   : > { %829 = vst [vmem:[%s1387_s12 + $0x50] sm:$0xff] %v813_v53  ;;  %v671_v59 = vadd.f32 %v670_v57, %v621_v55 }
 0x104   : > { %v800_v60 = vadd.f32 %v1380_v32, %v725_v56 }
 0x105   : > { %v720_v61 = vadd.f32 %v719_v34, %v671_v59 }
 0x106   : > { %v816_v62 = vmax.f32 %v800_v60, 0.0 }
 0x107   : > { %v798_v63 = vadd.f32 %v1380_v32, %v720_v61 }
 0x108   : > { %832 = vst [vmem:[%s1387_s12 + $0x68] sm:$0xff] %v816_v62 }
 0x109   : > { %v814_v0 = vmax.f32 %v798_v63, 0.0  ;;  %v727_v2 = vpop.f32.mrf.mxu2 }
 0x10a   : > { %v728_v3 = vadd.f32 %v727_v2, %v679_v1 }
 0x10b   : > { %830 = vst [vmem:[%s1387_s12 + $0x58] sm:$0xff] %v814_v0 }
 0x10c   : > { %v801_v4 = vadd.f32 %v1380_v32, %v728_v3 }
 0x10e   : > { %v817_v6 = vmax.f32 %v801_v4, 0.0 }
 0x110   : > { %833 = vst [vmem:[%s1387_s12 + $0x70] sm:$0xff] %v817_v6 }
 0x111   : > { %v729_v8 = vpop.f32.mrf.mxu2 }
 0x112   : > { %v730_v9 = vadd.f32 %v729_v8, %v681_v7 }
 0x114   : > { %v802_v10 = vadd.f32 %v1380_v32, %v730_v9 }
 0x116   : > { %v818_v12 = vmax.f32 %v802_v10, 0.0 }
 0x118   : > { %834 = vst [vmem:[%s1387_s12 + $0x78] sm:$0xff] %v818_v12 }
 0x119 PF: > { %s13_s14 = sadd.s32 1, %s1215_s14   ;;  %s1433_s12 = smov %s1211_s13 }
 0x11a   : > { %p10_p5 = scmp.ge.s32.totalorder %s13_s14, 6   ;;  %s1434_s13 = smov %s1436_s15 }
 0x11c   :  { %12 = sbr.rel (!%p10_p5) target bundleno = 2 (0x2), region = 73 }

// kernel: _lambda_.6
= control target key start
LH: loop header
LB: loop body
LE: loop exit
PB: predicated region body
PF: predicated region fallthrough
CT: control target
= control target key end

     0   :  { %s717_s12 = smov 0   ;;  %s719_s13 = smov 0   ;;  %s785_s0 = inlined_call_operand.vmem [shape: bf16[512,32], index: 0, kind: input, shape index: {}]   ;;  %s786_s1 = inlined_call_operand.vmem [shape: bf16[32,128], index: 1, kind: input, shape index: {}]   ;;  %s787_s2 = inlined_call_operand.vmem [shape: f32[1,128], index: 2, kind: input, shape index: {}]   ;;  %s788_s3 = inlined_call_operand.vmem [shape: f32[512,128], index: 3, kind: output, shape index: {}]  }
   0x1   :  { %s721_s14 = smov 0  }
   0x2 LB: > { %s25_s15 = sadd.s32 1, %s691_s13  ;;  %p577_p0 = scmp.ge.s32.totalorder %s695_s14, 1  ;;  %s695_s14 = sphi %s721_s14, %s13_s14   ;;  %s691_s13 = sphi %s719_s13, %s790_s13   ;;  %s687_s12 = sphi %s717_s12, %s789_s12  }
   0x3   : > { %p27_p1 = scmp.ge.s32.totalorder %s25_s15, 4  ;;  %p166_p2 = scmp.lt.s32.totalorder %s695_s14, 5 }
   0x5   : > { %s792_s15 = smov (%p27_p1, %s25_s15), 0  ;;  %p167_p3 = pnand %p577_p0, %p166_p2 }
   0x6   : > { %s578_s18 = sshll.u32 (!%p167_p3), %s687_s12, 4 }
   0x7   : > { %170 = sbr.rel (%p167_p3) target bundleno = 181 (0xb5), region = 32  ;;  %p199_p4 = scmp.lt.s32.totalorder (!%p167_p3), %s578_s18, 63 }
   0xc   : > { %v641_v0 = vld [vmem:[%s786_s1 + $0x8] sm:$0xff]  ;;  %v640_v1 = vld [vmem:[%s786_s1] sm:$0xff]  ;;  %s794_s18 = smov (!%p199_p4, %s578_s18), 63  ;;  %vm328_vm0 = vcmask 261120  }
   0xd   : > { %359 = vmatpush.bf16.msra.mxu0 %v641_v0  ;;  %642 = vmatpush.bf16.msra.mxu1 %v641_v0  ;;  %s579_s21 = sshll.u32 %s794_s18, 2  ;;  %s581_s25 = sshll.u32 %s794_s18, 3  ;;  %v672_v10 = vld [vmem:[%s787_s2] ss:$0 sm:$0xff] }
   0xe   : > { %643 = vmatpush.bf16.msra.mxu2 %v641_v0  ;;  %644 = vmatpush.bf16.msra.mxu3 %v641_v0  ;;  %s205_s24 = scalar_lea.vmem %s785_s0, %s579_s21  ;;  %s758_s30 = scalar_lea.vmem %s788_s3, %s581_s25 }
   0xf   : > { %v632_v2 = vld [vmem:[%s205_s24] sm:$0xff]  ;;  %v634_v3 = vld [vmem:[%s205_s24 + $0x10] sm:$0xff]  ;;  %v633_v6 = vld [vmem:[%s205_s24 + $0x8] sm:$0xff] }
  0x10   : > { %v636_v4 = vld [vmem:[%s205_s24 + $0x20] sm:$0xff]  ;;  %v638_v5 = vld [vmem:[%s205_s24 + $0x30] sm:$0xff]  ;;  %v635_v7 = vld [vmem:[%s205_s24 + $0x18] sm:$0xff] }
  0x11   : > { %360 = vmatpush.bf16.msra.mxu0 %v640_v1  ;;  %645 = vmatpush.bf16.msra.mxu1 %v640_v1  ;;  %v637_v8 = vld [vmem:[%s205_s24 + $0x28] sm:$0xff]  ;;  %v639_v9 = vld [vmem:[%s205_s24 + $0x38] sm:$0xff] }
  0x12   : > { %646 = vmatpush.bf16.msra.mxu2 %v640_v1  ;;  %647 = vmatpush.bf16.msra.mxu3 %v640_v1 }
  0x14   : > { %622 = vmatmul.msk.bf16.vlgmr.msra.gmra.mxu0 %vm328_vm0, %v632_v2  ;;  %624 = vmatmul.msk.bf16.vlgmr.msra.gmra.mxu1 %vm328_vm0, %v634_v3 }
  0x15   : > { %626 = vmatmul.msk.bf16.vlgmr.msra.gmra.mxu2 %vm328_vm0, %v636_v4  ;;  %628 = vmatmul.msk.bf16.vlgmr.msra.gmra.mxu3 %vm328_vm0, %v638_v5 }
  0x24   : > { %623 = vmatmul.msk.bf16.gmra.mxu0 %vm328_vm0, %v633_v6  ;;  %625 = vmatmul.msk.bf16.gmra.mxu1 %vm328_vm0, %v635_v7 }
  0x25   : > { %627 = vmatmul.msk.bf16.gmra.mxu2 %vm328_vm0, %v637_v8  ;;  %629 = vmatmul.msk.bf16.gmra.mxu3 %vm328_vm0, %v639_v9 }
  0x91   : > { %v362_v11 = vpop.f32.mrf.mxu0  ;;  %v372_v12 = vpop.f32.mrf.mxu1 }
  0x92   : > { %v457_v13 = vadd.f32 %v672_v10, %v362_v11  ;;  %v461_v14 = vadd.f32 %v672_v10, %v372_v12 }
  0x94   : > { %473 = vst [vmem:[%s758_s30] sm:$0xff] %v457_v13 }
  0x95   : > { %477 = vst [vmem:[%s758_s30 + $0x20] sm:$0xff] %v461_v14 }
  0x98   : > { %v382_v15 = vpop.f32.mrf.mxu2  ;;  %v392_v16 = vpop.f32.mrf.mxu3 }
  0x99   : > { %v465_v17 = vadd.f32 %v672_v10, %v382_v15  ;;  %v469_v18 = vadd.f32 %v672_v10, %v392_v16  ;;  %v364_v19 = vpop.f32.mrf.mxu0  ;;  %v374_v20 = vpop.f32.mrf.mxu1 }
  0x9a   : > { %v458_v21 = vadd.f32 %v672_v10, %v364_v19  ;;  %v462_v22 = vadd.f32 %v672_v10, %v374_v20 }
  0x9b   : > { %481 = vst [vmem:[%s758_s30 + $0x40] sm:$0xff] %v465_v17 }
  0x9c   : > { %485 = vst [vmem:[%s758_s30 + $0x60] sm:$0xff] %v469_v18 }
  0x9d   : > { %474 = vst [vmem:[%s758_s30 + $0x8] sm:$0xff] %v458_v21 }
  0x9e   : > { %478 = vst [vmem:[%s758_s30 + $0x28] sm:$0xff] %v462_v22 }
  0xa0   : > { %v384_v23 = vpop.f32.mrf.mxu2  ;;  %v394_v24 = vpop.f32.mrf.mxu3 }
  0xa1   : > { %v466_v25 = vadd.f32 %v672_v10, %v384_v23  ;;  %v470_v26 = vadd.f32 %v672_v10, %v394_v24  ;;  %v367_v27 = vpop.f32.mrf.mxu0  ;;  %v377_v28 = vpop.f32.mrf.mxu1 }
  0xa2   : > { %v459_v29 = vadd.f32 %v672_v10, %v367_v27  ;;  %v463_v30 = vadd.f32 %v672_v10, %v377_v28 }
  0xa3   : > { %482 = vst [vmem:[%s758_s30 + $0x48] sm:$0xff] %v466_v25 }
  0xa4   : > { %486 = vst [vmem:[%s758_s30 + $0x68] sm:$0xff] %v470_v26 }
  0xa5   : > { %475 = vst [vmem:[%s758_s30 + $0x10] sm:$0xff] %v459_v29 }
  0xa6   : > { %479 = vst [vmem:[%s758_s30 + $0x30] sm:$0xff] %v463_v30 }
  0xa8   : > { %v387_v31 = vpop.f32.mrf.mxu2  ;;  %v397_v32 = vpop.f32.mrf.mxu3 }
  0xa9   : > { %v467_v33 = vadd.f32 %v672_v10, %v387_v31  ;;  %v471_v34 = vadd.f32 %v672_v10, %v397_v32  ;;  %v369_v35 = vpop.f32.mrf.mxu0  ;;  %v379_v36 = vpop.f32.mrf.mxu1 }
  0xaa   : > { %v460_v37 = vadd.f32 %v672_v10, %v369_v35  ;;  %v464_v38 = vadd.f32 %v672_v10, %v379_v36 }
  0xab   : > { %483 = vst [vmem:[%s758_s30 + $0x50] sm:$0xff] %v467_v33 }
  0xac   : > { %487 = vst [vmem:[%s758_s30 + $0x70] sm:$0xff] %v471_v34 }
  0xad   : > { %476 = vst [vmem:[%s758_s30 + $0x18] sm:$0xff] %v460_v37 }
  0xae   : > { %480 = vst [vmem:[%s758_s30 + $0x38] sm:$0xff] %v464_v38 }
  0xb0   : > { %v389_v39 = vpop.f32.mrf.mxu2  ;;  %v399_v40 = vpop.f32.mrf.mxu3 }
  0xb1   : > { %v468_v41 = vadd.f32 %v672_v10, %v389_v39  ;;  %v472_v42 = vadd.f32 %v672_v10, %v399_v40 }
  0xb3   : > { %484 = vst [vmem:[%s758_s30 + $0x58] sm:$0xff] %v468_v41 }
  0xb4   : > { %488 = vst [vmem:[%s758_s30 + $0x78] sm:$0xff] %v472_v42 }
  0xb5 PF: > { %s13_s14 = sadd.s32 1, %s695_s14   ;;  %s789_s12 = smov %s691_s13 }
  0xb6   : > { %p10_p5 = scmp.ge.s32.totalorder %s13_s14, 6   ;;  %s790_s13 = smov %s792_s15 }
  0xb8   :  { %12 = sbr.rel (!%p10_p5) target bundleno = 2 (0x2), region = 73 }

// kernel: custom-call
= control target key start
LH: loop header
LB: loop body
LE: loop exit
PB: predicated region body
PF: predicated region fallthrough
CT: control target
= control target key end

     0   :  { %5 = vsyncpa [#allocation9], 0  ;;  %v2347_v0 = vmov 2147483648   ;;  %v2348_v1 = vmov 2147483647   ;;  %s3003_s0 = inlined_call_operand.vmem [shape: f32[2,2304], index: 0, kind: input, shape index: {}]   ;;  %s3004_s1 = inlined_call_operand.hbm [shape: f32[2,32], index: 1, kind: output, shape index: {0}]   ;;  %s3005_s2 = inlined_call_operand.vmem [shape: s32[2,32], index: 2, kind: output, shape index: {1}]  }
   0x1   :  { %7 = vst [vmem:[#allocation12 + $0x10] sm:$0xff] %v2347_v0 }
   0x2   :  { %9 = vst [vmem:[#allocation12] sm:$0xff] %v2347_v0 }
   0x3   :  { %11 = vst [vmem:[#allocation12 + $0x18] sm:$0xff] %v2347_v0 }
   0x4   :  { %13 = vst [vmem:[#allocation12 + $0x8] sm:$0xff] %v2347_v0 }
   0x5   :  { %14 = vst [vmem:[#allocation14] sm:$0xff] %v2348_v1 }
   0x6   :  { %16 = vst [vmem:[#allocation14 + $0x18] sm:$0xff] %v2348_v1 }
   0x7   :  { %18 = vst [vmem:[#allocation14 + $0x8] sm:$0xff] %v2348_v1 }
   0x8   :  { %20 = vst [vmem:[#allocation14 + $0x10] sm:$0xff] %v2348_v1 }
   0x9   :  { %v39_v2 = vld [vmem:[%s3003_s0] sm:$0xff]  ;;  %v62_v3 = vlaneseq  ;;  %v41_v4 = vld [vmem:[%s3003_s0 + $0x8] sm:$0xff]  ;;  %v43_v6 = vld [vmem:[%s3003_s0 + $0x10] sm:$0xff]  ;;  %v2349_v10 = vmov 2147483648   ;;  %v2350_v17 = vmov 2147483647  }
   0xa   :  { %v2281_v5 = vld [vmem:[%s3003_s0 + $0x20] sm:$0xf]  ;;  %v45_v7 = vld [vmem:[%s3003_s0 + $0x18] sm:$0xff]  ;;  %v73_v9 = vsub.s32 2147483647, %v39_v2  ;;  %139 = vst [vmem:[#allocation13] sm:$0xff] %v2349_v10 }
   0xb   :  { %58 = vst [vmem:[#allocation16 + $0x20] sm:$0xf] %v2281_v5  ;;  %v2388_v8 = vshrl.u32 %v62_v3, 7  ;;  %v63_v11 = vand.u32 127, %v62_v3  ;;  %v82_v13 = vsub.s32 2147483647, %v41_v4 }
   0xc   :  { %141 = vst [vmem:[#allocation13 + $0x8] sm:$0xff] %v2349_v10  ;;  %vm72_vm0 = vcmp.lt.s32.totalorder %v39_v2, 0  ;;  %v91_v14 = vsub.s32 2147483647, %v43_v6  ;;  %v100_v15 = vsub.s32 2147483647, %v45_v7 }
   0xd   :  { %v66_v12 = vshrl.u32 %v2388_v8, 1  ;;  %143 = vst [vmem:[#allocation13 + $0x10] sm:$0xff] %v2349_v10  ;;  %vm81_vm1 = vcmp.lt.s32.totalorder %v41_v4, 0  ;;  %vm90_vm2 = vcmp.lt.s32.totalorder %v43_v6, 0  ;;  %vm99_vm3 = vcmp.lt.s32.totalorder %v45_v7, 0  ;;  %s2392_s0 = smov 0  }
   0xe   :  { %145 = vst [vmem:[#allocation13 + $0x18] sm:$0xff] %v2349_v10  ;;  %v74_v19 = vsel %vm72_vm0, %v73_v9, %v39_v2  ;;  %v83_v20 = vsel %vm81_vm1, %v82_v13, %v41_v4  ;;  %v92_v21 = vsel %vm90_vm2, %v91_v14, %v43_v6  ;;  %v101_v22 = vsel %vm99_vm3, %v100_v15, %v45_v7 }
   0xf   :  { %v68_v16 = vmul.u32 128, %v66_v12  ;;  %146 = vst [vmem:[#allocation15] sm:$0xff] %v2350_v17 }
  0x10   :  { %148 = vst [vmem:[#allocation15 + $0x8] sm:$0xff] %v2350_v17 }
  0x11   :  { %v69_v18 = vadd.s32 %v68_v16, %v63_v11  ;;  %150 = vst [vmem:[#allocation15 + $0x10] sm:$0xff] %v2350_v17 }
  0x12   :  { %v107_v23 = vld [vmem:[#allocation16 + $0x20] sm:$0xff]  ;;  %152 = vst [vmem:[#allocation15 + $0x18] sm:$0xff] %v2350_v17 }
  0x13   :  { %vm76_vm4 = vcmp.lt.s32.totalorder %v69_v18, 2304  ;;  %v84_v24 = vadd.s32 512, %v69_v18  ;;  %v93_v25 = vadd.s32 1024, %v69_v18  ;;  %v102_v26 = vadd.s32 1536, %v69_v18  ;;  %125 = vst [vmem:[#allocation17] sm:$0xff] %v69_v18 }
  0x14   :  { %v77_v27 = vsel %vm76_vm4, %v74_v19, 2147483648  ;;  %vm108_vm5 = vcmp.lt.s32.totalorder %v107_v23, 0  ;;  %v109_v28 = vsub.s32 2147483647, %v107_v23  ;;  %v111_v29 = vadd.s32 2048, %v69_v18 }
  0x15   :  { %78 = vst [vmem:[#allocation16] sm:$0xff] %v77_v27  ;;  %vm85_vm6 = vcmp.lt.s32.totalorder %v84_v24, 2304  ;;  %vm94_vm7 = vcmp.lt.s32.totalorder %v93_v25, 2304  ;;  %vm103_vm8 = vcmp.lt.s32.totalorder %v102_v26, 2304 }
  0x16   :  { %v86_v30 = vsel %vm85_vm6, %v83_v20, 2147483648  ;;  %v95_v31 = vsel %vm94_vm7, %v92_v21, 2147483648  ;;  %v104_v32 = vsel %vm103_vm8, %v101_v22, 2147483648  ;;  %v110_v33 = vsel %vm108_vm5, %v109_v28, %v107_v23  ;;  %128 = vst [vmem:[#allocation17 + $0x8] sm:$0xff] %v84_v24 }
  0x17   :  { %87 = vst [vmem:[#allocation16 + $0x8] sm:$0xff] %v86_v30  ;;  %vm112_vm9 = vcmp.lt.s32.totalorder %v111_v29, 2304 }
  0x18   :  { %96 = vst [vmem:[#allocation16 + $0x10] sm:$0xff] %v95_v31  ;;  %v113_v34 = vsel %vm112_vm9, %v110_v33, 2147483648 }
  0x19   :  { %105 = vst [vmem:[#allocation16 + $0x18] sm:$0xff] %v104_v32 }
  0x1a   :  { %114 = vst [vmem:[#allocation16 + $0x20] sm:$0xff] %v113_v34 }
  0x1b   :  { %131 = vst [vmem:[#allocation17 + $0x10] sm:$0xff] %v93_v25 }
  0x1c   :  { %134 = vst [vmem:[#allocation17 + $0x18] sm:$0xff] %v102_v26 }
  0x1d   :  { %137 = vst [vmem:[#allocation17 + $0x20] sm:$0xff] %v111_v29 }
  0x1e LB: > { %v160_v35 = vld [vmem:[#allocation16] sm:$0xff]  ;;  %v161_v36 = vld [vmem:[#allocation17] sm:$0xff]  ;;  %v166_v38 = vld [vmem:[#allocation17 + $0x8] sm:$0xff]  ;;  %s525_s19 = scalar_lea.vmem [#allocation13], %s2345_s0  ;;  %s527_s20 = scalar_lea.vmem [#allocation15], %s2345_s0  ;;  %s2345_s0 = sphi %s2392_s0, %s159_s0  }
  0x1f   : > { %v164_v37 = vld [vmem:[#allocation16 + $0x8] sm:$0xff]  ;;  %vm170_vm12 = vcmp.lt.s32.totalorder %v166_v38, %v161_v36  ;;  %v177_v39 = vld [vmem:[#allocation16 + $0x10] sm:$0xff]  ;;  %s159_s0 = sadd.s32 1, %s2345_s0  }
  0x20   : > { %vm168_vm10 = vcmp.gt.s32.totalorder %v164_v37, %v160_v35  ;;  %vm169_vm11 = vcmp.eq.s32.totalorder %v164_v37, %v160_v35  ;;  %v190_v43 = vld [vmem:[#allocation16 + $0x18] sm:$0xff]  ;;  %p156_p2 = scmp.ge.s32.totalorder %s159_s0, 32  }
  0x21   : > { %vm171_vm13 = vmand %vm169_vm11, %vm170_vm12  ;;  %v203_v47 = vld [vmem:[#allocation16 + $0x20] sm:$0xff]  ;;  %s2356_s0 = smov (%p156_p2), [#allocation8]  }
  0x22   : > { %v179_v40 = vld [vmem:[#allocation17 + $0x10] sm:$0xff]  ;;  %vm172_vm14 = vmor %vm168_vm10, %vm171_vm13 }
  0x23   : > { %v173_v41 = vsel %vm172_vm14, %v164_v37, %v160_v35  ;;  %v174_v42 = vsel %vm172_vm14, %v166_v38, %v161_v36  ;;  %v192_v44 = vld [vmem:[#allocation17 + $0x18] sm:$0xff] }
  0x24   : > { %vm181_vm15 = vcmp.gt.s32.totalorder %v177_v39, %v173_v41  ;;  %vm182_vm0 = vcmp.eq.s32.totalorder %v177_v39, %v173_v41  ;;  %vm183_vm1 = vcmp.lt.s32.totalorder %v179_v40, %v174_v42  ;;  %v205_v48 = vld [vmem:[#allocation17 + $0x20] sm:$0xff] }
  0x25   : > { %vm184_vm2 = vmand %vm182_vm0, %vm183_vm1 }
  0x26   : > { %vm185_vm3 = vmor %vm181_vm15, %vm184_vm2 }
  0x27   : > { %v186_v45 = vsel %vm185_vm3, %v177_v39, %v173_v41  ;;  %v187_v46 = vsel %vm185_vm3, %v179_v40, %v174_v42 }
  0x28   : > { %vm194_vm4 = vcmp.gt.s32.totalorder %v190_v43, %v186_v45  ;;  %vm195_vm5 = vcmp.eq.s32.totalorder %v190_v43, %v186_v45  ;;  %vm196_vm6 = vcmp.lt.s32.totalorder %v192_v44, %v187_v46 }
  0x29   : > { %vm197_vm7 = vmand %vm195_vm5, %vm196_vm6 }
  0x2a   : > { %vm198_vm8 = vmor %vm194_vm4, %vm197_vm7 }
  0x2b   : > { %v199_v49 = vsel %vm198_vm8, %v190_v43, %v186_v45  ;;  %v200_v50 = vsel %vm198_vm8, %v192_v44, %v187_v46 }
  0x2c   : > { %vm207_vm9 = vcmp.gt.s32.totalorder %v203_v47, %v199_v49  ;;  %vm208_vm10 = vcmp.eq.s32.totalorder %v203_v47, %v199_v49  ;;  %vm209_vm11 = vcmp.lt.s32.totalorder %v205_v48, %v200_v50 }
  0x2d   : > { %vm210_vm12 = vmand %vm208_vm10, %vm209_vm11 }
  0x2e   : > { %vm211_vm13 = vmor %vm207_vm9, %vm210_vm12 }
  0x2f   : > { %v212_v51 = vsel %vm211_vm13, %v203_v47, %v199_v49  ;;  %v213_v52 = vsel %vm211_vm13, %v205_v48, %v200_v50 }
  0x30   : > { %v215_v53 = vrot.slane %v212_v51, 2  ;;  %v216_v54 = vrot.slane %v213_v52, 2 }
  0x32   : > { %vm218_vm14 = vcmp.gt.s32.totalorder %v215_v53, %v212_v51  ;;  %vm219_vm15 = vcmp.eq.s32.totalorder %v215_v53, %v212_v51  ;;  %vm220_vm0 = vcmp.lt.s32.totalorder %v216_v54, %v213_v52 }
  0x33   : > { %vm221_vm1 = vmand %vm219_vm15, %vm220_vm0 }
  0x34   : > { %vm222_vm2 = vmor %vm218_vm14, %vm221_vm1 }
  0x35   : > { %v223_v55 = vsel %vm222_vm2, %v215_v53, %v212_v51  ;;  %v224_v56 = vsel %vm222_vm2, %v216_v54, %v213_v52 }
  0x36   : > { %v226_v57 = vrot.slane %v223_v55, 2  ;;  %v227_v58 = vrot.slane %v224_v56, 2 }
  0x38   : > { %vm229_vm3 = vcmp.gt.s32.totalorder %v226_v57, %v223_v55  ;;  %vm230_vm4 = vcmp.eq.s32.totalorder %v226_v57, %v223_v55  ;;  %vm231_vm5 = vcmp.lt.s32.totalorder %v227_v58, %v224_v56 }
  0x39   : > { %vm232_vm6 = vmand %vm230_vm4, %vm231_vm5 }
  0x3a   : > { %vm233_vm7 = vmor %vm229_vm3, %vm232_vm6 }
  0x3b   : > { %v234_v59 = vsel %vm233_vm7, %v226_v57, %v223_v55  ;;  %v235_v60 = vsel %vm233_vm7, %v227_v58, %v224_v56 }
  0x3c   : > { %v237_v61 = vrot.slane %v234_v59, 2  ;;  %v238_v62 = vrot.slane %v235_v60, 2 }
  0x3e   : > { %vm240_vm8 = vcmp.gt.s32.totalorder %v237_v61, %v234_v59  ;;  %vm241_vm9 = vcmp.eq.s32.totalorder %v237_v61, %v234_v59  ;;  %vm242_vm10 = vcmp.lt.s32.totalorder %v238_v62, %v235_v60 }
  0x3f   : > { %vm243_vm11 = vmand %vm241_vm9, %vm242_vm10 }
  0x40   : > { %vm244_vm12 = vmor %vm240_vm8, %vm243_vm11 }
  0x41   : > { %v246_v63 = vsel %vm244_vm12, %v238_v62, %v235_v60  ;;  %v245_v0 = vsel %vm244_vm12, %v237_v61, %v234_v59 }
  0x42   : > { %280 = vxpose.xlu1.b32.start [1/16] %v246_v63, 128  ;;  %248 = vxpose.xlu0.b32.start [1/16] %v245_v0, 128 }
  0x4a   : > { %281 = vxpose.xlu1.b32.cont [2/16] %v246_v63, 128  ;;  %249 = vxpose.xlu0.b32.cont [2/16] %v245_v0, 128 }
  0x52   : > { %282 = vxpose.xlu1.b32.cont [3/16] %v246_v63, 128  ;;  %250 = vxpose.xlu0.b32.cont [3/16] %v245_v0, 128 }
  0x5a   : > { %283 = vxpose.xlu1.b32.cont [4/16] %v246_v63, 128  ;;  %251 = vxpose.xlu0.b32.cont [4/16] %v245_v0, 128 }
  0x62   : > { %284 = vxpose.xlu1.b32.cont [5/16] %v246_v63, 128  ;;  %252 = vxpose.xlu0.b32.cont [5/16] %v245_v0, 128 }
  0x6a   : > { %285 = vxpose.xlu1.b32.cont [6/16] %v246_v63, 128  ;;  %253 = vxpose.xlu0.b32.cont [6/16] %v245_v0, 128 }
  0x72   : > { %286 = vxpose.xlu1.b32.cont [7/16] %v246_v63, 128  ;;  %254 = vxpose.xlu0.b32.cont [7/16] %v245_v0, 128 }
  0x7a   : > { %287 = vxpose.xlu1.b32.cont [8/16] %v246_v63, 128  ;;  %255 = vxpose.xlu0.b32.cont [8/16] %v245_v0, 128 }
  0x82   : > { %288 = vxpose.xlu1.b32.cont [9/16] %v246_v63, 128  ;;  %256 = vxpose.xlu0.b32.cont [9/16] %v245_v0, 128 }
  0x8a   : > { %289 = vxpose.xlu1.b32.cont [10/16] %v246_v63, 128  ;;  %257 = vxpose.xlu0.b32.cont [10/16] %v245_v0, 128 }
  0x92   : > { %290 = vxpose.xlu1.b32.cont [11/16] %v246_v63, 128  ;;  %258 = vxpose.xlu0.b32.cont [11/16] %v245_v0, 128 }
  0x9a   : > { %291 = vxpose.xlu1.b32.cont [12/16] %v246_v63, 128  ;;  %259 = vxpose.xlu0.b32.cont [12/16] %v245_v0, 128 }
  0xa2   : > { %292 = vxpose.xlu1.b32.cont [13/16] %v246_v63, 128  ;;  %260 = vxpose.xlu0.b32.cont [13/16] %v245_v0, 128 }
  0xaa   : > { %293 = vxpose.xlu1.b32.cont [14/16] %v246_v63, 128  ;;  %261 = vxpose.xlu0.b32.cont [14/16] %v245_v0, 128 }
  0xb2   : > { %294 = vxpose.xlu1.b32.cont [15/16] %v246_v63, 128  ;;  %262 = vxpose.xlu0.b32.cont [15/16] %v245_v0, 128 }
  0xba   : > { %295 = vxpose.xlu1.b32.end [16/16] %v246_v63, 128  ;;  %263 = vxpose.xlu0.b32.end [16/16] %v245_v0, 128 }
  0xe6   : > { %v296_v1 = vpop.trf.xlu1  ;;  %v264_v2 = vpop.trf.xlu0 }
  0xee   : > { %v297_v4 = vpop.trf.xlu1  ;;  %v265_v5 = vpop.trf.xlu0 }
  0xef   : > { %vm316_vm13 = vcmp.lt.s32.totalorder %v297_v4, %v296_v1  ;;  %vm314_vm14 = vcmp.gt.s32.totalorder %v265_v5, %v264_v2  ;;  %vm315_vm15 = vcmp.eq.s32.totalorder %v265_v5, %v264_v2 }
  0xf0   : > { %vm317_vm0 = vmand %vm315_vm15, %vm316_vm13 }
  0xf1   : > { %vm318_vm1 = vmor %vm314_vm14, %vm317_vm0 }
  0xf2   : > { %v319_v6 = vsel %vm318_vm1, %v265_v5, %v264_v2  ;;  %v320_v7 = vsel %vm318_vm1, %v297_v4, %v296_v1 }
  0xf6   : > { %v298_v9 = vpop.trf.xlu1  ;;  %v266_v10 = vpop.trf.xlu0 }
  0xf7   : > { %vm325_vm2 = vcmp.lt.s32.totalorder %v298_v9, %v320_v7  ;;  %vm323_vm3 = vcmp.gt.s32.totalorder %v266_v10, %v319_v6  ;;  %vm324_vm4 = vcmp.eq.s32.totalorder %v266_v10, %v319_v6 }
  0xf8   : > { %vm326_vm5 = vmand %vm324_vm4, %vm325_vm2 }
  0xf9   : > { %vm327_vm6 = vmor %vm323_vm3, %vm326_vm5 }
  0xfa   : > { %v328_v11 = vsel %vm327_vm6, %v266_v10, %v319_v6  ;;  %v329_v12 = vsel %vm327_vm6, %v298_v9, %v320_v7 }
  0xfe   : > { %v299_v13 = vpop.trf.xlu1  ;;  %v267_v14 = vpop.trf.xlu0 }
  0xff   : > { %vm334_vm7 = vcmp.lt.s32.totalorder %v299_v13, %v329_v12  ;;  %vm332_vm8 = vcmp.gt.s32.totalorder %v267_v14, %v328_v11  ;;  %vm333_vm9 = vcmp.eq.s32.totalorder %v267_v14, %v328_v11 }
 0x100   : > { %vm335_vm10 = vmand %vm333_vm9, %vm334_vm7 }
 0x101   : > { %vm336_vm11 = vmor %vm332_vm8, %vm335_vm10 }
 0x102   : > { %v337_v15 = vsel %vm336_vm11, %v267_v14, %v328_v11  ;;  %v338_v16 = vsel %vm336_vm11, %v299_v13, %v329_v12 }
 0x106   : > { %v300_v17 = vpop.trf.xlu1  ;;  %v268_v18 = vpop.trf.xlu0 }
 0x107   : > { %vm343_vm12 = vcmp.lt.s32.totalorder %v300_v17, %v338_v16  ;;  %vm341_vm13 = vcmp.gt.s32.totalorder %v268_v18, %v337_v15  ;;  %vm342_vm14 = vcmp.eq.s32.totalorder %v268_v18, %v337_v15 }
 0x108   : > { %vm344_vm15 = vmand %vm342_vm14, %vm343_vm12 }
 0x109   : > { %vm345_vm0 = vmor %vm341_vm13, %vm344_vm15 }
 0x10a   : > { %v346_v19 = vsel %vm345_vm0, %v268_v18, %v337_v15  ;;  %v347_v20 = vsel %vm345_vm0, %v300_v17, %v338_v16 }
 0x10e   : > { %v301_v21 = vpop.trf.xlu1  ;;  %v269_v22 = vpop.trf.xlu0 }
 0x10f   : > { %vm352_vm1 = vcmp.lt.s32.totalorder %v301_v21, %v347_v20  ;;  %vm350_vm2 = vcmp.gt.s32.totalorder %v269_v22, %v346_v19  ;;  %vm351_vm3 = vcmp.eq.s32.totalorder %v269_v22, %v346_v19 }
 0x110   : > { %vm353_vm4 = vmand %vm351_vm3, %vm352_vm1 }
 0x111   : > { %vm354_vm5 = vmor %vm350_vm2, %vm353_vm4 }
 0x112   : > { %v355_v23 = vsel %vm354_vm5, %v269_v22, %v346_v19  ;;  %v356_v24 = vsel %vm354_vm5, %v301_v21, %v347_v20 }
 0x116   : > { %v302_v25 = vpop.trf.xlu1  ;;  %v270_v26 = vpop.trf.xlu0 }
 0x117   : > { %vm361_vm6 = vcmp.lt.s32.totalorder %v302_v25, %v356_v24  ;;  %vm359_vm7 = vcmp.gt.s32.totalorder %v270_v26, %v355_v23  ;;  %vm360_vm8 = vcmp.eq.s32.totalorder %v270_v26, %v355_v23 }
 0x118   : > { %vm362_vm9 = vmand %vm360_vm8, %vm361_vm6 }
 0x119   : > { %vm363_vm10 = vmor %vm359_vm7, %vm362_vm9 }
 0x11a   : > { %v364_v27 = vsel %vm363_vm10, %v270_v26, %v355_v23  ;;  %v365_v28 = vsel %vm363_vm10, %v302_v25, %v356_v24 }
 0x11e   : > { %v303_v29 = vpop.trf.xlu1  ;;  %v271_v30 = vpop.trf.xlu0 }
 0x11f   : > { %vm370_vm11 = vcmp.lt.s32.totalorder %v303_v29, %v365_v28  ;;  %vm368_vm12 = vcmp.gt.s32.totalorder %v271_v30, %v364_v27  ;;  %vm369_vm13 = vcmp.eq.s32.totalorder %v271_v30, %v364_v27 }
 0x120   : > { %vm371_vm14 = vmand %vm369_vm13, %vm370_vm11 }
 0x121   : > { %vm372_vm15 = vmor %vm368_vm12, %vm371_vm14 }
 0x122   : > { %v373_v31 = vsel %vm372_vm15, %v271_v30, %v364_v27  ;;  %v374_v32 = vsel %vm372_vm15, %v303_v29, %v365_v28 }
 0x126   : > { %v304_v33 = vpop.trf.xlu1  ;;  %v272_v34 = vpop.trf.xlu0 }
 0x127   : > { %vm379_vm0 = vcmp.lt.s32.totalorder %v304_v33, %v374_v32  ;;  %vm377_vm1 = vcmp.gt.s32.totalorder %v272_v34, %v373_v31  ;;  %vm378_vm2 = vcmp.eq.s32.totalorder %v272_v34, %v373_v31 }
 0x128   : > { %vm380_vm3 = vmand %vm378_vm2, %vm379_vm0 }
 0x129   : > { %vm381_vm4 = vmor %vm377_vm1, %vm380_vm3 }
 0x12a   : > { %v382_v35 = vsel %vm381_vm4, %v272_v34, %v373_v31  ;;  %v383_v36 = vsel %vm381_vm4, %v304_v33, %v374_v32  ;;  %v2351_v34 = vmov 2147483648  }
 0x12e   : > { %v305_v37 = vpop.trf.xlu1  ;;  %v273_v38 = vpop.trf.xlu0 }
 0x12f   : > { %vm388_vm5 = vcmp.lt.s32.totalorder %v305_v37, %v383_v36  ;;  %vm386_vm6 = vcmp.gt.s32.totalorder %v273_v38, %v382_v35  ;;  %vm387_vm7 = vcmp.eq.s32.totalorder %v273_v38, %v382_v35 }
 0x130   : > { %vm389_vm8 = vmand %vm387_vm7, %vm388_vm5 }
 0x131   : > { %vm390_vm9 = vmor %vm386_vm6, %vm389_vm8 }
 0x132   : > { %v391_v39 = vsel %vm390_vm9, %v273_v38, %v382_v35  ;;  %v392_v40 = vsel %vm390_vm9, %v305_v37, %v383_v36  ;;  %v2352_v35 = vmov 2147483647  }
 0x136   : > { %v306_v41 = vpop.trf.xlu1  ;;  %v274_v42 = vpop.trf.xlu0 }
 0x137   : > { %vm397_vm10 = vcmp.lt.s32.totalorder %v306_v41, %v392_v40  ;;  %vm395_vm11 = vcmp.gt.s32.totalorder %v274_v42, %v391_v39  ;;  %vm396_vm12 = vcmp.eq.s32.totalorder %v274_v42, %v391_v39 }
 0x138   : > { %vm398_vm13 = vmand %vm396_vm12, %vm397_vm10 }
 0x139   : > { %vm399_vm14 = vmor %vm395_vm11, %vm398_vm13 }
 0x13a   : > { %v400_v43 = vsel %vm399_vm14, %v274_v42, %v391_v39  ;;  %v401_v44 = vsel %vm399_vm14, %v306_v41, %v392_v40 }
 0x13e   : > { %v307_v45 = vpop.trf.xlu1  ;;  %v275_v46 = vpop.trf.xlu0 }
 0x13f   : > { %vm406_vm15 = vcmp.lt.s32.totalorder %v307_v45, %v401_v44  ;;  %vm404_vm0 = vcmp.gt.s32.totalorder %v275_v46, %v400_v43  ;;  %vm405_vm1 = vcmp.eq.s32.totalorder %v275_v46, %v400_v43 }
 0x140   : > { %vm407_vm2 = vmand %vm405_vm1, %vm406_vm15 }
 0x141   : > { %vm408_vm3 = vmor %vm404_vm0, %vm407_vm2 }
 0x142   : > { %v409_v47 = vsel %vm408_vm3, %v275_v46, %v400_v43  ;;  %v410_v48 = vsel %vm408_vm3, %v307_v45, %v401_v44  ;;  %v642_v44 = vld [vmem:[#allocation12 + $0x10] sm:$0xff] (%p156_p2)  ;;  %v643_v46 = vld [vmem:[#allocation14] sm:$0xff] (%p156_p2) }
 0x146   : > { %v308_v49 = vpop.trf.xlu1  ;;  %v276_v50 = vpop.trf.xlu0 }
 0x147   : > { %vm415_vm4 = vcmp.lt.s32.totalorder %v308_v49, %v410_v48  ;;  %vm413_vm5 = vcmp.gt.s32.totalorder %v276_v50, %v409_v47  ;;  %vm414_vm6 = vcmp.eq.s32.totalorder %v276_v50, %v409_v47 }
 0x148   : > { %vm416_vm7 = vmand %vm414_vm6, %vm415_vm4 }
 0x149   : > { %vm417_vm8 = vmor %vm413_vm5, %vm416_vm7 }
 0x14a   : > { %v418_v51 = vsel %vm417_vm8, %v276_v50, %v409_v47  ;;  %v419_v52 = vsel %vm417_vm8, %v308_v49, %v410_v48  ;;  %v2414_v47 = vld [vmem:[#allocation12] sm:$0xff] (%p156_p2)  ;;  %v2416_v48 = vld [vmem:[#allocation14 + $0x18] sm:$0xff] (%p156_p2)  ;;  %v2426_v50 = vld [vmem:[#allocation14 + $0x8] sm:$0xff] (%p156_p2) }
 0x14b   :  { %v2424_v49 = vld [vmem:[#allocation12 + $0x18] sm:$0xff] (%p156_p2) }
 0x14e   : > { %v309_v53 = vpop.trf.xlu1  ;;  %v277_v54 = vpop.trf.xlu0 }
 0x14f   : > { %vm424_vm9 = vcmp.lt.s32.totalorder %v309_v53, %v419_v52  ;;  %vm422_vm10 = vcmp.gt.s32.totalorder %v277_v54, %v418_v51  ;;  %vm423_vm11 = vcmp.eq.s32.totalorder %v277_v54, %v418_v51 }
 0x150   : > { %vm425_vm12 = vmand %vm423_vm11, %vm424_vm9 }
 0x151   : > { %vm426_vm13 = vmor %vm422_vm10, %vm425_vm12 }
 0x152   : > { %v427_v55 = vsel %vm426_vm13, %v277_v54, %v418_v51  ;;  %v428_v56 = vsel %vm426_vm13, %v309_v53, %v419_v52  ;;  %v2430_v51 = vld [vmem:[#allocation12 + $0x8] sm:$0xff] (%p156_p2)  ;;  %v2432_v52 = vld [vmem:[#allocation14 + $0x10] sm:$0xff] (%p156_p2) }
 0x156   : > { %v310_v57 = vpop.trf.xlu1  ;;  %v278_v58 = vpop.trf.xlu0 }
 0x157   : > { %vm433_vm14 = vcmp.lt.s32.totalorder %v310_v57, %v428_v56  ;;  %vm431_vm15 = vcmp.gt.s32.totalorder %v278_v58, %v427_v55  ;;  %vm432_vm0 = vcmp.eq.s32.totalorder %v278_v58, %v427_v55 }
 0x158   : > { %vm434_vm1 = vmand %vm432_vm0, %vm433_vm14 }
 0x159   : > { %vm435_vm2 = vmor %vm431_vm15, %vm434_vm1 }
 0x15a   : > { %v436_v59 = vsel %vm435_vm2, %v278_v58, %v427_v55  ;;  %v437_v60 = vsel %vm435_vm2, %v310_v57, %v428_v56 }
 0x15e   : > { %v311_v61 = vpop.trf.xlu1  ;;  %v279_v62 = vpop.trf.xlu0 }
 0x15f   : > { %vm442_vm3 = vcmp.lt.s32.totalorder %v311_v61, %v437_v60  ;;  %vm440_vm4 = vcmp.gt.s32.totalorder %v279_v62, %v436_v59  ;;  %vm441_vm5 = vcmp.eq.s32.totalorder %v279_v62, %v436_v59 }
 0x160   : > { %vm443_vm6 = vmand %vm441_vm5, %vm442_vm3 }
 0x161   : > { %vm444_vm7 = vmor %vm440_vm4, %vm443_vm6 }
 0x162   : > { %v445_v63 = vsel %vm444_vm7, %v279_v62, %v436_v59  ;;  %v446_v0 = vsel %vm444_vm7, %v311_v61, %v437_v60 }
 0x163   : > { %v448_v1 = vrot.slane %v445_v63, 1  ;;  %v449_v2 = vrot.slane %v446_v0, 1 }
 0x165   : > { %vm451_vm8 = vcmp.gt.s32.totalorder %v448_v1, %v445_v63  ;;  %vm452_vm9 = vcmp.eq.s32.totalorder %v448_v1, %v445_v63  ;;  %vm453_vm10 = vcmp.lt.s32.totalorder %v449_v2, %v446_v0 }
 0x166   : > { %vm454_vm11 = vmand %vm452_vm9, %vm453_vm10 }
 0x167   : > { %vm455_vm12 = vmor %vm451_vm8, %vm454_vm11 }
 0x168   : > { %v456_v4 = vsel %vm455_vm12, %v448_v1, %v445_v63  ;;  %v457_v5 = vsel %vm455_vm12, %v449_v2, %v446_v0  ;;  %v3026_v63 = vmov (%p156_p2), 0  ;;  %v2353_v2 = vmov (%p156_p2), 839939668  }
 0x169   : > { %v459_v6 = vrot.slane %v456_v4, 1  ;;  %v460_v7 = vrot.slane %v457_v5, 1 }
 0x16b   : > { %vm462_vm13 = vcmp.gt.s32.totalorder %v459_v6, %v456_v4  ;;  %vm463_vm14 = vcmp.eq.s32.totalorder %v459_v6, %v456_v4  ;;  %vm464_vm15 = vcmp.lt.s32.totalorder %v460_v7, %v457_v5 }
 0x16c   : > { %vm465_vm0 = vmand %vm463_vm14, %vm464_vm15 }
 0x16d   : > { %vm466_vm1 = vmor %vm462_vm13, %vm465_vm0 }
 0x16e   : > { %v467_v9 = vsel %vm466_vm1, %v459_v6, %v456_v4  ;;  %v468_v10 = vsel %vm466_vm1, %v460_v7, %v457_v5  ;;  %v825_v4 = vunpack.c.l.s4 (%p156_p2), %v2353_v2 }
 0x16f   : > { %v470_v11 = vrot.slane %v467_v9, 1  ;;  %v471_v12 = vrot.slane %v468_v10, 1 }
 0x171   : > { %vm475_vm2 = vcmp.lt.s32.totalorder %v471_v12, %v468_v10  ;;  %vm473_vm3 = vcmp.gt.s32.totalorder %v470_v11, %v467_v9  ;;  %vm474_vm4 = vcmp.eq.s32.totalorder %v470_v11, %v467_v9 }
 0x172   : > { %vm476_vm5 = vmand %vm474_vm4, %vm475_vm2 }
 0x173   : > { %vm477_vm6 = vmor %vm473_vm3, %vm476_vm5 }
 0x174   : > { %v478_v13 = vsel %vm477_vm6, %v470_v11, %v467_v9  ;;  %v479_v14 = vsel %vm477_vm6, %v471_v12, %v468_v10 }
 0x175   : > { %v481_v15 = vrot.slane %v478_v13, 1  ;;  %v482_v16 = vrot.slane %v479_v14, 1 }
 0x177   : > { %vm484_vm7 = vcmp.gt.s32.totalorder %v481_v15, %v478_v13  ;;  %vm485_vm8 = vcmp.eq.s32.totalorder %v481_v15, %v478_v13  ;;  %vm486_vm9 = vcmp.lt.s32.totalorder %v482_v16, %v479_v14 }
 0x178   : > { %vm487_vm10 = vmand %vm485_vm8, %vm486_vm9 }
 0x179   : > { %vm488_vm11 = vmor %vm484_vm7, %vm487_vm10 }
 0x17a   : > { %v489_v17 = vsel %vm488_vm11, %v481_v15, %v478_v13  ;;  %v490_v18 = vsel %vm488_vm11, %v482_v16, %v479_v14  ;;  %v2494_v14 = vunpack.c.0.s8 (%p156_p2), %v825_v4  ;;  %v840_v15 = vand.u32 (%p156_p2), 4, %v2388_v8 }
 0x17b   : > { %v492_v19 = vrot.slane %v489_v17, 1  ;;  %v493_v20 = vrot.slane %v490_v18, 1  ;;  %v2354_v16 = vmov (%p156_p2), 1417023538  }
 0x17d   : > { %vm495_vm12 = vcmp.gt.s32.totalorder %v492_v19, %v489_v17  ;;  %vm496_vm13 = vcmp.eq.s32.totalorder %v492_v19, %v489_v17  ;;  %vm497_vm14 = vcmp.lt.s32.totalorder %v493_v20, %v490_v18 }
 0x17e   : > { %vm498_vm15 = vmand %vm496_vm13, %vm497_vm14 }
 0x17f   : > { %vm499_vm0 = vmor %vm495_vm12, %vm498_vm15 }
 0x180   : > { %v500_v21 = vsel %vm499_vm0, %v492_v19, %v489_v17  ;;  %v501_v22 = vsel %vm499_vm0, %v493_v20, %v490_v18  ;;  %v847_v17 = vunpack.c.l.s4 (%p156_p2), %v2354_v16 }
 0x181   : > { %v503_v23 = vrot.slane %v500_v21, 1  ;;  %v504_v24 = vrot.slane %v501_v22, 1 }
 0x183   : > { %vm506_vm1 = vcmp.gt.s32.totalorder %v503_v23, %v500_v21  ;;  %vm507_vm2 = vcmp.eq.s32.totalorder %v503_v23, %v500_v21  ;;  %vm508_vm3 = vcmp.lt.s32.totalorder %v504_v24, %v501_v22 }
 0x184   : > { %vm509_vm4 = vmand %vm507_vm2, %vm508_vm3 }
 0x185   : > { %vm510_vm5 = vmor %vm506_vm1, %vm509_vm4 }
 0x186   : > { %v511_v25 = vsel %vm510_vm5, %v503_v23, %v500_v21  ;;  %v512_v26 = vsel %vm510_vm5, %v504_v24, %v501_v22 }
 0x187   : > { %v514_v27 = vrot.slane %v511_v25, 1  ;;  %v515_v28 = vrot.slane %v512_v26, 1 }
 0x189   : > { %vm517_vm6 = vcmp.gt.s32.totalorder %v514_v27, %v511_v25  ;;  %vm518_vm7 = vcmp.eq.s32.totalorder %v514_v27, %v511_v25  ;;  %vm519_vm8 = vcmp.lt.s32.totalorder %v515_v28, %v512_v26 }
 0x18a   : > { %vm520_vm9 = vmand %vm518_vm7, %vm519_vm8 }
 0x18b   : > { %vm521_vm10 = vmor %vm517_vm6, %vm520_vm9 }
 0x18c   : > { %v523_v29 = vsel %vm521_vm10, %v515_v28, %v512_v26  ;;  %v522_v30 = vsel %vm521_vm10, %v514_v27, %v511_v25  ;;  %v3028_v26 = vmov (%p156_p2), 0  ;;  %v3030_v27 = vmov (%p156_p2), 0 }
 0x18d   : > { %530 = vxpose.xlu2.b32.start.end [1/1] (short) (narrow) %v523_v29, 8  ;;  %526 = vst [vmem:[%s525_s19] sm:$0x1] %v522_v30  ;;  %v2530_v30 = vunpack.c.0.s8 (%p156_p2), %v847_v17  ;;  %s2194_s19 = sshll.u32 (%p156_p2), %s2356_s0, 4  ;;  %s2195_s19 = int_to_ptr.vmem [resolvable:$true] %s2194_s19 }
 0x18e   : > { %528 = vst [vmem:[%s527_s20] sm:$0x1] %v523_v29 }
 0x194   :  { %v614_v38 = vld [vmem:[#allocation13 + $0x1f] ss:$-1 sm:$0xff] (%p156_p2)  ;;  %v2404_v40 = vld [vmem:[#allocation13 + $0xf] ss:$-1 sm:$0xff] (%p156_p2)  ;;  %v2406_v41 = vld [vmem:[#allocation13 + $0x17] ss:$-1 sm:$0xff] (%p156_p2) }
 0x195   :  { %v621_v39 = vld [vmem:[#allocation15 + $0x1f] ss:$-1 sm:$0xff] (%p156_p2)  ;;  %v2408_v42 = vld [vmem:[#allocation15 + $0xf] ss:$-1 sm:$0xff] (%p156_p2)  ;;  %v2410_v43 = vld [vmem:[#allocation15 + $0x17] ss:$-1 sm:$0xff] (%p156_p2)  ;;  %vm648_vm13 = vcmp.gt.s32.totalorder (%p156_p2), %v642_v44, %v614_v38  ;;  %vm649_vm14 = vcmp.eq.s32.totalorder (%p156_p2), %v642_v44, %v614_v38  ;;  %vm673_vm0 = vcmp.eq.s32.totalorder (%p156_p2), %v2414_v47, %v2406_v41  ;;  %vm672_vm3 = vcmp.gt.s32.totalorder (%p156_p2), %v2414_v47, %v2406_v41 }
 0x196   :  { %v2412_v45 = vld [vmem:[#allocation13 + $0x7] ss:$-1 sm:$0xff] (%p156_p2)  ;;  %vm650_vm15 = vcmp.lt.s32.totalorder (%p156_p2), %v643_v46, %v621_v39  ;;  %vm674_vm1 = vcmp.lt.s32.totalorder (%p156_p2), %v2416_v48, %v2410_v43  ;;  %vm701_vm5 = vcmp.eq.s32.totalorder (%p156_p2), %v2424_v49, %v2404_v40  ;;  %vm702_vm6 = vcmp.lt.s32.totalorder (%p156_p2), %v2426_v50, %v2408_v42 }
 0x197   :  { %vm651_vm2 = vmand (%p156_p2), %vm649_vm14, %vm650_vm15  ;;  %vm700_vm8 = vcmp.gt.s32.totalorder (%p156_p2), %v2424_v49, %v2404_v40  ;;  %vm729_vm10 = vcmp.eq.s32.totalorder (%p156_p2), %v2430_v51, %v2412_v45 }
 0x198   :  { %vm652_vm4 = vmor (%p156_p2), %vm648_vm13, %vm651_vm2  ;;  %vm728_vm13 = vcmp.gt.s32.totalorder (%p156_p2), %v2430_v51, %v2412_v45 }
 0x199   :  { %v2438_v53 = vsel (%p156_p2), %vm652_vm4, %v614_v38, %v642_v44  ;;  %v2440_v54 = vsel (%p156_p2), %vm652_vm4, %v621_v39, %v643_v46  ;;  %vm675_vm7 = vmand (%p156_p2), %vm673_vm0, %vm674_vm1  ;;  %v653_v56 = vsel (%p156_p2), %vm652_vm4, %v642_v44, %v614_v38  ;;  %v657_v57 = vsel (%p156_p2), %vm652_vm4, %v643_v46, %v621_v39 }
 0x19a   :  { %vm2444_vm9 = vmor (%p156_p2), %vm672_vm3, %vm675_vm7 }
 0x19b   :  { %v678_v59 = vsel (%p156_p2), %vm2444_vm9, %v2414_v47, %v2406_v41  ;;  %v684_v60 = vsel (%p156_p2), %vm2444_vm9, %v2416_v48, %v2410_v43 }
 0x226   : > { %v546_v31 = vpop.trf.xlu2 }
 0x227   : > { %v585_v32 = vrot.slane %v546_v31, 1  ;;  %2290 = vpush %v546_v31 }
 0x229   : > { %2292 = vpush %v585_v32 }
 0x258   : > { %s2291_s21 = spop %2290 }
 0x259   : > { %s563_s22 = sshrl.u32 %s2291_s21, 9  ;;  %s565_s23 = ssub.s32 0, %s2291_s21 }
 0x25a   : > { %p564_p0 = scmp.lt.s32.totalorder %s2291_s21, 0  ;;  %s2282_s24 = smin.u32 %s2291_s21, %s565_s23 }
 0x25b   : > { %s567_s25 = sand.u32 511, %s2282_s24   ;;  %s2284_s26 = sshll.u32 %s563_s22, 3 }
 0x25c   : > { %s568_s27 = ssub.s32 0, %s567_s25  ;;  %s2293_s28 = spop %2292 }
 0x25d   : > { %s3085_s27 = smov (!%p564_p0, %s568_s27), %s567_s25  ;;  %s589_s4 = ssub.s32 0, %s2293_s28 }
 0x25e   : > { %s570_s29 = sshrl.u32 %s3085_s27, 7  ;;  %s572_s30 = sand.u32 127, %s3085_s27  }
 0x25f   : > { %s2283_s3 = sshll.u32 %s570_s29, 8  ;;  %s2286_s6 = smin.u32 %s2293_s28, %s589_s4 }
 0x260   : > { %s573_s5 = sadd.s32 %s2283_s3, %s572_s30  ;;  %p588_p1 = scmp.lt.s32.totalorder %s2293_s28, 0 }
 0x261   : > { %v575_v33 = vstv %s573_s5  ;;  %s591_s7 = sand.u32 511, %s2286_s6   ;;  %s579_s9 = scalar_lea.vmem [#allocation16], %s2284_s26 }
 0x262   : > { %vm577_vm11 = vcmp.eq.s32.totalorder %v62_v3, %v575_v33  ;;  %s592_s8 = ssub.s32 0, %s591_s7  ;;  %s582_s10 = scalar_lea.vmem [#allocation17], %s2284_s26  ;;  %v862_v33 = vand.u32 (%p156_p2), 2, %v2388_v8 }
 0x263   : > { %580 = vst.msk [vmem:[%s579_s9] sm:$0xff] %vm577_vm11, %v2351_v34  ;;  %s3087_s8 = smov (!%p588_p1, %s592_s8), %s591_s7  ;;  %s587_s11 = sshrl.u32 %s2293_s28, 9 }
 0x264   : > { %583 = vst.msk [vmem:[%s582_s10] sm:$0xff] %vm577_vm11, %v2352_v35  ;;  %s594_s12 = sshrl.u32 %s3087_s8, 7  ;;  %s596_s13 = sand.u32 127, %s3087_s8  }
 0x265   : > { %s2287_s14 = sshll.u32 %s594_s12, 8  ;;  %s2288_s16 = sshll.u32 %s587_s11, 3 }
 0x266   : > { %s597_s15 = sadd.s32 %s2287_s14, %s596_s13  ;;  %s603_s17 = scalar_lea.vmem [#allocation16], %s2288_s16 }
 0x267   : > { %v599_v36 = vstv %s597_s15  ;;  %s606_s18 = scalar_lea.vmem [#allocation17], %s2288_s16  ;;  %s2196_s22 = sshll.u32 (%p156_p2), %s3004_s1, 4  ;;  %s2197_s22 = int_to_ptr.hbm [resolvable:$true] %s2196_s22 }
 0x268   : > { %v600_v37 = vadd.s32 128, %v599_v36 }
 0x269   :  { %158 = sbr.rel (!%p156_p2) target bundleno = 30 (0x1e), region = 202 }
 0x26a   : > { %vm601_vm12 = vcmp.eq.s32.totalorder %v62_v3, %v600_v37  ;;  %v2418_v3 = vld [vmem:[#allocation15 + $0x7] ss:$-1 sm:$0xff] (%p156_p2) }
 0x26b   : > { %604 = vst.msk [vmem:[%s603_s17] sm:$0xff] %vm601_vm12, %v2351_v34  ;;  %vm730_vm11 = vcmp.lt.s32.totalorder (%p156_p2), %v2432_v52, %v2418_v3  ;;  %v2355_v34 = vmov (%p156_p2), 1732584193  }
 0x26c   : > { %607 = vst.msk [vmem:[%s606_s18] sm:$0xff] %vm601_vm12, %v2352_v35  ;;  %vm703_vm12 = vmand (%p156_p2), %vm701_vm5, %vm702_vm6  ;;  %v869_v35 = vunpack.c.l.s4 (%p156_p2), %v2355_v34  ;;  %v3044_v34 = vmov (%p156_p2), 0 }
 0x26d   :  { %vm2454_vm14 = vmor (%p156_p2), %vm700_vm8, %vm703_vm12 }
 0x26e   :  { %v706_v61 = vsel %vm2454_vm14, %v2424_v49, %v2404_v40  ;;  %v712_v62 = vsel %vm2454_vm14, %v2426_v50, %v2408_v42  ;;  %vm731_vm15 = vmand %vm729_vm10, %vm730_vm11  ;;  %v2545_v36 = vsel %vm2454_vm14, %v2404_v40, %v2424_v49  ;;  %v2551_v37 = vsel %vm2454_vm14, %v2408_v42, %v2426_v50 }
 0x26f   :  { %vm2474_vm0 = vmor %vm728_vm13, %vm731_vm15  ;;  %vm755_vm1 = vcmp.gt.s32.totalorder %v653_v56, %v706_v61  ;;  %vm756_vm2 = vcmp.eq.s32.totalorder %v653_v56, %v706_v61  ;;  %vm757_vm3 = vcmp.lt.s32.totalorder %v657_v57, %v712_v62  ;;  %v3032_v42 = vmov 0 }
 0x270   :  { %v3027_v63 = vsel %vm2474_vm0, 4294967295, %v3026_v63  ;;  %v734_v0 = vsel %vm2474_vm0, %v2430_v51, %v2412_v45  ;;  %v740_v1 = vsel %vm2474_vm0, %v2432_v52, %v2418_v3  ;;  %vm758_vm4 = vmand %vm756_vm2, %vm757_vm3  ;;  %v2565_v46 = vunpack.c.0.s8 %v869_v35 }
 0x271   :  { %vm759_vm5 = vmor %vm755_vm1, %vm758_vm4  ;;  %vm779_vm6 = vcmp.gt.s32.totalorder %v678_v59, %v734_v0  ;;  %vm780_vm7 = vcmp.eq.s32.totalorder %v678_v59, %v734_v0  ;;  %vm781_vm8 = vcmp.lt.s32.totalorder %v684_v60, %v740_v1 }
 0x272   :  { %v760_v5 = vsel %vm759_vm5, %v653_v56, %v706_v61  ;;  %v764_v6 = vsel %vm759_vm5, %v657_v57, %v712_v62  ;;  %vm782_vm10 = vmand %vm780_vm7, %vm781_vm8  ;;  %v2486_v7 = vsel %vm759_vm5, %v706_v61, %v653_v56  ;;  %v2488_v9 = vsel %vm759_vm5, %v712_v62, %v657_v57 }
 0x273   :  { %vm783_vm11 = vmor %vm779_vm6, %vm782_vm10  ;;  %vm2514_vm8 = vcmp.ne.s32.totalorder %v840_v15, 0 }
 0x274   :  { %v785_v10 = vsel %vm783_vm11, %v678_v59, %v734_v0  ;;  %v2490_v11 = vsel %vm783_vm11, %v734_v0, %v678_v59  ;;  %v791_v12 = vsel %vm783_vm11, %v684_v60, %v740_v1  ;;  %v2492_v13 = vsel %vm783_vm11, %v740_v1, %v684_v60 }
 0x275   :  { %vm806_vm12 = vcmp.gt.s32.totalorder %v760_v5, %v785_v10  ;;  %vm807_vm13 = vcmp.eq.s32.totalorder %v760_v5, %v785_v10  ;;  %vm808_vm15 = vcmp.lt.s32.totalorder %v764_v6, %v791_v12  ;;  %vm1119_vm2 = vcmp.gt.s32.totalorder %v2486_v7, %v2490_v11 }
 0x276   :  { %vm809_vm1 = vmand %vm807_vm13, %vm808_vm15  ;;  %vm1120_vm3 = vcmp.eq.s32.totalorder %v2486_v7, %v2490_v11  ;;  %vm1121_vm4 = vcmp.lt.s32.totalorder %v2488_v9, %v2492_v13  ;;  %v3031_v27 = vsel %vm2514_vm8, 4294967295, %v3030_v27  ;;  %v884_v59 = vand.u32 1, %v2388_v8 }
 0x277   :  { %vm810_vm5 = vmor %vm806_vm12, %vm809_vm1  ;;  %v3038_v8 = vmov 0 }
 0x278   :  { %v811_v18 = vsel %vm810_vm5, %v760_v5, %v785_v10  ;;  %v813_v19 = vsel %vm810_vm5, %v785_v10, %v760_v5  ;;  %v815_v20 = vsel %vm810_vm5, %v764_v6, %v791_v12  ;;  %v817_v21 = vsel %vm810_vm5, %v791_v12, %v764_v6  ;;  %vm1122_vm6 = vmand %vm1120_vm3, %vm1121_vm4 }
 0x279   :  { %v827_v22 = vperm.slane %v811_v18, %v2494_v14  ;;  %v831_v23 = vperm.slane %v815_v20, %v2494_v14  ;;  %v972_v24 = vperm.slane %v813_v19, %v2494_v14  ;;  %v976_v25 = vperm.slane %v817_v21, %v2494_v14  ;;  %vm2510_vm7 = vmor %vm1119_vm2, %vm1122_vm6 }
 0x27a   :  { %v3029_v26 = vsel %vm2510_vm7, 4294967295, %v3028_v26  ;;  %v2522_v28 = vsel %vm2510_vm7, %v2486_v7, %v2490_v11  ;;  %v2528_v29 = vsel %vm2510_vm7, %v2488_v9, %v2492_v13  ;;  %vm2594_vm0 = vcmp.ne.s32.totalorder %v884_v59, 0 }
 0x27b   :  { %vm833_vm10 = vcmp.gt.s32.totalorder %v811_v18, %v827_v22  ;;  %vm834_vm11 = vcmp.eq.s32.totalorder %v811_v18, %v827_v22  ;;  %vm835_vm12 = vcmp.lt.s32.totalorder %v815_v20, %v831_v23  ;;  %vm979_vm15 = vcmp.eq.s32.totalorder %v813_v19, %v972_v24 }
 0x27c   :  { %vm836_vm13 = vmand %vm834_vm11, %vm835_vm12  ;;  %vm980_vm1 = vcmp.lt.s32.totalorder %v817_v21, %v976_v25  ;;  %v2534_v31 = vperm.slane %v2522_v28, %v2494_v14  ;;  %v2538_v32 = vperm.slane %v2528_v29, %v2494_v14  ;;  %vm978_vm3 = vcmp.gt.s32.totalorder %v813_v19, %v972_v24 }
 0x27d   :  { %vm837_vm2 = vmor %vm833_vm10, %vm836_vm13  ;;  %vm2561_vm12 = vcmp.ne.s32.totalorder %v862_v33, 0  ;;  %v3039_v8 = vsel %vm2594_vm0, 4294967295, %v3038_v8  ;;  %v2606_v10 = vsel %vm2444_vm9, %v2406_v41, %v2414_v47  ;;  %v2612_v12 = vsel %vm2444_vm9, %v2410_v43, %v2416_v48 }
 0x27e   :  { %vm842_vm4 = vmxor %vm837_vm2, %vm2514_vm8  ;;  %vm1147_vm6 = vcmp.eq.s32.totalorder %v2522_v28, %v2534_v31  ;;  %vm1148_vm10 = vcmp.lt.s32.totalorder %v2528_v29, %v2538_v32  ;;  %v3033_v42 = vsel %vm2561_vm12, 4294967295, %v3032_v42  ;;  %vm3040_vm9 = vnez %v3027_v63 }
 0x27f   :  { %v843_v38 = vsel %vm842_vm4, %v811_v18, %v827_v22  ;;  %v844_v39 = vsel %vm842_vm4, %v815_v20, %v831_v23  ;;  %vm981_vm5 = vmand %vm979_vm15, %vm980_vm1  ;;  %v2628_v48 = vsel %vm3040_vm9, %v2412_v45, %v2430_v51  ;;  %v2634_v55 = vsel %vm3040_vm9, %v2418_v3, %v2432_v52 }
 0x280   :  { %v849_v40 = vperm.slane %v843_v38, %v2530_v30  ;;  %v853_v44 = vperm.slane %v844_v39, %v2530_v30  ;;  %vm982_vm11 = vmor %vm978_vm3, %vm981_vm5 }
 0x281   :  { %vm987_vm14 = vmxor %vm982_vm11, %vm2514_vm8  ;;  %vm1146_vm11 = vcmp.gt.s32.totalorder %v2522_v28, %v2534_v31 }
 0x282   :  { %vm855_vm1 = vcmp.gt.s32.totalorder %v843_v38, %v849_v40  ;;  %vm856_vm2 = vcmp.eq.s32.totalorder %v843_v38, %v849_v40  ;;  %vm857_vm4 = vcmp.lt.s32.totalorder %v844_v39, %v853_v44  ;;  %v988_v49 = vsel %vm987_vm14, %v813_v19, %v972_v24  ;;  %vm2573_vm3 = vmand %vm1147_vm6, %vm1148_vm10 }
 0x283   :  { %vm858_vm5 = vmand %vm856_vm2, %vm857_vm4  ;;  %v989_v56 = vsel %vm987_vm14, %v817_v21, %v976_v25  ;;  %v994_v57 = vperm.slane %v988_v49, %v2530_v30 }
 0x284   :  { %vm859_vm7 = vmor %vm855_vm1, %vm858_vm5  ;;  %v998_v58 = vperm.slane %v989_v56, %v2530_v30 }
 0x285   :  { %vm864_vm15 = vmxor %vm859_vm7, %vm2561_vm12  ;;  %vm1000_vm6 = vcmp.gt.s32.totalorder %v988_v49, %v994_v57  ;;  %vm1001_vm10 = vcmp.eq.s32.totalorder %v988_v49, %v994_v57 }
 0x286   :  { %v865_v60 = vsel %vm864_vm15, %v843_v38, %v849_v40  ;;  %v866_v61 = vsel %vm864_vm15, %v844_v39, %v853_v44  ;;  %vm1002_vm14 = vcmp.lt.s32.totalorder %v989_v56, %v998_v58  ;;  %vm2588_vm2 = vmor %vm1146_vm11, %vm2573_vm3 }
 0x287   :  { %v871_v0 = vperm.slane %v865_v60, %v2565_v46  ;;  %v875_v1 = vperm.slane %v866_v61, %v2565_v46  ;;  %vm1003_vm1 = vmand %vm1001_vm10, %vm1002_vm14 }
 0x288   :  { %vm1004_vm4 = vmor %vm1000_vm6, %vm1003_vm1 }
 0x289   :  { %vm877_vm7 = vcmp.gt.s32.totalorder %v865_v60, %v871_v0  ;;  %vm878_vm5 = vcmp.eq.s32.totalorder %v865_v60, %v871_v0  ;;  %vm879_vm13 = vcmp.lt.s32.totalorder %v866_v61, %v875_v1  ;;  %vm1009_vm15 = vmxor %vm1004_vm4, %vm2561_vm12 }
 0x28a   :  { %vm880_vm3 = vmand %vm878_vm5, %vm879_vm13  ;;  %v1010_v2 = vsel %vm1009_vm15, %v988_v49, %v994_v57  ;;  %v1011_v4 = vsel %vm1009_vm15, %v989_v56, %v998_v58 }
 0x28b   :  { %vm881_vm11 = vmor %vm877_vm7, %vm880_vm3  ;;  %v1016_v5 = vperm.slane %v1010_v2, %v2565_v46  ;;  %v1020_v6 = vperm.slane %v1011_v4, %v2565_v46 }
 0x28c   :  { %vm886_vm13 = vmxor %vm881_vm11, %vm2594_vm0  ;;  %vm3043_vm11 = vnez %v3029_v26 }
 0x28d   :  { %v887_v15 = vsel %vm886_vm13, %v865_v60, %v871_v0  ;;  %v888_v16 = vsel %vm886_vm13, %v866_v61, %v875_v1  ;;  %vm1022_vm6 = vcmp.gt.s32.totalorder %v1010_v2, %v1016_v5  ;;  %vm1023_vm10 = vcmp.eq.s32.totalorder %v1010_v2, %v1016_v5  ;;  %vm1155_vm14 = vmxor %vm2588_vm2, %vm2514_vm8 }
 0x28e   :  { %v899_v41 = vperm.slane %v887_v15, %v2494_v14  ;;  %v903_v47 = vperm.slane %v888_v16, %v2494_v14  ;;  %vm1024_vm1 = vcmp.lt.s32.totalorder %v1011_v4, %v1020_v6  ;;  %v1156_v43 = vsel %vm1155_vm14, %v2522_v28, %v2534_v31 }
 0x28f   :  { %vm1025_vm2 = vmand %vm1023_vm10, %vm1024_vm1  ;;  %v1157_v17 = vsel %vm1155_vm14, %v2528_v29, %v2538_v32  ;;  %v1162_v18 = vperm.slane %v1156_v43, %v2530_v30  ;;  %v2649_v3 = vsel %vm3043_vm11, %v2490_v11, %v2486_v7  ;;  %v2655_v51 = vsel %vm3043_vm11, %v2492_v13, %v2488_v9 }
 0x290   :  { %vm905_vm4 = vcmp.gt.s32.totalorder %v887_v15, %v899_v41  ;;  %vm906_vm7 = vcmp.eq.s32.totalorder %v887_v15, %v899_v41  ;;  %vm907_vm5 = vcmp.lt.s32.totalorder %v888_v16, %v903_v47  ;;  %vm2640_vm15 = vmor %vm1022_vm6, %vm1025_vm2  ;;  %v1166_v45 = vperm.slane %v1157_v17, %v2530_v30 }
 0x291   :  { %vm908_vm3 = vmand %vm906_vm7, %vm907_vm5  ;;  %vm1169_vm6 = vcmp.eq.s32.totalorder %v1156_v43, %v1162_v18  ;;  %vm1168_vm2 = vcmp.gt.s32.totalorder %v1156_v43, %v1162_v18  ;;  %v2671_v7 = vperm.slane %v2649_v3, %v2494_v14  ;;  %v2675_v9 = vperm.slane %v2655_v51, %v2494_v14 }
 0x292   :  { %vm909_vm13 = vmor %vm905_vm4, %vm908_vm3  ;;  %vm1170_vm10 = vcmp.lt.s32.totalorder %v1157_v17, %v1166_v45  ;;  %v3052_v1 = vmov 0 }
 0x293   :  { %vm914_vm9 = vmxor %vm909_vm13, %vm2514_vm8 }
 0x294   :  { %v915_v52 = vsel %vm914_vm9, %v887_v15, %v899_v41  ;;  %v916_v63 = vsel %vm914_vm9, %v888_v16, %v903_v47  ;;  %vm1031_vm4 = vmxor %vm2640_vm15, %vm2594_vm0 }
 0x295   :  { %v921_v11 = vperm.slane %v915_v52, %v2530_v30  ;;  %v925_v13 = vperm.slane %v916_v63, %v2530_v30  ;;  %v1032_v20 = vsel %vm1031_vm4, %v1010_v2, %v1016_v5  ;;  %v1033_v21 = vsel %vm1031_vm4, %v1011_v4, %v1020_v6  ;;  %vm1171_vm5 = vmand %vm1169_vm6, %vm1170_vm10 }
 0x296   :  { %v1044_v22 = vperm.slane %v1032_v20, %v2494_v14  ;;  %v1048_v23 = vperm.slane %v1033_v21, %v2494_v14  ;;  %vm1172_vm15 = vmor %vm1168_vm2, %vm1171_vm5  ;;  %vm1292_vm4 = vcmp.eq.s32.totalorder %v2649_v3, %v2671_v7  ;;  %vm1293_vm10 = vcmp.lt.s32.totalorder %v2655_v51, %v2675_v9 }
 0x297   :  { %vm927_vm3 = vcmp.gt.s32.totalorder %v915_v52, %v921_v11  ;;  %vm928_vm11 = vcmp.eq.s32.totalorder %v915_v52, %v921_v11  ;;  %vm929_vm13 = vcmp.lt.s32.totalorder %v916_v63, %v925_v13  ;;  %vm1177_vm9 = vmxor %vm1172_vm15, %vm2561_vm12 }
 0x298   :  { %vm930_vm7 = vmand %vm928_vm11, %vm929_vm13  ;;  %vm1051_vm14 = vcmp.eq.s32.totalorder %v1032_v20, %v1044_v22  ;;  %vm1052_vm1 = vcmp.lt.s32.totalorder %v1033_v21, %v1048_v23  ;;  %v1178_v24 = vsel %vm1177_vm9, %v1156_v43, %v1162_v18  ;;  %vm1050_vm6 = vcmp.gt.s32.totalorder %v1032_v20, %v1044_v22 }
 0x299   :  { %vm931_vm0 = vmor %vm927_vm3, %vm930_vm7  ;;  %v1179_v25 = vsel %vm1177_vm9, %v1157_v17, %v1166_v45  ;;  %v1184_v26 = vperm.slane %v1178_v24, %v2565_v46 }
 0x29a   :  { %vm936_vm2 = vmxor %vm931_vm0, %vm2561_vm12  ;;  %v1188_v28 = vperm.slane %v1179_v25, %v2565_v46 }
 0x29b   :  { %v937_v29 = vsel %vm936_vm2, %v915_v52, %v921_v11  ;;  %v938_v31 = vsel %vm936_vm2, %v916_v63, %v925_v13  ;;  %vm1053_vm5 = vmand %vm1051_vm14, %vm1052_vm1  ;;  %vm1191_vm15 = vcmp.eq.s32.totalorder %v1178_v24, %v1184_v26 }
 0x29c   :  { %v943_v32 = vperm.slane %v937_v29, %v2565_v46  ;;  %v947_v33 = vperm.slane %v938_v31, %v2565_v46  ;;  %vm1054_vm7 = vmor %vm1050_vm6, %vm1053_vm5  ;;  %vm1192_vm3 = vcmp.lt.s32.totalorder %v1179_v25, %v1188_v28  ;;  %vm1190_vm6 = vcmp.gt.s32.totalorder %v1178_v24, %v1184_v26 }
 0x29d   :  { %vm2698_vm11 = vmand %vm1292_vm4, %vm1293_vm10  ;;  %vm3046_vm4 = vnez %v3039_v8 }
 0x29e   :  { %v3045_v34 = vsel %vm2698_vm11, 4294967295, %v3044_v34  ;;  %vm1059_vm0 = vmxor %vm1054_vm7, %vm2514_vm8  ;;  %vm949_vm13 = vcmp.gt.s32.totalorder %v937_v29, %v943_v32  ;;  %vm950_vm9 = vcmp.eq.s32.totalorder %v937_v29, %v943_v32  ;;  %vm951_vm14 = vcmp.lt.s32.totalorder %v938_v31, %v947_v33 }
 0x29f   :  { %v1060_v35 = vsel %vm1059_vm0, %v1032_v20, %v1044_v22  ;;  %vm1193_vm1 = vmand %vm1191_vm15, %vm1192_vm3  ;;  %v1061_v38 = vsel %vm1059_vm0, %v1033_v21, %v1048_v23  ;;  %vm1291_vm0 = vcmp.gt.s32.totalorder %v2649_v3, %v2671_v7 }
 0x2a0   :  { %vm952_vm2 = vmand %vm950_vm9, %vm951_vm14  ;;  %v1066_v39 = vperm.slane %v1060_v35, %v2530_v30  ;;  %v1070_v40 = vperm.slane %v1061_v38, %v2530_v30 }
 0x2a1   :  { %vm953_vm5 = vmor %vm949_vm13, %vm952_vm2  ;;  %vm3047_vm13 = vnez %v3033_v42 }
 0x2a2   :  { %vm958_vm10 = vmxor %vm953_vm5, %vm3046_vm4  ;;  %vm1072_vm11 = vcmp.gt.s32.totalorder %v1060_v35, %v1066_v39  ;;  %vm1073_vm12 = vcmp.eq.s32.totalorder %v1060_v35, %v1066_v39  ;;  %vm1074_vm7 = vcmp.lt.s32.totalorder %v1061_v38, %v1070_v40 }
 0x2a3   :  { %v959_v44 = vsel %vm958_vm10, %v937_v29, %v943_v32  ;;  %v960_v49 = vsel %vm958_vm10, %v938_v31, %v947_v33  ;;  %vm1194_vm8 = vmor %vm1190_vm6, %vm1193_vm1  ;;  %vm3049_vm1 = vnez %v3031_v27 }
 0x2a4   :  { %962 = vst [vmem:[#allocation12 + $0x10] sm:$0xff] %v959_v44  ;;  %vm1075_vm3 = vmand %vm1073_vm12, %vm1074_vm7  ;;  %vm3048_vm12 = vnez %v3045_v34  ;;  %vm3051_vm7 = vcmp.eq.s32.totalorder %v2438_v53, %v2545_v36  ;;  %v3074_v34 = vmov 0 }
 0x2a5   :  { %963 = vst [vmem:[#allocation14] sm:$0xff] %v960_v49  ;;  %vm1076_vm15 = vmor %vm1072_vm11, %vm1075_vm3 }
 0x2a6   :  { %vm1081_vm9 = vmxor %vm1076_vm15, %vm3047_vm13 }
 0x2a7   :  { %v1082_v50 = vsel %vm1081_vm9, %v1060_v35, %v1066_v39  ;;  %v1083_v56 = vsel %vm1081_vm9, %v1061_v38, %v1070_v40  ;;  %vm1199_vm14 = vmxor %vm1194_vm8, %vm3046_vm4  ;;  %vm3050_vm8 = vcmp.lt.s32.totalorder %v2440_v54, %v2551_v37 }
 0x2a8   :  { %v1088_v57 = vperm.slane %v1082_v50, %v2565_v46  ;;  %v1092_v58 = vperm.slane %v1083_v56, %v2565_v46  ;;  %v1200_v59 = vsel %vm1199_vm14, %v1178_v24, %v1184_v26  ;;  %v1201_v60 = vsel %vm1199_vm14, %v1179_v25, %v1188_v28  ;;  %vm1295_vm11 = vmor %vm1291_vm0, %vm3048_vm12 }
 0x2a9   :  { %v1212_v61 = vperm.slane %v1200_v59, %v2494_v14  ;;  %v1216_v62 = vperm.slane %v1201_v60, %v2494_v14  ;;  %vm1300_vm2 = vmxor %vm1295_vm11, %vm3049_vm1 }
 0x2aa   :  { %vm1094_vm6 = vcmp.gt.s32.totalorder %v1082_v50, %v1088_v57  ;;  %vm1095_vm5 = vcmp.eq.s32.totalorder %v1082_v50, %v1088_v57  ;;  %vm1096_vm10 = vcmp.lt.s32.totalorder %v1083_v56, %v1092_v58  ;;  %v1301_v0 = vsel %vm1300_vm2, %v2649_v3, %v2671_v7  ;;  %vm2730_vm3 = vmand %vm3051_vm7, %vm3050_vm8 }
 0x2ab   :  { %v3053_v1 = vsel %vm2730_vm3, 4294967295, %v3052_v1  ;;  %vm1097_vm15 = vmand %vm1095_vm5, %vm1096_vm10  ;;  %vm1219_vm0 = vcmp.eq.s32.totalorder %v1200_v59, %v1212_v61  ;;  %vm1220_vm9 = vcmp.lt.s32.totalorder %v1201_v60, %v1216_v62  ;;  %v1302_v2 = vsel %vm1300_vm2, %v2655_v51, %v2675_v9 }
 0x2ac   :  { %vm1098_vm14 = vmor %vm1094_vm6, %vm1097_vm15  ;;  %vm1218_vm12 = vcmp.gt.s32.totalorder %v1200_v59, %v1212_v61  ;;  %v1307_v4 = vperm.slane %v1301_v0, %v2530_v30  ;;  %v1311_v5 = vperm.slane %v1302_v2, %v2530_v30 }
 0x2ad   :  { %vm1103_vm11 = vmxor %vm1098_vm14, %vm3046_vm4 }
 0x2ae   :  { %v1104_v6 = vsel %vm1103_vm11, %v1082_v50, %v1088_v57  ;;  %v1105_v15 = vsel %vm1103_vm11, %v1083_v56, %v1092_v58  ;;  %vm1221_vm8 = vmand %vm1219_vm0, %vm1220_vm9  ;;  %vm1314_vm7 = vcmp.eq.s32.totalorder %v1301_v0, %v1307_v4  ;;  %vm1313_vm10 = vcmp.gt.s32.totalorder %v1301_v0, %v1307_v4 }
 0x2af   :  { %1107 = vst [vmem:[#allocation12] sm:$0xff] %v1104_v6  ;;  %vm1222_vm5 = vmor %vm1218_vm12, %vm1221_vm8  ;;  %vm1315_vm3 = vcmp.lt.s32.totalorder %v1302_v2, %v1311_v5  ;;  %vm3054_vm11 = vnez %v3053_v1  ;;  %vm3055_vm8 = vcmp.gt.s32.totalorder %v2438_v53, %v2545_v36 }
 0x2b0   :  { %1108 = vst [vmem:[#allocation14 + $0x18] sm:$0xff] %v1105_v15  ;;  %vm1227_vm2 = vmxor %vm1222_vm5, %vm3049_vm1 }
 0x2b1   :  { %v1228_v16 = vsel %vm1227_vm2, %v1200_v59, %v1212_v61  ;;  %v1229_v41 = vsel %vm1227_vm2, %v1201_v60, %v1216_v62  ;;  %vm1316_vm6 = vmand %vm1314_vm7, %vm1315_vm3 }
 0x2b2   :  { %v1234_v47 = vperm.slane %v1228_v16, %v2530_v30  ;;  %v1238_v43 = vperm.slane %v1229_v41, %v2530_v30  ;;  %vm1317_vm15 = vmor %vm1313_vm10, %vm1316_vm6 }
 0x2b3   :  { %vm1322_vm0 = vmxor %vm1317_vm15, %vm3047_vm13 }
 0x2b4   :  { %vm1240_vm9 = vcmp.gt.s32.totalorder %v1228_v16, %v1234_v47  ;;  %vm1241_vm14 = vcmp.eq.s32.totalorder %v1228_v16, %v1234_v47  ;;  %vm1242_vm12 = vcmp.lt.s32.totalorder %v1229_v41, %v1238_v43  ;;  %v1323_v17 = vsel %vm1322_vm0, %v1301_v0, %v1307_v4  ;;  %vm1436_vm5 = vmor %vm3055_vm8, %vm3054_vm11 }
 0x2b5   :  { %vm1243_vm2 = vmand %vm1241_vm14, %vm1242_vm12  ;;  %v1324_v18 = vsel %vm1322_vm0, %v1302_v2, %v1311_v5  ;;  %v1329_v19 = vperm.slane %v1323_v17, %v2565_v46  ;;  %v1437_v45 = vsel %vm1436_vm5, %v2438_v53, %v2545_v36  ;;  %v2756_v3 = vsel %vm1436_vm5, %v2545_v36, %v2438_v53 }
 0x2b6   :  { %vm1244_vm3 = vmor %vm1240_vm9, %vm1243_vm2  ;;  %v1333_v51 = vperm.slane %v1324_v18, %v2565_v46  ;;  %v1441_v52 = vsel %vm1436_vm5, %v2440_v54, %v2551_v37  ;;  %v2763_v63 = vsel %vm1436_vm5, %v2551_v37, %v2440_v54  ;;  %vm3056_vm0 = vcmp.lt.s32.totalorder %v2612_v12, %v2634_v55 }
 0x2b7   :  { %vm1249_vm7 = vmxor %vm1244_vm3, %vm3047_vm13  ;;  %vm1335_vm10 = vcmp.gt.s32.totalorder %v1323_v17, %v1329_v19  ;;  %vm1336_vm6 = vcmp.eq.s32.totalorder %v1323_v17, %v1329_v19  ;;  %vm3057_vm9 = vcmp.eq.s32.totalorder %v2606_v10, %v2628_v48 }
 0x2b8   :  { %v1250_v7 = vsel %vm1249_vm7, %v1228_v16, %v1234_v47  ;;  %v1251_v9 = vsel %vm1249_vm7, %v1229_v41, %v1238_v43  ;;  %vm1337_vm15 = vcmp.lt.s32.totalorder %v1324_v18, %v1333_v51  ;;  %vm2773_vm14 = vmand %vm3057_vm9, %vm3056_vm0 }
 0x2b9   :  { %v1256_v54 = vperm.slane %v1250_v7, %v2565_v46  ;;  %v1260_v36 = vperm.slane %v1251_v9, %v2565_v46  ;;  %vm1338_vm12 = vmand %vm1336_vm6, %vm1337_vm15  ;;  %vm3060_vm15 = vcmp.gt.s32.totalorder %v2606_v10, %v2628_v48 }
 0x2ba   :  { %vm1339_vm11 = vmor %vm1335_vm10, %vm1338_vm12 }
 0x2bb   :  { %vm1262_vm8 = vcmp.gt.s32.totalorder %v1250_v7, %v1256_v54  ;;  %vm1263_vm5 = vcmp.eq.s32.totalorder %v1250_v7, %v1256_v54  ;;  %vm1264_vm2 = vcmp.lt.s32.totalorder %v1251_v9, %v1260_v36  ;;  %vm1344_vm3 = vmxor %vm1339_vm11, %vm3046_vm4 }
 0x2bc   :  { %vm1265_vm7 = vmand %vm1263_vm5, %vm1264_vm2  ;;  %v1345_v37 = vsel %vm1344_vm3, %v1323_v17, %v1329_v19  ;;  %v1346_v11 = vsel %vm1344_vm3, %v1324_v18, %v1333_v51 }
 0x2bd   :  { %vm1266_vm13 = vmor %vm1262_vm8, %vm1265_vm7  ;;  %v1357_v13 = vperm.slane %v1345_v37, %v2494_v14  ;;  %v1361_v20 = vperm.slane %v1346_v11, %v2494_v14 }
 0x2be   :  { %vm1271_vm0 = vmxor %vm1266_vm13, %vm3046_vm4 }
 0x2bf   :  { %v1272_v21 = vsel %vm1271_vm0, %v1250_v7, %v1256_v54  ;;  %v1273_v22 = vsel %vm1271_vm0, %v1251_v9, %v1260_v36  ;;  %vm1363_vm10 = vcmp.gt.s32.totalorder %v1345_v37, %v1357_v13  ;;  %vm1364_vm6 = vcmp.eq.s32.totalorder %v1345_v37, %v1357_v13  ;;  %vm1460_vm9 = vmor %vm3060_vm15, %vm2773_vm14 }
 0x2c0   :  { %1275 = vst [vmem:[#allocation12 + $0x18] sm:$0xff] %v1272_v21  ;;  %vm1365_vm12 = vcmp.lt.s32.totalorder %v1346_v11, %v1361_v20  ;;  %v1462_v23 = vsel %vm1460_vm9, %v2606_v10, %v2628_v48  ;;  %v1465_v24 = vsel %vm1460_vm9, %v2628_v48, %v2606_v10  ;;  %v1468_v25 = vsel %vm1460_vm9, %v2612_v12, %v2634_v55 }
 0x2c1   :  { %1276 = vst [vmem:[#allocation14 + $0x8] sm:$0xff] %v1273_v22  ;;  %vm1366_vm13 = vmand %vm1364_vm6, %vm1365_vm12  ;;  %v1471_v26 = vsel %vm1460_vm9, %v2634_v55, %v2612_v12  ;;  %vm1483_vm11 = vcmp.gt.s32.totalorder %v1437_v45, %v1462_v23  ;;  %vm1484_vm8 = vcmp.eq.s32.totalorder %v1437_v45, %v1462_v23  ;;  %vm1485_vm5 = vcmp.lt.s32.totalorder %v1441_v52, %v1468_v25 }
 0x2c2   :  { %vm1367_vm14 = vmor %vm1363_vm10, %vm1366_vm13  ;;  %vm1796_vm2 = vcmp.gt.s32.totalorder %v2756_v3, %v1465_v24  ;;  %vm1797_vm3 = vcmp.eq.s32.totalorder %v2756_v3, %v1465_v24  ;;  %vm1798_vm7 = vcmp.lt.s32.totalorder %v2763_v63, %v1471_v26 }
 0x2c3   :  { %vm1372_vm0 = vmxor %vm1367_vm14, %vm3049_vm1 }
 0x2c4   :  { %v1373_v10 = vsel %vm1372_vm0, %v1345_v37, %v1357_v13  ;;  %v1374_v48 = vsel %vm1372_vm0, %v1346_v11, %v1361_v20  ;;  %vm1486_vm15 = vmand %vm1484_vm8, %vm1485_vm5 }
 0x2c5   :  { %v1379_v28 = vperm.slane %v1373_v10, %v2530_v30  ;;  %v1383_v12 = vperm.slane %v1374_v48, %v2530_v30  ;;  %vm1487_vm6 = vmor %vm1483_vm11, %vm1486_vm15 }
 0x2c6   :  { %v1488_v55 = vsel %vm1487_vm6, %v1437_v45, %v1462_v23  ;;  %v2805_v29 = vsel %vm1487_vm6, %v1462_v23, %v1437_v45  ;;  %v1492_v31 = vsel %vm1487_vm6, %v1441_v52, %v1468_v25  ;;  %v2807_v32 = vsel %vm1487_vm6, %v1468_v25, %v1441_v52  ;;  %vm1799_vm10 = vmand %vm1797_vm3, %vm1798_vm7 }
 0x2c7   :  { %vm1385_vm9 = vcmp.gt.s32.totalorder %v1373_v10, %v1379_v28  ;;  %vm1386_vm12 = vcmp.eq.s32.totalorder %v1373_v10, %v1379_v28  ;;  %vm1387_vm13 = vcmp.lt.s32.totalorder %v1374_v48, %v1383_v12  ;;  %v1504_v33 = vperm.slane %v1488_v55, %v2494_v14  ;;  %vm2812_vm8 = vmor %vm1796_vm2, %vm1799_vm10 }
 0x2c8   :  { %vm1388_vm5 = vmand %vm1386_vm12, %vm1387_vm13  ;;  %v1508_v35 = vperm.slane %v1492_v31, %v2494_v14  ;;  %v1649_v38 = vperm.slane %v2805_v29, %v2494_v14  ;;  %v1653_v39 = vperm.slane %v2807_v32, %v2494_v14  ;;  %v2824_v40 = vsel %vm2812_vm8, %v2756_v3, %v1465_v24 }
 0x2c9   :  { %vm1389_vm11 = vmor %vm1385_vm9, %vm1388_vm5  ;;  %vm1510_vm14 = vcmp.gt.s32.totalorder %v1488_v55, %v1504_v33  ;;  %vm1511_vm2 = vcmp.eq.s32.totalorder %v1488_v55, %v1504_v33  ;;  %v2829_v44 = vsel %vm2812_vm8, %v1465_v24, %v2756_v3  ;;  %v2834_v49 = vsel %vm2812_vm8, %v2763_v63, %v1471_v26 }
 0x2ca   :  { %vm3063_vm3 = vnez %v3033_v42  ;;  %vm1512_vm0 = vcmp.lt.s32.totalorder %v1492_v31, %v1508_v35  ;;  %vm1656_vm15 = vcmp.eq.s32.totalorder %v2805_v29, %v1649_v38  ;;  %vm1657_vm10 = vcmp.lt.s32.totalorder %v2807_v32, %v1653_v39 }
 0x2cb   :  { %vm1394_vm7 = vmxor %vm1389_vm11, %vm3063_vm3  ;;  %v2843_v57 = vsel %vm2812_vm8, %v1471_v26, %v2763_v63  ;;  %vm1655_vm8 = vcmp.gt.s32.totalorder %v2805_v29, %v1649_v38  ;;  %v1817_v2 = vperm.slane %v2824_v40, %v2494_v14  ;;  %v1821_v4 = vperm.slane %v2834_v49, %v2494_v14 }
 0x2cc   :  { %v1395_v50 = vsel %vm1394_vm7, %v1373_v10, %v1379_v28  ;;  %v1396_v56 = vsel %vm1394_vm7, %v1374_v48, %v1383_v12  ;;  %vm1513_vm6 = vmand %vm1511_vm2, %vm1512_vm0  ;;  %v2907_v25 = vperm.slane %v2829_v44, %v2494_v14  ;;  %v2911_v26 = vperm.slane %v2843_v57, %v2494_v14 }
 0x2cd   :  { %v1401_v58 = vperm.slane %v1395_v50, %v2565_v46  ;;  %v1405_v59 = vperm.slane %v1396_v56, %v2565_v46  ;;  %vm1514_vm9 = vmor %vm1510_vm14, %vm1513_vm6 }
 0x2ce   :  { %vm1519_vm12 = vmxor %vm1514_vm9, %vm3049_vm1 }
 0x2cf   :  { %vm1407_vm13 = vcmp.gt.s32.totalorder %v1395_v50, %v1401_v58  ;;  %vm1408_vm5 = vcmp.eq.s32.totalorder %v1395_v50, %v1401_v58  ;;  %vm1409_vm11 = vcmp.lt.s32.totalorder %v1396_v56, %v1405_v59  ;;  %v1520_v60 = vsel %vm1519_vm12, %v1488_v55, %v1504_v33  ;;  %vm2849_vm2 = vmand %vm1656_vm15, %vm1657_vm10 }
 0x2d0   :  { %vm1410_vm7 = vmand %vm1408_vm5, %vm1409_vm11  ;;  %v1521_v62 = vsel %vm1519_vm12, %v1492_v31, %v1508_v35  ;;  %v1526_v0 = vperm.slane %v1520_v60, %v2530_v30  ;;  %vm1824_vm5 = vcmp.eq.s32.totalorder %v2824_v40, %v1817_v2  ;;  %vm1825_vm11 = vcmp.lt.s32.totalorder %v2834_v49, %v1821_v4 }
 0x2d1   :  { %vm1411_vm0 = vmor %vm1407_vm13, %vm1410_vm7  ;;  %v1530_v1 = vperm.slane %v1521_v62, %v2530_v30 }
 0x2d2   :  { %vm1416_vm14 = vmxor %vm1411_vm0, %vm3046_vm4  ;;  %vm1532_vm15 = vcmp.gt.s32.totalorder %v1520_v60, %v1526_v0  ;;  %vm1533_vm6 = vcmp.eq.s32.totalorder %v1520_v60, %v1526_v0  ;;  %vm1823_vm0 = vcmp.gt.s32.totalorder %v2824_v40, %v1817_v2 }
 0x2d3   :  { %v1417_v5 = vsel %vm1416_vm14, %v1395_v50, %v1401_v58  ;;  %v1418_v6 = vsel %vm1416_vm14, %v1396_v56, %v1405_v59  ;;  %vm1534_vm10 = vcmp.lt.s32.totalorder %v1521_v62, %v1530_v1  ;;  %vm2864_vm9 = vmor %vm1655_vm8, %vm2849_vm2 }
 0x2d4   :  { %1420 = vst [vmem:[#allocation12 + $0x8] sm:$0xff] %v1417_v5  ;;  %vm1535_vm12 = vmand %vm1533_vm6, %vm1534_vm10 }
 0x2d5   :  { %1421 = vst [vmem:[#allocation14 + $0x10] sm:$0xff] %v1418_v6  ;;  %vm1536_vm13 = vmor %vm1532_vm15, %vm1535_vm12 }
 0x2d6   :  { %vm1541_vm7 = vmxor %vm1536_vm13, %vm3063_vm3 }
 0x2d7   :  { %v1542_v16 = vsel %vm1541_vm7, %v1520_v60, %v1526_v0  ;;  %v1543_v41 = vsel %vm1541_vm7, %v1521_v62, %v1530_v1  ;;  %vm1664_vm2 = vmxor %vm2864_vm9, %vm3049_vm1 }
 0x2d8   :  { %v1548_v47 = vperm.slane %v1542_v16, %v2565_v46  ;;  %v1552_v43 = vperm.slane %v1543_v41, %v2565_v46  ;;  %v1665_v17 = vsel %vm1664_vm2, %v2805_v29, %v1649_v38  ;;  %v1666_v18 = vsel %vm1664_vm2, %v2807_v32, %v1653_v39  ;;  %vm1826_vm8 = vmand %vm1824_vm5, %vm1825_vm11 }
 0x2d9   :  { %v1671_v19 = vperm.slane %v1665_v17, %v2530_v30  ;;  %v1675_v45 = vperm.slane %v1666_v18, %v2530_v30  ;;  %vm1827_vm14 = vmor %vm1823_vm0, %vm1826_vm8  ;;  %vm3068_vm5 = vnez %v3039_v8 }
 0x2da   :  { %vm1554_vm15 = vcmp.gt.s32.totalorder %v1542_v16, %v1548_v47  ;;  %vm1555_vm6 = vcmp.eq.s32.totalorder %v1542_v16, %v1548_v47  ;;  %vm1556_vm10 = vcmp.lt.s32.totalorder %v1543_v41, %v1552_v43  ;;  %vm1832_vm9 = vmxor %vm1827_vm14, %vm3049_vm1 }
 0x2db   :  { %vm1557_vm12 = vmand %vm1555_vm6, %vm1556_vm10  ;;  %vm1678_vm13 = vcmp.eq.s32.totalorder %v1665_v17, %v1671_v19  ;;  %vm1679_vm7 = vcmp.lt.s32.totalorder %v1666_v18, %v1675_v45  ;;  %v1833_v3 = vsel %vm1832_vm9, %v2824_v40, %v1817_v2  ;;  %vm1677_vm4 = vcmp.gt.s32.totalorder %v1665_v17, %v1671_v19 }
 0x2dc   :  { %vm1558_vm3 = vmor %vm1554_vm15, %vm1557_vm12  ;;  %v1834_v51 = vsel %vm1832_vm9, %v2834_v49, %v1821_v4  ;;  %v1839_v52 = vperm.slane %v1833_v3, %v2530_v30  ;;  %vm3069_vm15 = vnez %v3033_v42 }
 0x2dd   :  { %vm1563_vm11 = vmxor %vm1558_vm3, %vm3068_vm5  ;;  %v1843_v63 = vperm.slane %v1834_v51, %v2530_v30 }
 0x2de   :  { %v1564_v7 = vsel %vm1563_vm11, %v1542_v16, %v1548_v47  ;;  %v1565_v9 = vsel %vm1563_vm11, %v1543_v41, %v1552_v43  ;;  %vm1680_vm0 = vmand %vm1678_vm13, %vm1679_vm7  ;;  %vm1846_vm2 = vcmp.eq.s32.totalorder %v1833_v3, %v1839_v52  ;;  %vm1845_vm13 = vcmp.gt.s32.totalorder %v1833_v3, %v1839_v52 }
 0x2df   :  { %v1576_v53 = vperm.slane %v1564_v7, %v2494_v14  ;;  %v1580_v54 = vperm.slane %v1565_v9, %v2494_v14  ;;  %vm1681_vm8 = vmor %vm1677_vm4, %vm1680_vm0  ;;  %vm1847_vm14 = vcmp.lt.s32.totalorder %v1834_v51, %v1843_v63 }
 0x2e0   :  { %vm1686_vm6 = vmxor %vm1681_vm8, %vm3069_vm15 }
 0x2e1   :  { %vm1582_vm10 = vcmp.gt.s32.totalorder %v1564_v7, %v1576_v53  ;;  %vm1583_vm9 = vcmp.eq.s32.totalorder %v1564_v7, %v1576_v53  ;;  %vm1584_vm12 = vcmp.lt.s32.totalorder %v1565_v9, %v1580_v54  ;;  %v1687_v36 = vsel %vm1686_vm6, %v1665_v17, %v1671_v19  ;;  %vm1848_vm3 = vmand %vm1846_vm2, %vm1847_vm14 }
 0x2e2   :  { %vm1585_vm5 = vmand %vm1583_vm9, %vm1584_vm12  ;;  %v1688_v37 = vsel %vm1686_vm6, %v1666_v18, %v1675_v45  ;;  %v1693_v11 = vperm.slane %v1687_v36, %v2565_v46  ;;  %vm3072_vm9 = vnez %v3039_v8 }
 0x2e3   :  { %vm1586_vm7 = vmor %vm1582_vm10, %vm1585_vm5  ;;  %v1697_v13 = vperm.slane %v1688_v37, %v2565_v46 }
 0x2e4   :  { %vm1591_vm4 = vmxor %vm1586_vm7, %vm3049_vm1  ;;  %vm1699_vm11 = vcmp.gt.s32.totalorder %v1687_v36, %v1693_v11  ;;  %vm1700_vm0 = vcmp.eq.s32.totalorder %v1687_v36, %v1693_v11  ;;  %vm1969_vm7 = vcmp.eq.s32.totalorder %v2829_v44, %v2907_v25 }
 0x2e5   :  { %v1592_v20 = vsel %vm1591_vm4, %v1564_v7, %v1576_v53  ;;  %v1593_v21 = vsel %vm1591_vm4, %v1565_v9, %v1580_v54  ;;  %vm1701_vm8 = vcmp.lt.s32.totalorder %v1688_v37, %v1697_v13  ;;  %vm2899_vm15 = vmor %vm1845_vm13, %vm1848_vm3  ;;  %vm1970_vm4 = vcmp.lt.s32.totalorder %v2843_v57, %v2911_v26 }
 0x2e6   :  { %v1598_v23 = vperm.slane %v1592_v20, %v2530_v30  ;;  %v1602_v24 = vperm.slane %v1593_v21, %v2530_v30  ;;  %vm1702_vm2 = vmand %vm1700_vm0, %vm1701_vm8 }
 0x2e7   :  { %vm1703_vm5 = vmor %vm1699_vm11, %vm1702_vm2  ;;  %vm3073_vm11 = vnez %v3033_v42 }
 0x2e8   :  { %vm1604_vm14 = vcmp.gt.s32.totalorder %v1592_v20, %v1598_v23  ;;  %vm1605_vm6 = vcmp.eq.s32.totalorder %v1592_v20, %v1598_v23  ;;  %vm1606_vm10 = vcmp.lt.s32.totalorder %v1593_v21, %v1602_v24  ;;  %vm1708_vm12 = vmxor %vm1703_vm5, %vm3072_vm9 }
 0x2e9   :  { %vm1607_vm3 = vmand %vm1605_vm6, %vm1606_vm10  ;;  %v1709_v10 = vsel %vm1708_vm12, %v1687_v36, %v1693_v11  ;;  %v1710_v48 = vsel %vm1708_vm12, %v1688_v37, %v1697_v13 }
 0x2ea   :  { %vm1608_vm13 = vmor %vm1604_vm14, %vm1607_vm3  ;;  %v1721_v28 = vperm.slane %v1709_v10, %v2494_v14  ;;  %v1725_v12 = vperm.slane %v1710_v48, %v2494_v14 }
 0x2eb   :  { %vm1613_vm0 = vmxor %vm1608_vm13, %vm3073_vm11 }
 0x2ec   :  { %v1614_v55 = vsel %vm1613_vm0, %v1592_v20, %v1598_v23  ;;  %v1615_v29 = vsel %vm1613_vm0, %v1593_v21, %v1602_v24  ;;  %vm1727_vm8 = vcmp.gt.s32.totalorder %v1709_v10, %v1721_v28  ;;  %vm1728_vm2 = vcmp.eq.s32.totalorder %v1709_v10, %v1721_v28  ;;  %vm1854_vm5 = vmxor %vm2899_vm15, %vm3073_vm11 }
 0x2ed   :  { %v1620_v31 = vperm.slane %v1614_v55, %v2565_v46  ;;  %v1624_v32 = vperm.slane %v1615_v29, %v2565_v46  ;;  %vm1729_vm14 = vcmp.lt.s32.totalorder %v1710_v48, %v1725_v12  ;;  %v1855_v33 = vsel %vm1854_vm5, %v1833_v3, %v1839_v52  ;;  %vm2929_vm6 = vmand %vm1969_vm7, %vm1970_vm4 }
 0x2ee   :  { %v3075_v34 = vsel %vm2929_vm6, 4294967295, %v3074_v34  ;;  %vm1730_vm10 = vmand %vm1728_vm2, %vm1729_vm14  ;;  %v1856_v35 = vsel %vm1854_vm5, %v1834_v51, %v1843_v63  ;;  %v1861_v38 = vperm.slane %v1855_v33, %v2565_v46  ;;  %vm3076_vm4 = vnez %v3039_v8 }
 0x2ef   :  { %vm1626_vm12 = vcmp.gt.s32.totalorder %v1614_v55, %v1620_v31  ;;  %vm1627_vm3 = vcmp.eq.s32.totalorder %v1614_v55, %v1620_v31  ;;  %vm1628_vm13 = vcmp.lt.s32.totalorder %v1615_v29, %v1624_v32  ;;  %vm1731_vm0 = vmor %vm1727_vm8, %vm1730_vm10  ;;  %v1865_v39 = vperm.slane %v1856_v35, %v2565_v46 }
 0x2f0   :  { %vm1629_vm15 = vmand %vm1627_vm3, %vm1628_vm13  ;;  %vm1868_vm1 = vcmp.eq.s32.totalorder %v1855_v33, %v1861_v38  ;;  %vm1867_vm6 = vcmp.gt.s32.totalorder %v1855_v33, %v1861_v38  ;;  %vm3077_vm2 = vnez %v3031_v27  ;;  %vm1968_vm8 = vcmp.gt.s32.totalorder %v2829_v44, %v2907_v25 }
 0x2f1   :  { %vm1630_vm11 = vmor %vm1626_vm12, %vm1629_vm15  ;;  %vm1869_vm9 = vcmp.lt.s32.totalorder %v1856_v35, %v1865_v39 }
 0x2f2   :  { %vm1635_vm7 = vmxor %vm1630_vm11, %vm3076_vm4 }
 0x2f3   :  { %v1636_v40 = vsel %vm1635_vm7, %v1614_v55, %v1620_v31  ;;  %v1637_v49 = vsel %vm1635_vm7, %v1615_v29, %v1624_v32  ;;  %vm1736_vm5 = vmxor %vm1731_vm0, %vm3077_vm2  ;;  %vm3078_vm0 = vnez %v3075_v34  ;;  %v2112_v55 = vld [vmem:[#allocation12 + $0x18] sm:$0xff]  ;;  %v2118_v29 = vld [vmem:[#allocation12 + $0x8] sm:$0xff] }
 0x2f4   :  { %1639 = vst [vmem:[#allocation13] sm:$0xff] %v1636_v40  ;;  %v1737_v50 = vsel %vm1736_vm5, %v1709_v10, %v1721_v28  ;;  %v1738_v56 = vsel %vm1736_vm5, %v1710_v48, %v1725_v12  ;;  %vm1870_vm14 = vmand %vm1868_vm1, %vm1869_vm9  ;;  %v2100_v48 = vld [vmem:[#allocation12 + $0x10] sm:$0xff]  ;;  %v2106_v12 = vld [vmem:[#allocation12] sm:$0xff]  ;;  %v2114_v32 = vsub.s32 2147483647, %v2112_v55 }
 0x2f5   :  { %1640 = vst [vmem:[#allocation15] sm:$0xff] %v1637_v49  ;;  %v1743_v58 = vperm.slane %v1737_v50, %v2530_v30  ;;  %v1747_v59 = vperm.slane %v1738_v56, %v2530_v30  ;;  %vm1871_vm10 = vmor %vm1867_vm6, %vm1870_vm14  ;;  %vm3081_vm6 = vnez %v3033_v42  ;;  %v2102_v28 = vsub.s32 2147483647, %v2100_v48  ;;  %v2157_v40 = vld [vmem:[#allocation14 + $0x10] sm:$0xff] }
 0x2f6   :  { %vm1876_vm11 = vmxor %vm1871_vm10, %vm3076_vm4 }
 0x2f7   :  { %vm1749_vm12 = vcmp.gt.s32.totalorder %v1737_v50, %v1743_v58  ;;  %vm1750_vm3 = vcmp.eq.s32.totalorder %v1737_v50, %v1743_v58  ;;  %vm1751_vm13 = vcmp.lt.s32.totalorder %v1738_v56, %v1747_v59  ;;  %v1877_v60 = vsel %vm1876_vm11, %v1855_v33, %v1861_v38  ;;  %vm2947_vm15 = vmor %vm1968_vm8, %vm3078_vm0 }
 0x2f8   :  { %vm1752_vm1 = vmand %vm1750_vm3, %vm1751_vm13  ;;  %v1878_v62 = vsel %vm1876_vm11, %v1856_v35, %v1865_v39  ;;  %v1889_v0 = vperm.slane %v1877_v60, %v2494_v14  ;;  %v2120_v33 = vsub.s32 2147483647, %v2118_v29  ;;  %v2153_v35 = vld [vmem:[#allocation14 + $0x18] sm:$0xff]  ;;  %v2155_v39 = vld [vmem:[#allocation14 + $0x8] sm:$0xff] }
 0x2f9   :  { %vm1753_vm9 = vmor %vm1749_vm12, %vm1752_vm1  ;;  %v1893_v1 = vperm.slane %v1878_v62, %v2494_v14 }
 0x2fa   :  { %vm1758_vm7 = vmxor %vm1753_vm9, %vm3081_vm6  ;;  %vm1895_vm5 = vcmp.gt.s32.totalorder %v1877_v60, %v1889_v0  ;;  %vm1896_vm14 = vcmp.eq.s32.totalorder %v1877_v60, %v1889_v0 }
 0x2fb   :  { %v1759_v2 = vsel %vm1758_vm7, %v1737_v50, %v1743_v58  ;;  %v1760_v4 = vsel %vm1758_vm7, %v1738_v56, %v1747_v59  ;;  %vm1897_vm10 = vcmp.lt.s32.totalorder %v1878_v62, %v1893_v1  ;;  %vm1977_vm8 = vmxor %vm2947_vm15, %vm3077_vm2 }
 0x2fc   :  { %v1765_v5 = vperm.slane %v1759_v2, %v2565_v46  ;;  %v1769_v6 = vperm.slane %v1760_v4, %v2565_v46  ;;  %vm1898_vm11 = vmand %vm1896_vm14, %vm1897_vm10  ;;  %v1978_v15 = vsel %vm1977_vm8, %v2829_v44, %v2907_v25  ;;  %v1979_v16 = vsel %vm1977_vm8, %v2843_v57, %v2911_v26 }
 0x2fd   :  { %vm1899_vm12 = vmor %vm1895_vm5, %vm1898_vm11  ;;  %v1984_v41 = vperm.slane %v1978_v15, %v2530_v30  ;;  %v1988_v47 = vperm.slane %v1979_v16, %v2530_v30 }
 0x2fe   :  { %vm1771_vm3 = vcmp.gt.s32.totalorder %v1759_v2, %v1765_v5  ;;  %vm1772_vm13 = vcmp.eq.s32.totalorder %v1759_v2, %v1765_v5  ;;  %vm1773_vm0 = vcmp.lt.s32.totalorder %v1760_v4, %v1769_v6  ;;  %vm1904_vm15 = vmxor %vm1899_vm12, %vm3077_vm2 }
 0x2ff   :  { %vm1774_vm1 = vmand %vm1772_vm13, %vm1773_vm0  ;;  %v1905_v43 = vsel %vm1904_vm15, %v1877_v60, %v1889_v0  ;;  %v1906_v17 = vsel %vm1904_vm15, %v1878_v62, %v1893_v1  ;;  %vm1991_vm9 = vcmp.eq.s32.totalorder %v1978_v15, %v1984_v41  ;;  %vm1990_vm5 = vcmp.gt.s32.totalorder %v1978_v15, %v1984_v41 }
 0x300   :  { %vm1775_vm7 = vmor %vm1771_vm3, %vm1774_vm1  ;;  %v1911_v44 = vperm.slane %v1905_v43, %v2530_v30  ;;  %v1915_v57 = vperm.slane %v1906_v17, %v2530_v30  ;;  %vm1992_vm14 = vcmp.lt.s32.totalorder %v1979_v16, %v1988_v47  ;;  %vm3082_vm15 = vnez %v3033_v42  ;;  %v2151_v42 = vld [vmem:[#allocation14] sm:$0xff] }
 0x301   :  { %vm1780_vm10 = vmxor %vm1775_vm7, %vm3076_vm4  ;;  %2158 = vxpose.xlu0.b32.start [1/4] (short) (narrow) %v2151_v42, 8 }
 0x302   :  { %v1781_v18 = vsel %vm1780_vm10, %v1759_v2, %v1765_v5  ;;  %v1782_v19 = vsel %vm1780_vm10, %v1760_v4, %v1769_v6  ;;  %vm1917_vm8 = vcmp.gt.s32.totalorder %v1905_v43, %v1911_v44  ;;  %vm1918_vm11 = vcmp.eq.s32.totalorder %v1905_v43, %v1911_v44  ;;  %vm1993_vm6 = vmand %vm1991_vm9, %vm1992_vm14 }
 0x303   :  { %1784 = vst [vmem:[#allocation13 + $0x8] sm:$0xff] %v1781_v18  ;;  %vm1919_vm12 = vcmp.lt.s32.totalorder %v1906_v17, %v1915_v57  ;;  %vm1994_vm13 = vmor %vm1990_vm5, %vm1993_vm6 }
 0x304   :  { %1785 = vst [vmem:[#allocation15 + $0x8] sm:$0xff] %v1782_v19  ;;  %vm1920_vm0 = vmand %vm1918_vm11, %vm1919_vm12 }
 0x305   :  { %vm1921_vm3 = vmor %vm1917_vm8, %vm1920_vm0 }
 0x306   :  { %vm1926_vm1 = vmxor %vm1921_vm3, %vm3082_vm15 }
 0x307   :  { %v1927_v45 = vsel %vm1926_vm1, %v1905_v43, %v1911_v44  ;;  %v1928_v3 = vsel %vm1926_vm1, %v1906_v17, %v1915_v57  ;;  %vm1999_vm2 = vmxor %vm1994_vm13, %vm3082_vm15 }
 0x308   :  { %v1933_v51 = vperm.slane %v1927_v45, %v2565_v46  ;;  %v1937_v52 = vperm.slane %v1928_v3, %v2565_v46  ;;  %v2000_v63 = vsel %vm1999_vm2, %v1978_v15, %v1984_v41  ;;  %v2001_v7 = vsel %vm1999_vm2, %v1979_v16, %v1988_v47 }
 0x309   :  { %v2006_v9 = vperm.slane %v2000_v63, %v2565_v46  ;;  %v2010_v53 = vperm.slane %v2001_v7, %v2565_v46  ;;  %2159 = vxpose.xlu0.b32.cont [2/4] (short) (narrow) %v2153_v35, 8 }
 0x30a   :  { %vm1939_vm6 = vcmp.gt.s32.totalorder %v1927_v45, %v1933_v51  ;;  %vm1940_vm9 = vcmp.eq.s32.totalorder %v1927_v45, %v1933_v51  ;;  %vm1941_vm7 = vcmp.lt.s32.totalorder %v1928_v3, %v1937_v52 }
 0x30b   :  { %vm1942_vm5 = vmand %vm1940_vm9, %vm1941_vm7  ;;  %vm2013_vm14 = vcmp.eq.s32.totalorder %v2000_v63, %v2006_v9  ;;  %vm2014_vm10 = vcmp.lt.s32.totalorder %v2001_v7, %v2010_v53  ;;  %vm2012_vm11 = vcmp.gt.s32.totalorder %v2000_v63, %v2006_v9 }
 0x30c   :  { %vm1943_vm8 = vmor %vm1939_vm6, %vm1942_vm5  ;;  %vm3083_vm5 = vnez %v3031_v27 }
 0x30d   :  { %vm1948_vm12 = vmxor %vm1943_vm8, %vm3076_vm4 }
 0x30e   :  { %v1949_v54 = vsel %vm1948_vm12, %v1927_v45, %v1933_v51  ;;  %v1950_v36 = vsel %vm1948_vm12, %v1928_v3, %v1937_v52  ;;  %vm2015_vm13 = vmand %vm2013_vm14, %vm2014_vm10 }
 0x30f   :  { %1952 = vst [vmem:[#allocation13 + $0x10] sm:$0xff] %v1949_v54  ;;  %vm2016_vm2 = vmor %vm2012_vm11, %vm2015_vm13 }
 0x310   :  { %1953 = vst [vmem:[#allocation15 + $0x10] sm:$0xff] %v1950_v36  ;;  %vm2021_vm0 = vmxor %vm2016_vm2, %vm3076_vm4 }
 0x311   :  { %v2022_v37 = vsel %vm2021_vm0, %v2000_v63, %v2006_v9  ;;  %v2023_v11 = vsel %vm2021_vm0, %v2001_v7, %v2010_v53  ;;  %2160 = vxpose.xlu0.b32.cont [3/4] (short) (narrow) %v2155_v39, 8 }
 0x312   :  { %v2034_v13 = vperm.slane %v2022_v37, %v2494_v14  ;;  %v2038_v20 = vperm.slane %v2023_v11, %v2494_v14 }
 0x314   :  { %vm2040_vm3 = vcmp.gt.s32.totalorder %v2022_v37, %v2034_v13  ;;  %vm2041_vm1 = vcmp.eq.s32.totalorder %v2022_v37, %v2034_v13  ;;  %vm2042_vm6 = vcmp.lt.s32.totalorder %v2023_v11, %v2038_v20 }
 0x315   :  { %vm2043_vm9 = vmand %vm2041_vm1, %vm2042_vm6 }
 0x316   :  { %vm2044_vm7 = vmor %vm2040_vm3, %vm2043_vm9 }
 0x317   :  { %vm2049_vm14 = vmxor %vm2044_vm7, %vm3083_vm5  ;;  %vm2107_vm5 = vcmp.lt.s32.totalorder %v2106_v12, 0 }
 0x318   :  { %v2050_v21 = vsel %vm2049_vm14, %v2022_v37, %v2034_v13  ;;  %v2051_v22 = vsel %vm2049_vm14, %v2023_v11, %v2038_v20  ;;  %vm2113_vm14 = vcmp.lt.s32.totalorder %v2112_v55, 0 }
 0x319   :  { %v2056_v23 = vperm.slane %v2050_v21, %v2530_v30  ;;  %v2060_v24 = vperm.slane %v2051_v22, %v2530_v30  ;;  %v2115_v34 = vsel %vm2113_vm14, %v2114_v32, %v2112_v55  ;;  %2161 = vxpose.xlu0.b32.end [4/4] (short) (narrow) %v2157_v40, 8 }
 0x31a   :  { %2116 = vst [vmem:[#allocation12 + $0x18] sm:$0xff] %v2115_v34 }
 0x31b   :  { %vm2062_vm10 = vcmp.gt.s32.totalorder %v2050_v21, %v2056_v23  ;;  %vm2063_vm8 = vcmp.eq.s32.totalorder %v2050_v21, %v2056_v23  ;;  %vm2064_vm11 = vcmp.lt.s32.totalorder %v2051_v22, %v2060_v24 }
 0x31c   :  { %vm2065_vm12 = vmand %vm2063_vm8, %vm2064_vm11 }
 0x31d   :  { %vm2066_vm13 = vmor %vm2062_vm10, %vm2065_vm12  ;;  %vm2119_vm10 = vcmp.lt.s32.totalorder %v2118_v29, 0 }
 0x31e   :  { %vm2071_vm2 = vmxor %vm2066_vm13, %vm3082_vm15  ;;  %vm2101_vm15 = vcmp.lt.s32.totalorder %v2100_v48, 0  ;;  %v2121_v38 = vsel %vm2119_vm10, %v2120_v33, %v2118_v29 }
 0x31f   :  { %v2072_v14 = vsel %vm2071_vm2, %v2050_v21, %v2056_v23  ;;  %v2073_v25 = vsel %vm2071_vm2, %v2051_v22, %v2060_v24  ;;  %v2103_v31 = vsel %vm2101_vm15, %v2102_v28, %v2100_v48  ;;  %2122 = vst [vmem:[#allocation12 + $0x8] sm:$0xff] %v2121_v38 }
 0x320   :  { %v2078_v26 = vperm.slane %v2072_v14, %v2565_v46  ;;  %v2082_v27 = vperm.slane %v2073_v25, %v2565_v46  ;;  %v2108_v46 = vsub.s32 2147483647, %v2106_v12  ;;  %2104 = vst [vmem:[#allocation12 + $0x10] sm:$0xff] %v2103_v31  ;;  %2130 = vxpose.xlu1.b32.start [1/4] (short) (narrow) %v2103_v31, 8 }
 0x322   :  { %vm2084_vm0 = vcmp.gt.s32.totalorder %v2072_v14, %v2078_v26  ;;  %vm2085_vm3 = vcmp.eq.s32.totalorder %v2072_v14, %v2078_v26  ;;  %vm2086_vm1 = vcmp.lt.s32.totalorder %v2073_v25, %v2082_v27  ;;  %v2109_v8 = vsel %vm2107_vm5, %v2108_v46, %v2106_v12 }
 0x323   :  { %vm2087_vm6 = vmand %vm2085_vm3, %vm2086_vm1  ;;  %2110 = vst [vmem:[#allocation12] sm:$0xff] %v2109_v8 }
 0x324   :  { %vm2088_vm9 = vmor %vm2084_vm0, %vm2087_vm6 }
 0x325   :  { %vm2093_vm7 = vmxor %vm2088_vm9, %vm3076_vm4 }
 0x326   :  { %v2094_v30 = vsel %vm2093_vm7, %v2072_v14, %v2078_v26  ;;  %v2095_v10 = vsel %vm2093_vm7, %v2073_v25, %v2082_v27 }
 0x327   :  { %2097 = vst [vmem:[#allocation13 + $0x18] sm:$0xff] %v2094_v30 }
 0x328   :  { %2098 = vst [vmem:[#allocation15 + $0x18] sm:$0xff] %v2095_v10  ;;  %2131 = vxpose.xlu1.b32.cont [2/4] (short) (narrow) %v2109_v8, 8 }
 0x330   :  { %2132 = vxpose.xlu1.b32.cont [3/4] (short) (narrow) %v2115_v34, 8 }
 0x338   :  { %2133 = vxpose.xlu1.b32.end [4/4] (short) (narrow) %v2121_v38, 8 }
 0x3a5   :  { %v2162_v49 = vpop.trf.xlu0 }
 0x3a6   :  { %2178 = vst [vmem:[#allocation10] sm:$0xff] %v2162_v49 }
 0x3ad   :  { %v2187_v56 = vld [vmem:[#allocation10] sm:$0x3] }
 0x3ae   :  { %2190 = vst [vmem:[#allocation11] sm:$0x3] %v2187_v56 }
 0x3b5   :  { %v2216_v59 = vld [vmem:[#allocation11] sm:$0x3] }
 0x3b6   :  { %2217 = vst [vmem:[%s3005_s2] sm:$0x3] %v2216_v59 }
 0x3c4   :  { %v2134_v50 = vpop.trf.xlu1 }
 0x3c5   :  { %2150 = vst [vmem:[#allocation7] sm:$0xff] %v2134_v50 }
 0x3cc   :  { %v2181_v58 = vld [vmem:[#allocation7] sm:$0x3] }
 0x3cd   :  { %2184 = vst [vmem:[#allocation8] sm:$0x3] %v2181_v58 }
 0x3ce   :  { %2199 = dma.vmem_to_hbm [thread:$0]  %s2195_s19, 32, %s2197_s22, [#allocation9]  }
 0x3cf   :  { %2341 = dma.done.wait [#allocation9], 32  }
 0x3d0   :  { %2342 = vsyncadd [#allocation9], 4294967264 }
 0x3d1   :  { %2235 = vsyncpa [#allocation9], 1 }

// kernel: _lambda_.7
= control target key start
LH: loop header
LB: loop body
LE: loop exit
PB: predicated region body
PF: predicated region fallthrough
CT: control target
= control target key end

     0   :  { %vm1131_vm0 = vcmask 261120   ;;  %s3389_s1 = inlined_call_operand.vmem [shape: bf16[1568,128], index: 1, kind: input, shape index: {}]   ;;  %s3390_s2 = inlined_call_operand.vmem [shape: f32[1,128], index: 2, kind: input, shape index: {}]   ;;  %s3391_s0 = inlined_call_operand.vmem [shape: bf16[64,1568], index: 0, kind: input, shape index: {}]   ;;  %s3392_s3 = inlined_call_operand.vmem [shape: bf16[128,128], index: 3, kind: input, shape index: {}]   ;;  %s3393_s4 = inlined_call_operand.vmem [shape: f32[1,128], index: 4, kind: input, shape index: {}]   ;;  %s3394_s5 = inlined_call_operand.vmem [shape: bf16[128,128], index: 5, kind: input, shape index: {}]   ;;  %s3395_s6 = inlined_call_operand.vmem [shape: f32[1,128], index: 6, kind: input, shape index: {}]   ;;  %s3396_s7 = inlined_call_operand.vmem [shape: f32[64,128], index: 7, kind: output, shape index: {}]  }
   0x1   :  { %v2478_v0 = vld [vmem:[%s3389_s1 + $0x38] sm:$0xff]  ;;  %v2477_v3 = vld [vmem:[%s3389_s1 + $0x30] sm:$0xff]  ;;  %v2476_v6 = vld [vmem:[%s3389_s1 + $0x28] sm:$0xff] }
   0x2   :  { %v2486_v1 = vld [vmem:[%s3389_s1 + $0x78] sm:$0xff]  ;;  %1144 = vmatpush.bf16.msra.mxu0 %v2478_v0  ;;  %2585 = vmatpush.bf16.msra.mxu3 %v2478_v0  ;;  %v2485_v4 = vld [vmem:[%s3389_s1 + $0x70] sm:$0xff]  ;;  %v2484_v7 = vld [vmem:[%s3389_s1 + $0x68] sm:$0xff] }
   0x3   :  { %v2494_v2 = vld [vmem:[%s3389_s1 + $0xb8] sm:$0xff]  ;;  %1173 = vmatpush.bf16.msra.mxu1 %v2486_v1  ;;  %v2493_v5 = vld [vmem:[%s3389_s1 + $0xb0] sm:$0xff]  ;;  %v2492_v8 = vld [vmem:[%s3389_s1 + $0xa8] sm:$0xff] }
   0x4   :  { %1202 = vmatpush.bf16.msra.mxu2 %v2494_v2  ;;  %v2475_v9 = vld [vmem:[%s3389_s1 + $0x20] sm:$0xff]  ;;  %v2474_v12 = vld [vmem:[%s3389_s1 + $0x18] sm:$0xff]  ;;  %v2473_v15 = vld [vmem:[%s3389_s1 + $0x10] sm:$0xff] }
   0x5   :  { %v2483_v10 = vld [vmem:[%s3389_s1 + $0x60] sm:$0xff]  ;;  %v2482_v13 = vld [vmem:[%s3389_s1 + $0x58] sm:$0xff]  ;;  %v2481_v16 = vld [vmem:[%s3389_s1 + $0x50] sm:$0xff] }
   0x6   :  { %1145 = vmatpush.bf16.msra.mxu0 %v2477_v3  ;;  %2586 = vmatpush.bf16.msra.mxu3 %v2477_v3  ;;  %v2491_v11 = vld [vmem:[%s3389_s1 + $0xa0] sm:$0xff]  ;;  %v2490_v14 = vld [vmem:[%s3389_s1 + $0x98] sm:$0xff]  ;;  %v2489_v17 = vld [vmem:[%s3389_s1 + $0x90] sm:$0xff] }
   0x7   :  { %1174 = vmatpush.bf16.msra.mxu1 %v2485_v4  ;;  %v2472_v18 = vld [vmem:[%s3389_s1 + $0x8] sm:$0xff]  ;;  %v2471_v21 = vld [vmem:[%s3389_s1] sm:$0xff]  ;;  %v2425_v25 = vld [vmem:[%s3391_s0 + $0x30] sm:$0xf0] }
   0x8   :  { %1203 = vmatpush.bf16.msra.mxu2 %v2493_v5  ;;  %v2480_v19 = vld [vmem:[%s3389_s1 + $0x48] sm:$0xff]  ;;  %v2479_v22 = vld [vmem:[%s3389_s1 + $0x40] sm:$0xff]  ;;  %v1857_v26 = vld [vmem:[%s3391_s0 + $0xd0] sm:$0xf] }
   0x9   :  { %v2488_v20 = vld [vmem:[%s3389_s1 + $0x88] sm:$0xff]  ;;  %v2487_v23 = vld [vmem:[%s3389_s1 + $0x80] sm:$0xff]  ;;  %v1755_v29 = vld [vmem:[%s3391_s0 + $0x34] sm:$0xf0] }
   0xa   :  { %1146 = vmatpush.bf16.msra.mxu0 %v2476_v6  ;;  %2587 = vmatpush.bf16.msra.mxu3 %v2476_v6  ;;  %v1753_v24 = vld [vmem:[%s3391_s0] sm:$0xf]  ;;  %v2451_v27 = vld [vmem:[%s3391_s0 + $0x100] sm:$0xf0]  ;;  %v1761_v30 = vld [vmem:[%s3391_s0 + $0x8] sm:$0xf] }
   0xb   :  { %1175 = vmatpush.bf16.msra.mxu1 %v2484_v7  ;;  %v2419_v28 = vld [vmem:[%s3391_s0 + $0x4] sm:$0xf]  ;;  %v2426_v31 = vld [vmem:[%s3391_s0 + $0x38] sm:$0xf0]  ;;  %v1754_v34 = vor.u32 %v2425_v25, %v1753_v24  ;;  %v1858_v35 = vor.u32 %v2451_v27, %v1857_v26  ;;  %v2509_v38 = vld [vmem:[%s3389_s1 + $0x130] sm:$0xff] }
   0xc   :  { %1204 = vmatpush.bf16.msra.mxu2 %v2492_v8  ;;  %v2510_v32 = vld [vmem:[%s3389_s1 + $0x138] sm:$0xff]  ;;  %v1758_v36 = vor.u32 %v2419_v28, %v1755_v29  ;;  %v1762_v37 = vor.u32 %v2426_v31, %v1761_v30  ;;  %v2501_v39 = vld [vmem:[%s3389_s1 + $0xf0] sm:$0xff]  ;;  %v2508_v44 = vld [vmem:[%s3389_s1 + $0x128] sm:$0xff] }
   0xd   :  { %v2502_v33 = vld [vmem:[%s3389_s1 + $0xf8] sm:$0xff]  ;;  %v2517_v42 = vld [vmem:[%s3389_s1 + $0x170] sm:$0xff]  ;;  %v2500_v45 = vld [vmem:[%s3389_s1 + $0xe8] sm:$0xff] }
   0xe   :  { %1147 = vmatpush.bf16.msra.mxu0 %v2475_v9  ;;  %2588 = vmatpush.bf16.msra.mxu3 %v2475_v9  ;;  %v2518_v40 = vld [vmem:[%s3389_s1 + $0x178] sm:$0xff]  ;;  %v2525_v43 = vld [vmem:[%s3389_s1 + $0x1b0] sm:$0xff]  ;;  %v2516_v46 = vld [vmem:[%s3389_s1 + $0x168] sm:$0xff] }
   0xf   :  { %1176 = vmatpush.bf16.msra.mxu1 %v2483_v10  ;;  %v2526_v41 = vld [vmem:[%s3389_s1 + $0x1b8] sm:$0xff]  ;;  %v2524_v47 = vld [vmem:[%s3389_s1 + $0x1a8] sm:$0xff]  ;;  %v2507_v48 = vld [vmem:[%s3389_s1 + $0x120] sm:$0xff] }
  0x10   :  { %1205 = vmatpush.bf16.msra.mxu2 %v2491_v11  ;;  %v2499_v49 = vld [vmem:[%s3389_s1 + $0xe0] sm:$0xff]  ;;  %v1805_v50 = vld [vmem:[%s3391_s0 + $0x68] sm:$0xf]  ;;  %v2438_v51 = vld [vmem:[%s3391_s0 + $0x98] sm:$0xf0] }
  0x11   :  { %v1909_v52 = vld [vmem:[%s3391_s0 + $0x138] sm:$0xf]  ;;  %v2464_v53 = vld [vmem:[%s3391_s0 + $0x168] sm:$0xf0]  ;;  %v1807_v55 = vld [vmem:[%s3391_s0 + $0x9c] sm:$0xf0]  ;;  %v1806_v62 = vor.u32 %v2438_v51, %v1805_v50 }
  0x12   :  { %1148 = vmatpush.bf16.msra.mxu0 %v2474_v12  ;;  %2589 = vmatpush.bf16.msra.mxu3 %v2474_v12  ;;  %v2432_v54 = vld [vmem:[%s3391_s0 + $0x6c] sm:$0xf]  ;;  %v1813_v56 = vld [vmem:[%s3391_s0 + $0x70] sm:$0xf]  ;;  %v2439_v57 = vld [vmem:[%s3391_s0 + $0xa0] sm:$0xf0]  ;;  %v1910_v63 = vor.u32 %v2464_v53, %v1909_v52 }
  0x13   :  { %1177 = vmatpush.bf16.msra.mxu1 %v2482_v13  ;;  %v2515_v58 = vld [vmem:[%s3389_s1 + $0x160] sm:$0xff]  ;;  %v2506_v60 = vld [vmem:[%s3389_s1 + $0x118] sm:$0xff]  ;;  %v1810_v0 = vor.u32 %v2432_v54, %v1807_v55  ;;  %v1814_v1 = vor.u32 %v2439_v57, %v1813_v56  ;;  %v2505_v2 = vld [vmem:[%s3389_s1 + $0x110] sm:$0xff] }
  0x14   :  { %1206 = vmatpush.bf16.msra.mxu2 %v2490_v14  ;;  %v2523_v59 = vld [vmem:[%s3389_s1 + $0x1a0] sm:$0xff]  ;;  %v2498_v61 = vld [vmem:[%s3389_s1 + $0xd8] sm:$0xff]  ;;  %v2497_v3 = vld [vmem:[%s3389_s1 + $0xd0] sm:$0xff] }
  0x15   :  { %v2514_v4 = vld [vmem:[%s3389_s1 + $0x158] sm:$0xff]  ;;  %v2513_v6 = vld [vmem:[%s3389_s1 + $0x150] sm:$0xff]  ;;  %v2504_v8 = vld [vmem:[%s3389_s1 + $0x108] sm:$0xff] }
  0x16   :  { %1149 = vmatpush.bf16.msra.mxu0 %v2473_v15  ;;  %2590 = vmatpush.bf16.msra.mxu3 %v2473_v15  ;;  %v2522_v5 = vld [vmem:[%s3389_s1 + $0x198] sm:$0xff]  ;;  %v2521_v7 = vld [vmem:[%s3389_s1 + $0x190] sm:$0xff]  ;;  %v2496_v9 = vld [vmem:[%s3389_s1 + $0xc8] sm:$0xff] }
  0x17   :  { %1178 = vmatpush.bf16.msra.mxu1 %v2481_v16  ;;  %v2512_v10 = vld [vmem:[%s3389_s1 + $0x148] sm:$0xff]  ;;  %v2503_v12 = vld [vmem:[%s3389_s1 + $0x100] sm:$0xff]  ;;  %v2445_v14 = vld [vmem:[%s3391_s0 + $0xd4] sm:$0xf] }
  0x18   :  { %1207 = vmatpush.bf16.msra.mxu2 %v2489_v17  ;;  %v2520_v11 = vld [vmem:[%s3389_s1 + $0x188] sm:$0xff]  ;;  %v2495_v13 = vld [vmem:[%s3389_s1 + $0xc0] sm:$0xff]  ;;  %v1865_v16 = vld [vmem:[%s3391_s0 + $0xd8] sm:$0xf] }
  0x19   :  { %v1859_v15 = vld [vmem:[%s3391_s0 + $0x104] sm:$0xf0]  ;;  %v2420_v17 = vld [vmem:[%s3391_s0 + $0xc] sm:$0xf]  ;;  %v2511_v24 = vld [vmem:[%s3389_s1 + $0x140] sm:$0xff] }
  0x1a   :  { %1150 = vmatpush.bf16.msra.mxu0 %v2472_v18  ;;  %2591 = vmatpush.bf16.msra.mxu3 %v2472_v18  ;;  %v2542_v18 = vld [vmem:[%s3389_s1 + $0x238] sm:$0xff]  ;;  %v2519_v25 = vld [vmem:[%s3389_s1 + $0x180] sm:$0xff]  ;;  %v1862_v28 = vor.u32 %v2445_v14, %v1859_v15  ;;  %v2541_v30 = vld [vmem:[%s3389_s1 + $0x230] sm:$0xff] }
  0x1b   :  { %1179 = vmatpush.bf16.msra.mxu1 %v2480_v19  ;;  %v2534_v19 = vld [vmem:[%s3389_s1 + $0x1f8] sm:$0xff]  ;;  %v2533_v31 = vld [vmem:[%s3389_s1 + $0x1f0] sm:$0xff]  ;;  %v2536_v52 = vld [vmem:[%s3389_s1 + $0x208] sm:$0xff] }
  0x1c   :  { %1208 = vmatpush.bf16.msra.mxu2 %v2488_v20  ;;  %v1763_v20 = vld [vmem:[%s3391_s0 + $0x3c] sm:$0xf0]  ;;  %v2537_v50 = vld [vmem:[%s3389_s1 + $0x210] sm:$0xff]  ;;  %v2528_v53 = vld [vmem:[%s3389_s1 + $0x1c8] sm:$0xff] }
  0x1d   :  { %v1766_v26 = vor.u32 %v2420_v17, %v1763_v20  ;;  %v2529_v51 = vld [vmem:[%s3389_s1 + $0x1d0] sm:$0xff]  ;;  %v2535_v54 = vld [vmem:[%s3389_s1 + $0x200] sm:$0xff]  ;;  %v2446_v56 = vld [vmem:[%s3391_s0 + $0xdc] sm:$0xf] }
  0x1e   :  { %1151 = vmatpush.bf16.msra.mxu0 %v2471_v21  ;;  %2592 = vmatpush.bf16.msra.mxu3 %v2471_v21  ;;  %v1769_v21 = vld [vmem:[%s3391_s0 + $0x10] sm:$0xf]  ;;  %v2527_v55 = vld [vmem:[%s3389_s1 + $0x1c0] sm:$0xff]  ;;  %v2466_v14 = vld [vmem:[%s3391_s0 + $0x178] sm:$0xf0] }
  0x1f   :  { %1180 = vmatpush.bf16.msra.mxu1 %v2479_v22  ;;  %v2427_v22 = vld [vmem:[%s3391_s0 + $0x40] sm:$0xf0]  ;;  %v1867_v57 = vld [vmem:[%s3391_s0 + $0x10c] sm:$0xf0]  ;;  %v2434_v15 = vld [vmem:[%s3391_s0 + $0x7c] sm:$0xf] }
  0x20   :  { %1209 = vmatpush.bf16.msra.mxu2 %v2487_v23  ;;  %v2452_v23 = vld [vmem:[%s3391_s0 + $0x108] sm:$0xf0]  ;;  %v1770_v27 = vor.u32 %v2427_v22, %v1769_v21  ;;  %v1829_v17 = vld [vmem:[%s3391_s0 + $0x80] sm:$0xf] }
  0x21   :  { %1152 = vmatmul.bf16.vlgmr.msra.gmra.mxu0 %v1754_v34  ;;  %1162 = vmatmul.bf16.vlgmr.msra.gmra.mxu3 %v1858_v35  ;;  %v1866_v29 = vor.u32 %v2452_v23, %v1865_v16  ;;  %v2539_v34 = vld [vmem:[%s3389_s1 + $0x220] sm:$0xff]  ;;  %v1823_v16 = vld [vmem:[%s3391_s0 + $0xac] sm:$0xf0] }
  0x22   :  { %1260 = vmatpush.bf16.msrb.mxu0 %v2510_v32  ;;  %1231 = vmatpush.bf16.msrb.mxu3 %v2502_v33  ;;  %v2540_v32 = vld [vmem:[%s3389_s1 + $0x228] sm:$0xff]  ;;  %v2531_v35 = vld [vmem:[%s3389_s1 + $0x1e0] sm:$0xff]  ;;  %v1826_v23 = vor.u32 %v2434_v15, %v1823_v16 }
  0x23   :  { %1181 = vmatmul.bf16.vlgmr.msra.gmra.mxu1 %v1758_v36  ;;  %1210 = vmatmul.bf16.vlgmr.msra.gmra.mxu2 %v1762_v37  ;;  %v2532_v33 = vld [vmem:[%s3389_s1 + $0x1e8] sm:$0xff]  ;;  %v2458_v36 = vld [vmem:[%s3391_s0 + $0x13c] sm:$0xf]  ;;  %v1911_v37 = vld [vmem:[%s3391_s0 + $0x16c] sm:$0xf0] }
  0x24   :  { %1289 = vmatpush.bf16.msrb.mxu1 %v2518_v40  ;;  %1318 = vmatpush.bf16.msrb.mxu2 %v2526_v41  ;;  %v1815_v40 = vld [vmem:[%s3391_s0 + $0xa4] sm:$0xf0]  ;;  %v1821_v41 = vld [vmem:[%s3391_s0 + $0x78] sm:$0xf]  ;;  %v2555_v20 = vld [vmem:[%s3389_s1 + $0x2a0] sm:$0xff] }
  0x26   :  { %1261 = vmatpush.bf16.msrb.mxu0 %v2509_v38  ;;  %1232 = vmatpush.bf16.msrb.mxu3 %v2501_v39  ;;  %v1917_v38 = vld [vmem:[%s3391_s0 + $0x140] sm:$0xf]  ;;  %v2433_v39 = vld [vmem:[%s3391_s0 + $0x74] sm:$0xf] }
  0x28   :  { %1290 = vmatpush.bf16.msrb.mxu1 %v2517_v42  ;;  %1319 = vmatpush.bf16.msrb.mxu2 %v2525_v43  ;;  %v2440_v42 = vld [vmem:[%s3391_s0 + $0xa8] sm:$0xf0]  ;;  %v2465_v43 = vld [vmem:[%s3391_s0 + $0x170] sm:$0xf0] }
  0x2a   :  { %1262 = vmatpush.bf16.msrb.mxu0 %v2508_v44  ;;  %1233 = vmatpush.bf16.msrb.mxu3 %v2500_v45  ;;  %v2538_v44 = vld [vmem:[%s3389_s1 + $0x218] sm:$0xff] }
  0x2b   :  { %v2530_v45 = vld [vmem:[%s3389_s1 + $0x1d8] sm:$0xff] }
  0x2c   :  { %1291 = vmatpush.bf16.msrb.mxu1 %v2516_v46  ;;  %1320 = vmatpush.bf16.msrb.mxu2 %v2524_v47  ;;  %v1818_v46 = vor.u32 %v2433_v39, %v1815_v40  ;;  %v1822_v47 = vor.u32 %v2440_v42, %v1821_v41  ;;  %v1881_v39 = vld [vmem:[%s3391_s0 + $0xe8] sm:$0xf]  ;;  %v2454_v40 = vld [vmem:[%s3391_s0 + $0x118] sm:$0xf0] }
  0x2e   :  { %1263 = vmatpush.bf16.msrb.mxu0 %v2507_v48  ;;  %1234 = vmatpush.bf16.msrb.mxu3 %v2499_v49  ;;  %v1914_v48 = vor.u32 %v2458_v36, %v1911_v37  ;;  %v1918_v49 = vor.u32 %v2465_v43, %v1917_v38  ;;  %v1785_v36 = vld [vmem:[%s3391_s0 + $0x20] sm:$0xf]  ;;  %v2429_v37 = vld [vmem:[%s3391_s0 + $0x50] sm:$0xf0]  ;;  %v1875_v38 = vld [vmem:[%s3391_s0 + $0x114] sm:$0xf0] }
  0x2f   :  { %v1786_v42 = vor.u32 %v2429_v37, %v1785_v36  ;;  %v2543_v43 = vld [vmem:[%s3389_s1 + $0x240] sm:$0xff] }
  0x30   :  { %1292 = vmatpush.bf16.msrb.mxu1 %v2515_v58  ;;  %1321 = vmatpush.bf16.msrb.mxu2 %v2523_v59  ;;  %v1873_v58 = vld [vmem:[%s3391_s0 + $0xe0] sm:$0xf]  ;;  %v2453_v59 = vld [vmem:[%s3391_s0 + $0x110] sm:$0xf0] }
  0x31   :  { %1157 = vmatmul.bf16.gmra.mxu0 %v1806_v62  ;;  %1167 = vmatmul.bf16.gmra.mxu3 %v1910_v63  ;;  %v1777_v62 = vld [vmem:[%s3391_s0 + $0x18] sm:$0xf]  ;;  %v2428_v63 = vld [vmem:[%s3391_s0 + $0x48] sm:$0xf0] }
  0x32   :  { %1264 = vmatpush.bf16.msrb.mxu0 %v2506_v60  ;;  %1235 = vmatpush.bf16.msrb.mxu3 %v2498_v61  ;;  %v2421_v60 = vld [vmem:[%s3391_s0 + $0x14] sm:$0xf]  ;;  %v1771_v61 = vld [vmem:[%s3391_s0 + $0x44] sm:$0xf0] }
  0x33   :  { %1186 = vmatmul.bf16.gmra.mxu1 %v1810_v0  ;;  %1215 = vmatmul.bf16.gmra.mxu2 %v1814_v1  ;;  %v1870_v0 = vor.u32 %v2446_v56, %v1867_v57  ;;  %v1874_v1 = vor.u32 %v2453_v59, %v1873_v58  ;;  %v2467_v56 = vld [vmem:[%s3391_s0 + $0x180] sm:$0xf0] }
  0x34   :  { %1293 = vmatpush.bf16.msrb.mxu1 %v2514_v4  ;;  %1322 = vmatpush.bf16.msrb.mxu2 %v2522_v5  ;;  %v2550_v4 = vld [vmem:[%s3389_s1 + $0x278] sm:$0xff] }
  0x35   :  { %v2558_v5 = vld [vmem:[%s3389_s1 + $0x2b8] sm:$0xff] }
  0x36   :  { %1265 = vmatpush.bf16.msrb.mxu0 %v2505_v2  ;;  %1236 = vmatpush.bf16.msrb.mxu3 %v2497_v3  ;;  %v1774_v2 = vor.u32 %v2421_v60, %v1771_v61  ;;  %v1778_v3 = vor.u32 %v2428_v63, %v1777_v62  ;;  %v2561_v61 = vld [vmem:[%s3389_s1 + $0x2d0] sm:$0xff]  ;;  %v3129_v62 = vld [vmem:[%s3390_s2] ss:$0 sm:$0xff]  ;;  %v2448_v63 = vld [vmem:[%s3391_s0 + $0xec] sm:$0xf] }
  0x38   :  { %1294 = vmatpush.bf16.msrb.mxu1 %v2513_v6  ;;  %1323 = vmatpush.bf16.msrb.mxu2 %v2521_v7  ;;  %v2566_v6 = vld [vmem:[%s3389_s1 + $0x2f8] sm:$0xff]  ;;  %v2549_v7 = vld [vmem:[%s3389_s1 + $0x270] sm:$0xff] }
  0x3a   :  { %1266 = vmatpush.bf16.msrb.mxu0 %v2504_v8  ;;  %1237 = vmatpush.bf16.msrb.mxu3 %v2496_v9  ;;  %v2557_v8 = vld [vmem:[%s3389_s1 + $0x2b0] sm:$0xff]  ;;  %v2548_v9 = vld [vmem:[%s3389_s1 + $0x268] sm:$0xff] }
  0x3c   :  { %1295 = vmatpush.bf16.msrb.mxu1 %v2512_v10  ;;  %1324 = vmatpush.bf16.msrb.mxu2 %v2520_v11  ;;  %v2556_v10 = vld [vmem:[%s3389_s1 + $0x2a8] sm:$0xff]  ;;  %v2459_v11 = vld [vmem:[%s3391_s0 + $0x144] sm:$0xf] }
  0x3e   :  { %1267 = vmatpush.bf16.msrb.mxu0 %v2503_v12  ;;  %1238 = vmatpush.bf16.msrb.mxu3 %v2495_v13  ;;  %v1919_v12 = vld [vmem:[%s3391_s0 + $0x174] sm:$0xf0]  ;;  %v1925_v13 = vld [vmem:[%s3391_s0 + $0x148] sm:$0xf] }
  0x3f   :  { %v1922_v21 = vor.u32 %v2459_v11, %v1919_v12  ;;  %v1926_v22 = vor.u32 %v2466_v14, %v1925_v13 }
  0x40   :  { %1296 = vmatpush.bf16.msrb.mxu1 %v2511_v24  ;;  %1325 = vmatpush.bf16.msrb.mxu2 %v2519_v25  ;;  %v2546_v25 = vld [vmem:[%s3389_s1 + $0x258] sm:$0xff] }
  0x41   :  { %1239 = vmatmul.bf16.vlgmr.msrb.gmra.mxu3 %v1766_v26  ;;  %1268 = vmatmul.bf16.vlgmr.msrb.gmra.mxu0 %v1770_v27  ;;  %v2554_v26 = vld [vmem:[%s3389_s1 + $0x298] sm:$0xff]  ;;  %v2565_v27 = vld [vmem:[%s3389_s1 + $0x2f0] sm:$0xff] }
  0x42   :  { %1376 = vmatpush.bf16.msra.mxu0 %v2542_v18  ;;  %1347 = vmatpush.bf16.msra.mxu3 %v2534_v19  ;;  %v2441_v18 = vld [vmem:[%s3391_s0 + $0xb0] sm:$0xf0]  ;;  %v2547_v19 = vld [vmem:[%s3389_s1 + $0x260] sm:$0xff] }
  0x43   :  { %1191 = vmatmul.bf16.gmra.mxu1 %v1862_v28  ;;  %1220 = vmatmul.bf16.gmra.mxu2 %v1866_v29  ;;  %v1830_v24 = vor.u32 %v2441_v18, %v1829_v17  ;;  %v2545_v28 = vld [vmem:[%s3389_s1 + $0x250] sm:$0xff]  ;;  %v2568_v17 = vld [vmem:[%s3389_s1 + $0x308] sm:$0xff] }
  0x44   :  { %2593 = vmatpush.bf16.msra.mxu1 %v2550_v4  ;;  %1434 = vmatpush.bf16.msra.mxu2 %v2558_v5  ;;  %v2553_v29 = vld [vmem:[%s3389_s1 + $0x290] sm:$0xff]  ;;  %v1839_v5 = vld [vmem:[%s3391_s0 + $0xbc] sm:$0xf0] }
  0x46   :  { %1377 = vmatpush.bf16.msra.mxu0 %v2541_v30  ;;  %1348 = vmatpush.bf16.msra.mxu3 %v2533_v31  ;;  %v2564_v30 = vld [vmem:[%s3389_s1 + $0x2e8] sm:$0xff] }
  0x47   :  { %v2544_v31 = vld [vmem:[%s3389_s1 + $0x248] sm:$0xff] }
  0x48   :  { %2594 = vmatpush.bf16.msra.mxu1 %v2549_v7  ;;  %1435 = vmatpush.bf16.msra.mxu2 %v2557_v8 }
  0x4a   :  { %1378 = vmatpush.bf16.msra.mxu0 %v2540_v32  ;;  %1349 = vmatpush.bf16.msra.mxu3 %v2532_v33  ;;  %v2552_v32 = vld [vmem:[%s3389_s1 + $0x288] sm:$0xff]  ;;  %v2447_v33 = vld [vmem:[%s3391_s0 + $0xe4] sm:$0xf] }
  0x4c   :  { %2595 = vmatpush.bf16.msra.mxu1 %v2548_v9  ;;  %1436 = vmatpush.bf16.msra.mxu2 %v2556_v10  ;;  %v2559_v10 = vld [vmem:[%s3389_s1 + $0x2c0] sm:$0xff] }
  0x4e   :  { %1379 = vmatpush.bf16.msra.mxu0 %v2539_v34  ;;  %1350 = vmatpush.bf16.msra.mxu3 %v2531_v35  ;;  %v2422_v34 = vld [vmem:[%s3391_s0 + $0x1c] sm:$0xf]  ;;  %v1779_v35 = vld [vmem:[%s3391_s0 + $0x4c] sm:$0xf0] }
  0x4f   :  { %v1782_v41 = vor.u32 %v2422_v34, %v1779_v35 }
  0x50   :  { %2596 = vmatpush.bf16.msra.mxu1 %v2547_v19  ;;  %1437 = vmatpush.bf16.msra.mxu2 %v2555_v20 }
  0x51   :  { %1244 = vmatmul.bf16.gmra.mxu3 %v1818_v46  ;;  %1273 = vmatmul.bf16.gmra.mxu0 %v1822_v47  ;;  %v1882_v46 = vor.u32 %v2454_v40, %v1881_v39  ;;  %v2563_v47 = vld [vmem:[%s3389_s1 + $0x2e0] sm:$0xff] }
  0x52   :  { %1380 = vmatpush.bf16.msra.mxu0 %v2538_v44  ;;  %1351 = vmatpush.bf16.msra.mxu3 %v2530_v45  ;;  %v2551_v44 = vld [vmem:[%s3389_s1 + $0x280] sm:$0xff]  ;;  %v1878_v45 = vor.u32 %v2447_v33, %v1875_v38 }
  0x53   :  { %1196 = vmatmul.bf16.gmra.mxu1 %v1914_v48  ;;  %1225 = vmatmul.bf16.gmra.mxu2 %v1918_v49  ;;  %v2460_v48 = vld [vmem:[%s3391_s0 + $0x14c] sm:$0xf]  ;;  %v2435_v49 = vld [vmem:[%s3391_s0 + $0x84] sm:$0xf] }
  0x54   :  { %2597 = vmatpush.bf16.msra.mxu1 %v2546_v25  ;;  %1438 = vmatpush.bf16.msra.mxu2 %v2554_v26  ;;  %v1941_v26 = vld [vmem:[%s3391_s0 + $0x158] sm:$0xf] }
  0x56   :  { %1381 = vmatpush.bf16.msra.mxu0 %v2537_v50  ;;  %1352 = vmatpush.bf16.msra.mxu3 %v2529_v51  ;;  %v2562_v50 = vld [vmem:[%s3389_s1 + $0x2d8] sm:$0xff] }
  0x57   :  { %v1831_v51 = vld [vmem:[%s3391_s0 + $0xb4] sm:$0xf0] }
  0x58   :  { %2598 = vmatpush.bf16.msra.mxu1 %v2545_v28  ;;  %1439 = vmatpush.bf16.msra.mxu2 %v2553_v29  ;;  %v1834_v57 = vor.u32 %v2435_v49, %v1831_v51  ;;  %v1891_v29 = vld [vmem:[%s3391_s0 + $0x124] sm:$0xf0]  ;;  %v2462_v49 = vld [vmem:[%s3391_s0 + $0x15c] sm:$0xf]  ;;  %v1795_v51 = vld [vmem:[%s3391_s0 + $0x5c] sm:$0xf0] }
  0x5a   :  { %1382 = vmatpush.bf16.msra.mxu0 %v2536_v52  ;;  %1353 = vmatpush.bf16.msra.mxu3 %v2528_v53  ;;  %v1837_v52 = vld [vmem:[%s3391_s0 + $0x88] sm:$0xf]  ;;  %v2442_v53 = vld [vmem:[%s3391_s0 + $0xb8] sm:$0xf0] }
  0x5b   :  { %v1838_v58 = vor.u32 %v2442_v53, %v1837_v52  ;;  %v1943_v52 = vld [vmem:[%s3391_s0 + $0x18c] sm:$0xf0]  ;;  %v1897_v53 = vld [vmem:[%s3391_s0 + $0xf8] sm:$0xf] }
  0x5c   :  { %2599 = vmatpush.bf16.msra.mxu1 %v2544_v31  ;;  %1440 = vmatpush.bf16.msra.mxu2 %v2552_v32 }
  0x5e   :  { %1383 = vmatpush.bf16.msra.mxu0 %v2535_v54  ;;  %1354 = vmatpush.bf16.msra.mxu3 %v2527_v55  ;;  %v1927_v54 = vld [vmem:[%s3391_s0 + $0x17c] sm:$0xf0]  ;;  %v1933_v55 = vld [vmem:[%s3391_s0 + $0x150] sm:$0xf] }
  0x5f   :  { %v1930_v59 = vor.u32 %v2460_v48, %v1927_v54  ;;  %v1934_v60 = vor.u32 %v2467_v56, %v1933_v55  ;;  %v1787_v48 = vld [vmem:[%s3391_s0 + $0x54] sm:$0xf0]  ;;  %v2456_v54 = vld [vmem:[%s3391_s0 + $0x128] sm:$0xf0] }
  0x60   :  { %2600 = vmatpush.bf16.msra.mxu1 %v2543_v43  ;;  %1441 = vmatpush.bf16.msra.mxu2 %v2551_v44 }
  0x61   :  { %1249 = vmatmul.bf16.gmra.mxu3 %v1870_v0  ;;  %1278 = vmatmul.bf16.gmra.mxu0 %v1874_v1  ;;  %v1883_v0 = vld [vmem:[%s3391_s0 + $0x11c] sm:$0xf0]  ;;  %v2560_v1 = vld [vmem:[%s3389_s1 + $0x2c8] sm:$0xff] }
  0x62   :  { %1405 = vmatpush.bf16.msrb.mxu0 %v2550_v4  ;;  %1463 = vmatpush.bf16.msrb.mxu3 %v2566_v6  ;;  %v2436_v4 = vld [vmem:[%s3391_s0 + $0x8c] sm:$0xf]  ;;  %v1793_v6 = vld [vmem:[%s3391_s0 + $0x28] sm:$0xf]  ;;  %v1886_v8 = vor.u32 %v2448_v63, %v1883_v0  ;;  %v1898_v63 = vor.u32 %v2456_v54, %v1897_v53 }
  0x63   :  { %1297 = vmatmul.bf16.vlgmr.msrb.gmra.mxu1 %v1774_v2  ;;  %1326 = vmatmul.bf16.vlgmr.msrb.gmra.mxu2 %v1778_v3  ;;  %v1889_v2 = vld [vmem:[%s3391_s0 + $0xf0] sm:$0xf]  ;;  %v2455_v3 = vld [vmem:[%s3391_s0 + $0x120] sm:$0xf0]  ;;  %v1842_v12 = vor.u32 %v2436_v4, %v1839_v5 }
  0x66   :  { %1406 = vmatpush.bf16.msrb.mxu0 %v2549_v7  ;;  %1464 = vmatpush.bf16.msrb.mxu3 %v2565_v27  ;;  %v2430_v7 = vld [vmem:[%s3391_s0 + $0x58] sm:$0xf0]  ;;  %v2468_v27 = vld [vmem:[%s3391_s0 + $0x188] sm:$0xf0] }
  0x67   :  { %v1794_v13 = vor.u32 %v2430_v7, %v1793_v6  ;;  %v1942_v35 = vor.u32 %v2468_v27, %v1941_v26 }
  0x6a   :  { %1407 = vmatpush.bf16.msrb.mxu0 %v2548_v9  ;;  %1465 = vmatpush.bf16.msrb.mxu3 %v2564_v30  ;;  %v1890_v9 = vor.u32 %v2455_v3, %v1889_v2  ;;  %v1845_v30 = vld [vmem:[%s3391_s0 + $0x90] sm:$0xf] }
  0x6e   :  { %1408 = vmatpush.bf16.msrb.mxu0 %v2547_v19  ;;  %1466 = vmatpush.bf16.msrb.mxu3 %v2563_v47  ;;  %v2423_v47 = vld [vmem:[%s3391_s0 + $0x24] sm:$0xf] }
  0x71   :  { %1254 = vmatmul.bf16.gmra.mxu3 %v1922_v21  ;;  %1283 = vmatmul.bf16.gmra.mxu0 %v1926_v22 }
  0x72   :  { %1409 = vmatpush.bf16.msrb.mxu0 %v2546_v25  ;;  %1467 = vmatpush.bf16.msrb.mxu3 %v2562_v50  ;;  %v1935_v25 = vld [vmem:[%s3391_s0 + $0x184] sm:$0xf0]  ;;  %v2424_v50 = vld [vmem:[%s3391_s0 + $0x2c] sm:$0xf] }
  0x73   :  { %1302 = vmatmul.bf16.gmra.mxu1 %v1826_v23  ;;  %1331 = vmatmul.bf16.gmra.mxu2 %v1830_v24  ;;  %v2567_v23 = vld [vmem:[%s3389_s1 + $0x300] sm:$0xff]  ;;  %v2461_v24 = vld [vmem:[%s3391_s0 + $0x154] sm:$0xf] }
  0x74   :  { %v1938_v34 = vor.u32 %v2461_v24, %v1935_v25 }
  0x76   :  { %1410 = vmatpush.bf16.msrb.mxu0 %v2545_v28  ;;  %1468 = vmatpush.bf16.msrb.mxu3 %v2561_v61  ;;  %v2449_v28 = vld [vmem:[%s3391_s0 + $0xf4] sm:$0xf]  ;;  %v1946_v61 = vor.u32 %v2462_v49, %v1943_v52 }
  0x77   :  { %v1894_v37 = vor.u32 %v2449_v28, %v1891_v29 }
  0x7a   :  { %1411 = vmatpush.bf16.msrb.mxu0 %v2544_v31  ;;  %1469 = vmatpush.bf16.msrb.mxu3 %v2560_v1  ;;  %v2443_v31 = vld [vmem:[%s3391_s0 + $0xc0] sm:$0xf0] }
  0x7b   :  { %v1846_v38 = vor.u32 %v2443_v31, %v1845_v30 }
  0x7e   :  { %1412 = vmatpush.bf16.msrb.mxu0 %v2543_v43  ;;  %1470 = vmatpush.bf16.msrb.mxu3 %v2559_v10 }
  0x81   :  { %1355 = vmatmul.bf16.vlgmr.msra.gmra.mxu3 %v1782_v41  ;;  %1384 = vmatmul.bf16.vlgmr.msra.gmra.mxu0 %v1786_v42 }
  0x82   :  { %1498 = vmatpush.bf16.msra.mxu0 %v2568_v17  ;;  %v2469_v17 = vld [vmem:[%s3391_s0 + $0x190] sm:$0xf0] }
  0x83   :  { %1307 = vmatmul.bf16.gmra.mxu1 %v1878_v45  ;;  %1336 = vmatmul.bf16.gmra.mxu2 %v1882_v46 }
  0x86   :  { %1499 = vmatpush.bf16.msra.mxu0 %v2567_v23 }
  0x91   :  { %1360 = vmatmul.bf16.gmra.mxu3 %v1834_v57  ;;  %1389 = vmatmul.bf16.gmra.mxu0 %v1838_v58  ;;  %v1790_v57 = vor.u32 %v2423_v47, %v1787_v48  ;;  %v1798_v58 = vor.u32 %v2424_v50, %v1795_v51 }
  0x93   :  { %1312 = vmatmul.bf16.gmra.mxu1 %v1930_v59  ;;  %1341 = vmatmul.bf16.gmra.mxu2 %v1934_v60 }
  0x9e   :  { %v1153_v11 = vpop.f32.mrf.mxu0 }
  0x9f   :  { %v1154_v14 = vadd.f32 %v3129_v62, %v1153_v11  ;;  %v2437_v11 = vld [vmem:[%s3391_s0 + $0x94] sm:$0xf] }
  0xa0   :  { %v1182_v15 = vpop.f32.mrf.mxu1 }
  0xa1   :  { %v1183_v16 = vadd.f32 %v1182_v15, %v1154_v14  ;;  %1365 = vmatmul.bf16.gmra.mxu3 %v1886_v8  ;;  %1394 = vmatmul.bf16.gmra.mxu0 %v1890_v9  ;;  %v2431_v14 = vld [vmem:[%s3391_s0 + $0x60] sm:$0xf0] }
  0xa3   :  { %1418 = vmatmul.bf16.vlgmr.msra.gmra.mxu1 %v1842_v12  ;;  %1442 = vmatmul.bf16.vlgmr.msra.gmra.mxu2 %v1794_v13  ;;  %v1847_v12 = vld [vmem:[%s3391_s0 + $0xc4] sm:$0xf0]  ;;  %v1801_v13 = vld [vmem:[%s3391_s0 + $0x30] sm:$0xf] }
  0xa4   :  { %v1163_v18 = vpop.f32.mrf.mxu3 }
  0xa5   :  { %v1164_v59 = vadd.f32 %v3129_v62, %v1163_v18 }
  0xa6   :  { %v1211_v19 = vpop.f32.mrf.mxu2  ;;  %v1155_v21 = vpop.f32.mrf.mxu0 }
  0xa7   :  { %v1212_v20 = vadd.f32 %v1211_v19, %v1183_v16  ;;  %v1156_v3 = vadd.f32 %v3129_v62, %v1155_v21  ;;  %v1949_v16 = vld [vmem:[%s3391_s0 + $0x160] sm:$0xf]  ;;  %v1850_v21 = vor.u32 %v2437_v11, %v1847_v12 }
  0xa8   :  { %v1184_v22 = vpop.f32.mrf.mxu1  ;;  %v1950_v25 = vor.u32 %v2469_v17, %v1949_v16 }
  0xa9   :  { %v1185_v10 = vadd.f32 %v1184_v22, %v1156_v3  ;;  %v1802_v22 = vor.u32 %v2431_v14, %v1801_v13  ;;  %v1951_v3 = vld [vmem:[%s3391_s0 + $0x194] sm:$0xf0] }
  0xac   :  { %v3192_v32 = vpop.f32.mrf.mxu3 }
  0xae   :  { %v1213_v33 = vpop.f32.mrf.mxu2  ;;  %v1158_v36 = vpop.f32.mrf.mxu0 }
  0xaf   :  { %v1159_v39 = vadd.f32 %v3129_v62, %v1158_v36  ;;  %v1214_v15 = vadd.f32 %v1213_v33, %v1185_v10 }
  0xb0   :  { %v1187_v40 = vpop.f32.mrf.mxu1 }
  0xb1   :  { %v1188_v41 = vadd.f32 %v1187_v40, %v1159_v39  ;;  %1370 = vmatmul.bf16.gmra.mxu3 %v1938_v34  ;;  %1399 = vmatmul.bf16.gmra.mxu0 %v1942_v35 }
  0xb3   :  { %1423 = vmatmul.bf16.gmra.mxu1 %v1894_v37  ;;  %1447 = vmatmul.bf16.gmra.mxu2 %v1846_v38 }
  0xb4   :  { %v1168_v42 = vpop.f32.mrf.mxu3 }
  0xb5   :  { %v1169_v23 = vadd.f32 %v3129_v62, %v1168_v42  ;;  %v1899_v42 = vld [vmem:[%s3391_s0 + $0x12c] sm:$0xf0] }
  0xb6   :  { %v1216_v43 = vpop.f32.mrf.mxu2  ;;  %v1160_v45 = vpop.f32.mrf.mxu0 }
  0xb7   :  { %v1217_v44 = vadd.f32 %v1216_v43, %v1188_v41  ;;  %v1161_v30 = vadd.f32 %v3129_v62, %v1160_v45  ;;  %v2450_v41 = vld [vmem:[%s3391_s0 + $0xfc] sm:$0xf]  ;;  %v1853_v43 = vld [vmem:[%s3391_s0 + $0x98] sm:$0xf] }
  0xb8   :  { %v3195_v46 = vpop.f32.mrf.mxu1  ;;  %v1902_v49 = vor.u32 %v2450_v41, %v1899_v42 }
  0xb9   :  { %v1190_v40 = vadd.f32 %v3195_v46, %v1161_v30 }
  0xbc   :  { %v1170_v55 = vpop.f32.mrf.mxu3 }
  0xbd   :  { %v1171_v34 = vadd.f32 %v3129_v62, %v1170_v55 }
  0xbe   :  { %v1218_v56 = vpop.f32.mrf.mxu2  ;;  %v1269_v60 = vpop.f32.mrf.mxu0 }
  0xbf   :  { %v1219_v45 = vadd.f32 %v1218_v56, %v1190_v40  ;;  %v1166_v56 = vadd.f32 %v3129_v62, %v3192_v32 }
  0xc0   :  { %v1192_v0 = vpop.f32.mrf.mxu1 }
  0xc1   :  { %v1193_v1 = vadd.f32 %v1192_v0, %v1164_v59  ;;  %1413 = vmatmul.bf16.vlgmr.msrb.gmra.mxu0 %v1790_v57  ;;  %1471 = vmatmul.bf16.vlgmr.msrb.gmra.mxu3 %v1798_v58 }
  0xc3   :  { %1428 = vmatmul.bf16.gmra.mxu1 %v1946_v61  ;;  %1452 = vmatmul.bf16.gmra.mxu2 %v1898_v63 }
  0xc4   :  { %v1240_v2 = vpop.f32.mrf.mxu3 }
  0xc5   :  { %v1241_v5 = vadd.f32 %v1240_v2, %v1212_v20  ;;  %v2463_v2 = vld [vmem:[%s3391_s0 + $0x164] sm:$0xf] }
  0xc6   :  { %v1221_v4 = vpop.f32.mrf.mxu2  ;;  %v1271_v7 = vpop.f32.mrf.mxu0 }
  0xc7   :  { %v1222_v6 = vadd.f32 %v1221_v4, %v1193_v1  ;;  %v1270_v9 = vadd.f32 %v1269_v60, %v1241_v5  ;;  %v1905_v4 = vld [vmem:[%s3391_s0 + $0x100] sm:$0xf]  ;;  %v2457_v5 = vld [vmem:[%s3391_s0 + $0x130] sm:$0xf0] }
  0xc8   :  { %v1194_v8 = vpop.f32.mrf.mxu1 }
  0xc9   :  { %v1195_v1 = vadd.f32 %v1194_v8, %v1166_v56  ;;  %v1954_v8 = vor.u32 %v2463_v2, %v1951_v3 }
  0xcc   :  { %v1242_v18 = vpop.f32.mrf.mxu3 }
  0xcd   :  { %v1243_v20 = vadd.f32 %v1242_v18, %v1214_v15 }
  0xce   :  { %v1223_v19 = vpop.f32.mrf.mxu2  ;;  %v1274_v24 = vpop.f32.mrf.mxu0 }
  0xcf   :  { %v3242_v27 = vadd.f32 %v1271_v7, %v1243_v20  ;;  %v1224_v62 = vadd.f32 %v1223_v19, %v1195_v1  ;;  %v2573_v1 = vld [vmem:[%s3392_s3 + $0x20] sm:$0xff] }
  0xd0   :  { %v1197_v26 = vpop.f32.mrf.mxu1 }
  0xd1   :  { %v1198_v28 = vadd.f32 %v1197_v26, %v1169_v23  ;;  %1476 = vmatmul.bf16.gmra.mxu3 %v1850_v21  ;;  %2351 = vmatmul.msk.bf16.vlgmr.msra.gmra.mxu0 %vm1131_vm0, %v1802_v22  ;;  %v1957_v21 = vld [vmem:[%s3391_s0 + $0x168] sm:$0xf]  ;;  %v2470_v22 = vld [vmem:[%s3391_s0 + $0x198] sm:$0xf0] }
  0xd2   :  { %v1958_v26 = vor.u32 %v2470_v22, %v1957_v21 }
  0xd3   :  { %1457 = vmatmul.bf16.gmra.mxu2 %v1950_v25 }
  0xd4   :  { %v1245_v29 = vpop.f32.mrf.mxu3 }
  0xd5   :  { %v1246_v33 = vadd.f32 %v1245_v29, %v1217_v44  ;;  %v2444_v44 = vld [vmem:[%s3391_s0 + $0xc8] sm:$0xf0] }
  0xd6   :  { %v1226_v31 = vpop.f32.mrf.mxu2  ;;  %v1276_v36 = vpop.f32.mrf.mxu0  ;;  %v1854_v50 = vor.u32 %v2444_v44, %v1853_v43 }
  0xd7   :  { %v1227_v35 = vadd.f32 %v1226_v31, %v1198_v28  ;;  %v1275_v38 = vadd.f32 %v1274_v24, %v1246_v33 }
  0xd8   :  { %v1199_v37 = vpop.f32.mrf.mxu1 }
  0xd9   :  { %v1200_v39 = vadd.f32 %v1199_v37, %v1171_v34 }
  0xdc   :  { %v1247_v47 = vpop.f32.mrf.mxu3 }
  0xdd   :  { %v1248_v46 = vadd.f32 %v1247_v47, %v1219_v45  ;;  %v2576_v45 = vld [vmem:[%s3392_s3 + $0x38] sm:$0xff] }
  0xde   :  { %v1228_v48 = vpop.f32.mrf.mxu2  ;;  %v1279_v52 = vpop.f32.mrf.mxu0  ;;  %1601 = vmatpush.bf16.msrb.mxu1 %v2576_v45 }
  0xdf   :  { %v1229_v51 = vadd.f32 %v1228_v48, %v1200_v39  ;;  %v3260_v54 = vadd.f32 %v1276_v36, %v1248_v46  ;;  %v2575_v46 = vld [vmem:[%s3392_s3 + $0x30] sm:$0xff] }
  0xe0   :  { %v1298_v53 = vpop.f32.mrf.mxu1 }
  0xe1   :  { %1481 = vmatmul.bf16.gmra.mxu3 %v1902_v49  ;;  %2352 = vmatmul.msk.bf16.gmra.mxu0 %vm1131_vm0, %v1854_v50  ;;  %v1299_v55 = vadd.f32 %v1298_v53, %v1270_v9  ;;  %v1906_v9 = vor.u32 %v2457_v5, %v1905_v4  ;;  %v2572_v5 = vld [vmem:[%s3392_s3 + $0x18] sm:$0xff] }
  0xe2   :  { %1602 = vmatpush.bf16.msrb.mxu1 %v2575_v46 }
  0xe4   :  { %v1250_v57 = vpop.f32.mrf.mxu3 }
  0xe5   :  { %v1251_v58 = vadd.f32 %v1250_v57, %v1222_v6 }
  0xe6   :  { %v1327_v59 = vpop.f32.mrf.mxu2  ;;  %v1281_v61 = vpop.f32.mrf.mxu0 }
  0xe7   :  { %v1328_v60 = vadd.f32 %v1327_v59, %v1299_v55  ;;  %v1280_v0 = vadd.f32 %v1279_v52, %v1251_v58  ;;  %v2574_v58 = vld [vmem:[%s3392_s3 + $0x28] sm:$0xff] }
  0xe8   :  { %v1300_v63 = vpop.f32.mrf.mxu1  ;;  %1603 = vmatpush.bf16.msrb.mxu1 %v2574_v58 }
  0xe9   :  { %v1301_v40 = vadd.f32 %v1300_v63, %v3242_v27 }
  0xec   :  { %v1252_v32 = vpop.f32.mrf.mxu3  ;;  %1604 = vmatpush.bf16.msrb.mxu1 %v2573_v1 }
  0xed   :  { %v1253_v6 = vadd.f32 %v1252_v32, %v1224_v62 }
  0xee   :  { %v1329_v7 = vpop.f32.mrf.mxu2  ;;  %v1284_v10 = vpop.f32.mrf.mxu0 }
  0xef   :  { %v3277_v12 = vadd.f32 %v1281_v61, %v1253_v6  ;;  %v1330_v41 = vadd.f32 %v1329_v7, %v1301_v40 }
  0xf0   :  { %v1303_v11 = vpop.f32.mrf.mxu1  ;;  %1605 = vmatpush.bf16.msrb.mxu1 %v2572_v5 }
  0xf1   :  { %1486 = vmatmul.bf16.gmra.mxu3 %v1954_v8  ;;  %2353 = vmatmul.msk.bf16.gmra.mxu0 %vm1131_vm0, %v1906_v9  ;;  %v1304_v13 = vadd.f32 %v1303_v11, %v1275_v38 }
  0xf4   :  { %v1255_v14 = vpop.f32.mrf.mxu3 }
  0xf5   :  { %v1256_v15 = vadd.f32 %v1255_v14, %v1227_v35 }
  0xf6   :  { %v1332_v16 = vpop.f32.mrf.mxu2  ;;  %v1286_v18 = vpop.f32.mrf.mxu0 }
  0xf7   :  { %v1333_v17 = vadd.f32 %v1332_v16, %v1304_v13  ;;  %v1285_v19 = vadd.f32 %v1284_v10, %v1256_v15  ;;  %v2570_v13 = vld [vmem:[%s3392_s3 + $0x8] sm:$0xff] }
  0xf8   :  { %v1305_v20 = vpop.f32.mrf.mxu1 }
  0xf9   :  { %v1306_v59 = vadd.f32 %v1305_v20, %v3260_v54  ;;  %v2571_v54 = vld [vmem:[%s3392_s3 + $0x10] sm:$0xff]  ;;  %v2569_v20 = vld [vmem:[%s3392_s3] sm:$0xff] }
  0xfa   :  { %1606 = vmatpush.bf16.msrb.mxu1 %v2571_v54 }
  0xfc   :  { %v1257_v23 = vpop.f32.mrf.mxu3 }
  0xfd   :  { %v1258_v24 = vadd.f32 %v1257_v23, %v1229_v51 }
  0xfe   :  { %v1334_v25 = vpop.f32.mrf.mxu2  ;;  %v1385_v28 = vpop.f32.mrf.mxu0  ;;  %1607 = vmatpush.bf16.msrb.mxu1 %v2570_v13 }
  0xff   :  { %v3286_v30 = vadd.f32 %v1286_v18, %v1258_v24 }
 0x100   :  { %v1308_v29 = vpop.f32.mrf.mxu1 }
 0x101   :  { %2354 = vmatmul.msk.bf16.gmra.mxu0 %vm1131_vm0, %v1958_v26  ;;  %v1309_v31 = vadd.f32 %v1308_v29, %v1280_v0 }
 0x102   :  { %1608 = vmatpush.bf16.msrb.mxu1 %v2569_v20 }
 0x104   :  { %v1356_v33 = vpop.f32.mrf.mxu3 }
 0x105   :  { %v1357_v35 = vadd.f32 %v1356_v33, %v1328_v60  ;;  %v1335_v60 = vadd.f32 %v1334_v25, %v1306_v59 }
 0x106   :  { %v1337_v34 = vpop.f32.mrf.mxu2  ;;  %v1387_v37 = vpop.f32.mrf.mxu0 }
 0x107   :  { %v1338_v36 = vadd.f32 %v1337_v34, %v1309_v31  ;;  %v3289_v39 = vadd.f32 %v1385_v28, %v1357_v35 }
 0x108   :  { %v1310_v38 = vpop.f32.mrf.mxu1 }
 0x109   :  { %v1311_v32 = vadd.f32 %v1310_v38, %v3277_v12 }
 0x10c   :  { %v1358_v42 = vpop.f32.mrf.mxu3 }
 0x10d   :  { %v1359_v44 = vadd.f32 %v1358_v42, %v1330_v41 }
 0x10e   :  { %v1339_v43 = vpop.f32.mrf.mxu2  ;;  %v1390_v47 = vpop.f32.mrf.mxu0 }
 0x10f   :  { %v1388_v48 = vadd.f32 %v1387_v37, %v1359_v44  ;;  %v1340_v6 = vadd.f32 %v1339_v43, %v1311_v32 }
 0x110   :  { %v1313_v49 = vpop.f32.mrf.mxu1 }
 0x111   :  { %v1314_v50 = vadd.f32 %v1313_v49, %v1285_v19 }
 0x114   :  { %v1361_v51 = vpop.f32.mrf.mxu3 }
 0x115   :  { %v1362_v52 = vadd.f32 %v1361_v51, %v1333_v17 }
 0x116   :  { %v1342_v27 = vpop.f32.mrf.mxu2  ;;  %v1392_v55 = vpop.f32.mrf.mxu0 }
 0x117   :  { %v1343_v53 = vadd.f32 %v1342_v27, %v1314_v50  ;;  %v3298_v57 = vadd.f32 %v1390_v47, %v1362_v52 }
 0x118   :  { %v1315_v16 = vpop.f32.mrf.mxu1 }
 0x119   :  { %v1316_v12 = vadd.f32 %v1315_v16, %v3286_v30 }
 0x11c   :  { %v1363_v61 = vpop.f32.mrf.mxu3 }
 0x11d   :  { %v1364_v56 = vadd.f32 %v1363_v61, %v1335_v60 }
 0x11e   :  { %v1395_v63 = vpop.f32.mrf.mxu0  ;;  %v1344_v11 = vpop.f32.mrf.mxu2 }
 0x11f   :  { %v1393_v0 = vadd.f32 %v1392_v55, %v1364_v56  ;;  %v1345_v21 = vadd.f32 %v1344_v11, %v1316_v12 }
 0x120   :  { %v1419_v31 = vpop.f32.mrf.mxu1 }
 0x124   :  { %v1366_v2 = vpop.f32.mrf.mxu3 }
 0x125   :  { %v1367_v3 = vadd.f32 %v1366_v2, %v1338_v36 }
 0x126   :  { %v1397_v4 = vpop.f32.mrf.mxu0  ;;  %v1443_v19 = vpop.f32.mrf.mxu2 }
 0x127   :  { %v3310_v62 = vadd.f32 %v1395_v63, %v1367_v3 }
 0x128   :  { %v1421_v44 = vpop.f32.mrf.mxu1 }
 0x12c   :  { %v1368_v7 = vpop.f32.mrf.mxu3 }
 0x12d   :  { %v1369_v8 = vadd.f32 %v1368_v7, %v1340_v6 }
 0x12e   :  { %v1400_v9 = vpop.f32.mrf.mxu0  ;;  %v1445_v26 = vpop.f32.mrf.mxu2 }
 0x12f   :  { %v3316_v10 = vadd.f32 %v1397_v4, %v1369_v8  ;;  %v2583_v8 = vld [vmem:[%s3394_s5 + $0x30] sm:$0xff] }
 0x134   :  { %v1371_v14 = vpop.f32.mrf.mxu3 }
 0x135   :  { %v1372_v15 = vadd.f32 %v1371_v14, %v1343_v53  ;;  %v1424_v53 = vpop.f32.mrf.mxu1 }
 0x136   :  { %v1402_v17 = vpop.f32.mrf.mxu0  ;;  %v1448_v30 = vpop.f32.mrf.mxu2  ;;  %v1425_v7 = vadd.f32 %v1424_v53, %v3310_v62 }
 0x137   :  { %v3321_v18 = vadd.f32 %v1400_v9, %v1372_v15  ;;  %v2582_v15 = vld [vmem:[%s3394_s5 + $0x28] sm:$0xff] }
 0x13c   :  { %v1373_v22 = vpop.f32.mrf.mxu3 }
 0x13d   :  { %v1374_v23 = vadd.f32 %v1373_v22, %v1345_v21  ;;  %v1426_v5 = vpop.f32.mrf.mxu1 }
 0x13e   :  { %v1414_v24 = vpop.f32.mrf.mxu0  ;;  %v1450_v46 = vpop.f32.mrf.mxu2  ;;  %v1427_v9 = vadd.f32 %v1426_v5, %v3316_v10  ;;  %v2581_v10 = vld [vmem:[%s3394_s5 + $0x20] sm:$0xff] }
 0x13f   :  { %v3327_v25 = vadd.f32 %v1402_v17, %v1374_v23  ;;  %v1415_v34 = vadd.f32 %v1414_v24, %v3289_v39  ;;  %v1420_v39 = vadd.f32 %v1419_v31, %v3298_v57  ;;  %v2584_v57 = vld [vmem:[%s3394_s5 + $0x38] sm:$0xff] }
 0x140   :  { %1710 = vmatpush.bf16.msrb.mxu2 %v2584_v57  ;;  %2601 = vmatpush.bf16.msra.mxu3 %v2584_v57 }
 0x141   :  { %v1444_v37 = vadd.f32 %v1443_v19, %v1415_v34  ;;  %v1449_v55 = vadd.f32 %v1448_v30, %v1420_v39 }
 0x144   :  { %v1472_v28 = vpop.f32.mrf.mxu3  ;;  %1711 = vmatpush.bf16.msrb.mxu2 %v2583_v8  ;;  %2602 = vmatpush.bf16.msra.mxu3 %v2583_v8 }
 0x145   :  { %v1473_v38 = vadd.f32 %v1472_v28, %v1444_v37  ;;  %v1429_v16 = vpop.f32.mrf.mxu1 }
 0x146   :  { %v1416_v29 = vpop.f32.mrf.mxu0  ;;  %v1453_v58 = vpop.f32.mrf.mxu2  ;;  %v1430_v31 = vadd.f32 %v1429_v16, %v3321_v18  ;;  %v2579_v18 = vld [vmem:[%s3394_s5 + $0x10] sm:$0xff] }
 0x147   :  { %v1417_v36 = vadd.f32 %v1416_v29, %v1388_v48  ;;  %v1422_v48 = vadd.f32 %v1421_v44, %v1393_v0  ;;  %v1454_v11 = vadd.f32 %v1453_v58, %v1425_v7 }
 0x148   :  { %1712 = vmatpush.bf16.msrb.mxu2 %v2582_v15  ;;  %2603 = vmatpush.bf16.msra.mxu3 %v2582_v15 }
 0x149   :  { %v1446_v40 = vadd.f32 %v1445_v26, %v1417_v36  ;;  %v1451_v59 = vadd.f32 %v1450_v46, %v1422_v48  ;;  %v2580_v26 = vld [vmem:[%s3394_s5 + $0x18] sm:$0xff] }
 0x14c   :  { %v1474_v33 = vpop.f32.mrf.mxu3  ;;  %1713 = vmatpush.bf16.msrb.mxu2 %v2581_v10  ;;  %2604 = vmatpush.bf16.msra.mxu3 %v2581_v10 }
 0x14d   :  { %v1475_v42 = vadd.f32 %v1474_v33, %v1446_v40  ;;  %v1431_v28 = vpop.f32.mrf.mxu1 }
 0x14e   :  { %v1501_v35 = vpop.f32.mrf.mxu0  ;;  %v1455_v32 = vpop.f32.mrf.mxu2  ;;  %v1432_v34 = vadd.f32 %v1431_v28, %v3327_v25  ;;  %v2578_v25 = vld [vmem:[%s3394_s5 + $0x8] sm:$0xff] }
 0x14f   :  { %v1502_v43 = vadd.f32 %v1501_v35, %v1473_v38  ;;  %v1456_v13 = vadd.f32 %v1455_v32, %v1427_v9 }
 0x150   :  { %1714 = vmatpush.bf16.msrb.mxu2 %v2580_v26  ;;  %2605 = vmatpush.bf16.msra.mxu3 %v2580_v26 }
 0x151   :  { %v1521_v49 = vmax.f32 %v1502_v43, 0.0 }
 0x154   :  { %v1477_v41 = vpop.f32.mrf.mxu3  ;;  %1715 = vmatpush.bf16.msrb.mxu2 %v2579_v18  ;;  %2606 = vmatpush.bf16.msra.mxu3 %v2579_v18 }
 0x155   :  { %v1478_v60 = vadd.f32 %v1477_v41, %v1449_v55 }
 0x156   :  { %v1503_v45 = vpop.f32.mrf.mxu0  ;;  %v1458_v12 = vpop.f32.mrf.mxu2 }
 0x157   :  { %v1504_v47 = vadd.f32 %v1503_v45, %v1475_v42  ;;  %v1459_v30 = vadd.f32 %v1458_v12, %v1430_v31 }
 0x158   :  { %1716 = vmatpush.bf16.msrb.mxu2 %v2578_v25  ;;  %2607 = vmatpush.bf16.msra.mxu3 %v2578_v25 }
 0x159   :  { %v1522_v50 = vmax.f32 %v1504_v47, 0.0  ;;  %v2577_v47 = vld [vmem:[%s3394_s5] sm:$0xff] }
 0x15b   :  { %v1529_v51 = vpack.c.bf16 %v1522_v50, %v1521_v49  ;;  %v2610_v49 = vld [vmem:[%s3393_s4] ss:$0 sm:$0xff] }
 0x15c   :  { %v1479_v27 = vpop.f32.mrf.mxu3  ;;  %1717 = vmatpush.bf16.msrb.mxu2 %v2577_v47  ;;  %2608 = vmatpush.bf16.msra.mxu3 %v2577_v47 }
 0x15d   :  { %1609 = vmatmul.bf16.vlgmr.msrb.gmra.mxu1 %v1529_v51  ;;  %v1480_v56 = vadd.f32 %v1479_v27, %v1451_v59 }
 0x15e   :  { %v1506_v52 = vpop.f32.mrf.mxu0  ;;  %v1460_v33 = vpop.f32.mrf.mxu2 }
 0x15f   :  { %v1507_v63 = vadd.f32 %v1506_v52, %v1478_v60  ;;  %v1461_v36 = vadd.f32 %v1460_v33, %v1432_v34 }
 0x161   :  { %v1523_v3 = vmax.f32 %v1507_v63, 0.0 }
 0x164   :  { %v1482_v61 = vpop.f32.mrf.mxu3 }
 0x165   :  { %v1483_v14 = vadd.f32 %v1482_v61, %v1454_v11  ;;  %v2611_v11 = vld [vmem:[%s3395_s6] ss:$0 sm:$0xff] }
 0x166   :  { %v1508_v1 = vpop.f32.mrf.mxu0 }
 0x167   :  { %v1509_v2 = vadd.f32 %v1508_v1, %v1480_v56 }
 0x169   :  { %v1524_v4 = vmax.f32 %v1509_v2, 0.0 }
 0x16b   :  { %v1530_v54 = vpack.c.bf16 %v1524_v4, %v1523_v3 }
 0x16c   :  { %v1484_v0 = vpop.f32.mrf.mxu3 }
 0x16d   :  { %1614 = vmatmul.bf16.gmra.mxu1 %v1530_v54  ;;  %v1485_v17 = vadd.f32 %v1484_v0, %v1456_v13 }
 0x16e   :  { %v1511_v6 = vpop.f32.mrf.mxu0 }
 0x16f   :  { %v1512_v62 = vadd.f32 %v1511_v6, %v1483_v14 }
 0x171   :  { %v1525_v22 = vmax.f32 %v1512_v62, 0.0 }
 0x174   :  { %v1487_v21 = vpop.f32.mrf.mxu3 }
 0x175   :  { %v1488_v37 = vadd.f32 %v1487_v21, %v1459_v30 }
 0x176   :  { %v1513_v20 = vpop.f32.mrf.mxu0 }
 0x177   :  { %v1514_v19 = vadd.f32 %v1513_v20, %v1485_v17 }
 0x179   :  { %v1526_v23 = vmax.f32 %v1514_v19, 0.0 }
 0x17b   :  { %v1531_v24 = vpack.c.bf16 %v1526_v23, %v1525_v22 }
 0x17c   :  { %v1489_v35 = vpop.f32.mrf.mxu3 }
 0x17d   :  { %1619 = vmatmul.bf16.gmra.mxu1 %v1531_v24  ;;  %v1490_v38 = vadd.f32 %v1489_v35, %v1461_v36 }
 0x17e   :  { %v1516_v29 = vpop.f32.mrf.mxu0 }
 0x17f   :  { %v1517_v40 = vadd.f32 %v1516_v29, %v1488_v37 }
 0x181   :  { %v1527_v43 = vmax.f32 %v1517_v40, 0.0 }
 0x186   :  { %v1518_v41 = vpop.f32.mrf.mxu0 }
 0x187   :  { %v1519_v42 = vadd.f32 %v1518_v41, %v1490_v38 }
 0x189   :  { %v1528_v44 = vmax.f32 %v1519_v42, 0.0 }
 0x18b   :  { %v1532_v45 = vpack.c.bf16 %v1528_v44, %v1527_v43 }
 0x18d   :  { %1624 = vmatmul.bf16.gmra.mxu1 %v1532_v45 }
 0x1da   :  { %v1610_v46 = vpop.f32.mrf.mxu1 }
 0x1db   :  { %v1611_v50 = vadd.f32 %v2610_v49, %v1610_v46 }
 0x1dd   :  { %v1630_v52 = vmax.f32 %v1611_v50, 0.0 }
 0x1e2   :  { %v1612_v51 = vpop.f32.mrf.mxu1 }
 0x1e3   :  { %v1613_v27 = vadd.f32 %v2610_v49, %v1612_v51 }
 0x1e5   :  { %v1631_v39 = vmax.f32 %v1613_v27, 0.0 }
 0x1e7   :  { %v1638_v53 = vpack.c.bf16 %v1631_v39, %v1630_v52 }
 0x1e9   :  { %1718 = vmatmul.bf16.vlgmr.msrb.gmra.mxu2 %v1638_v53 }
 0x1ea   :  { %v1615_v48 = vpop.f32.mrf.mxu1 }
 0x1eb   :  { %v1616_v55 = vadd.f32 %v2610_v49, %v1615_v48 }
 0x1ed   :  { %v1632_v60 = vmax.f32 %v1616_v55, 0.0 }
 0x1f2   :  { %v1617_v58 = vpop.f32.mrf.mxu1 }
 0x1f3   :  { %v1618_v59 = vadd.f32 %v2610_v49, %v1617_v58 }
 0x1f5   :  { %v1633_v61 = vmax.f32 %v1618_v59, 0.0 }
 0x1f7   :  { %v1639_v56 = vpack.c.bf16 %v1633_v61, %v1632_v60 }
 0x1f9   :  { %1723 = vmatmul.bf16.gmra.mxu2 %v1639_v56 }
 0x1fa   :  { %v1620_v63 = vpop.f32.mrf.mxu1 }
 0x1fb   :  { %v1621_v1 = vadd.f32 %v2610_v49, %v1620_v63 }
 0x1fd   :  { %v1634_v4 = vmax.f32 %v1621_v1, 0.0 }
 0x202   :  { %v1622_v2 = vpop.f32.mrf.mxu1 }
 0x203   :  { %v1623_v3 = vadd.f32 %v2610_v49, %v1622_v2 }
 0x205   :  { %v1635_v5 = vmax.f32 %v1623_v3, 0.0 }
 0x207   :  { %v1640_v54 = vpack.c.bf16 %v1635_v5, %v1634_v4 }
 0x209   :  { %1728 = vmatmul.bf16.gmra.mxu2 %v1640_v54 }
 0x20a   :  { %v1625_v32 = vpop.f32.mrf.mxu1 }
 0x20b   :  { %v1626_v57 = vadd.f32 %v2610_v49, %v1625_v32 }
 0x20d   :  { %v1636_v7 = vmax.f32 %v1626_v57, 0.0 }
 0x212   :  { %v1627_v0 = vpop.f32.mrf.mxu1 }
 0x213   :  { %v1628_v6 = vadd.f32 %v2610_v49, %v1627_v0 }
 0x215   :  { %v1637_v8 = vmax.f32 %v1628_v6, 0.0 }
 0x217   :  { %v1641_v9 = vpack.c.bf16 %v1637_v8, %v1636_v7 }
 0x219   :  { %1733 = vmatmul.bf16.vlgmr.msra.gmra.mxu3 %v1641_v9 }
 0x26c   :  { %v1719_v13 = vpop.f32.mrf.mxu2 }
 0x26d   :  { %v1720_v14 = vadd.f32 %v2611_v11, %v1719_v13 }
 0x26f   :  { %1739 = vst [vmem:[%s3396_s7] sm:$0xff] %v1720_v14 }
 0x274   :  { %v1721_v15 = vpop.f32.mrf.mxu2 }
 0x275   :  { %v1722_v16 = vadd.f32 %v2611_v11, %v1721_v15 }
 0x277   :  { %1740 = vst [vmem:[%s3396_s7 + $0x8] sm:$0xff] %v1722_v16 }
 0x27c   :  { %v1724_v17 = vpop.f32.mrf.mxu2 }
 0x27d   :  { %v1725_v62 = vadd.f32 %v2611_v11, %v1724_v17 }
 0x27f   :  { %1741 = vst [vmem:[%s3396_s7 + $0x10] sm:$0xff] %v1725_v62 }
 0x284   :  { %v1726_v12 = vpop.f32.mrf.mxu2 }
 0x285   :  { %v1727_v20 = vadd.f32 %v2611_v11, %v1726_v12 }
 0x287   :  { %1742 = vst [vmem:[%s3396_s7 + $0x18] sm:$0xff] %v1727_v20 }
 0x28c   :  { %v1729_v19 = vpop.f32.mrf.mxu2 }
 0x28d   :  { %v1730_v10 = vadd.f32 %v2611_v11, %v1729_v19 }
 0x28f   :  { %1743 = vst [vmem:[%s3396_s7 + $0x20] sm:$0xff] %v1730_v10 }
 0x294   :  { %v1731_v21 = vpop.f32.mrf.mxu2 }
 0x295   :  { %v1732_v22 = vadd.f32 %v2611_v11, %v1731_v21 }
 0x297   :  { %1744 = vst [vmem:[%s3396_s7 + $0x28] sm:$0xff] %v1732_v22 }
 0x29c   :  { %v1734_v23 = vpop.f32.mrf.mxu3 }
 0x29d   :  { %v1735_v24 = vadd.f32 %v2611_v11, %v1734_v23 }
 0x29f   :  { %1745 = vst [vmem:[%s3396_s7 + $0x30] sm:$0xff] %v1735_v24 }
 0x2a4   :  { %v1736_v26 = vpop.f32.mrf.mxu3 }
 0x2a5   :  { %v1737_v28 = vadd.f32 %v2611_v11, %v1736_v26 }
 0x2a7   :  { %1746 = vst [vmem:[%s3396_s7 + $0x38] sm:$0xff] %v1737_v28 }

</bundles_post_ra>
